<compile_context>
chip_gen: v7x
topology: tpu7x:2x2x1
jax: 0.10.0
libtpu: 0.0.40
codegen_flags: <defaults>
</compile_context>

<pallas_src>
import functools
import math

import jax
import jax.numpy as jnp
import numpy as np
from jax.experimental import pallas as pl
from jax.experimental.pallas import tpu as pltpu


def _round_up(v, m):
    return ((v + m - 1) // m) * m


# ----------------------------------------------------------------------------
# Pallas kernel: whole ConvGRU recurrence for ONE batch tile.
# ----------------------------------------------------------------------------
def _convgru_fused_kernel(*refs, H, W, K, P, S, cins, chs, b_tile, n_steps,
                          out_slot, mxu_dtype):
    # refs = (x_ref, [Bi_0, Bh_0, Bi_1, Bh_1, ...], out_ref, lhs_ref)
    #
    # x_ref   : (b_tile*H, W*Cin0)          input, lanes = x*Cin0 + c
    # Bi_l    : (K*S+128, 3*W*Ch_l)         banded input-conv weight
    #                                       (taps + gates + bias fused), bf16
    # Bh_l    : (K*S+128, 3*W*Ch_l)         banded hidden-conv weight (no bias)
    # out_ref : (n_out, b_tile*H, W*Ch_last) requested frames, lane-dense
    # lhs_ref : (b_tile*H, K*S+128) f32 VMEM scratch for the lowered-conv LHS
    nL = len(chs)
    x_ref = refs[0]
    w_refs = refs[1:1 + 2 * nL]
    out_ref = refs[1 + 2 * nL]
    lhs_ref = refs[2 + 2 * nL]

    M = b_tile * H
    KS = K * S

    # --- LHS scratch init: ONCE per grid step, not once per conv. ----------
    # Interior lanes are fully rewritten by every conv; halo rows / unused
    # lanes are never written (their ranges depend only on dy, P, H), so one
    # zero-fill keeps them zero for the whole recurrence.  Lanes a smaller-C
    # conv leaves stale are multiplied by all-zero weight rows -> harmless.
    lhs_ref[...] = jnp.zeros_like(lhs_ref)
    # Constant-1 lane (lane KS): folds the input-conv bias into the banded
    # weight instead of a per-step broadcast add.
    ones_col = (jax.lax.broadcasted_iota(jnp.int32, (M, 128), 1) == 0)
    lhs_ref[:, KS:] = ones_col.astype(lhs_ref.dtype)

    def conv_banded(a, C, wb_ref):
        # a: (M, W*C) f32, lanes = x*C + c, rows = b*H + y.
        # Write the K row-shifted copies of `a` into lane blocks
        # [dy*S, dy*S + W*C); dy*S is a multiple of 128 -> aligned stores.
        # One MXU matmul then fuses all taps, all 3 gates and the bias:
        #   (M, K*S+128) @ (K*S+128, 3*W*Ch)
        for b in range(b_tile):
            for dy in range(K):
                r0 = max(0, P - dy)            # destination rows (this image)
                r1 = min(H, H + P - dy)
                s0 = r0 + dy - P               # source rows of a (this image)
                s1 = r1 + dy - P
                lhs_ref[b * H + r0:b * H + r1, dy * S:dy * S + W * C] = (
                    a[b * H + s0:b * H + s1])
        return jnp.dot(lhs_ref[...].astype(mxu_dtype), wb_ref[...],
                       preferred_element_type=jnp.float32)

    x0 = x_ref[...].astype(jnp.float32)                        # (M, W*Cin0)
    hs = [jnp.zeros((M, W * c), jnp.float32) for c in chs]     # h stays on-chip

    # Layer 0 receives the same external x at every time step -> hoist its
    # input-path conv (bias already folded into the weight) out of the loop.
    gi_x0 = conv_banded(x0, cins[0], w_refs[0])                # (M, 3*W*ch0)

    # TODO(synk): Python unroll over time; move to an "arbitrary" grid axis
    #             with VMEM-resident hs for realistic sequence lengths.
    for s in range(n_steps):
        a, aC = x0, cins[0]
        for i in range(nL):
            ch = chs[i]
            WC = W * ch
            gi = gi_x0 if i == 0 else conv_banded(a, aC, w_refs[2 * i])
            gh = conv_banded(hs[i], ch, w_refs[2 * i + 1])

            # br/bz/bin/bhn are all-zero by construction (init_hidden) -> dropped.
            rz = jax.nn.sigmoid(gi[:, :2 * WC] + gh[:, :2 * WC])  # fused r|z
            rt = rz[:, :WC]
            zt = rz[:, WC:]
            nt = jnp.tanh(gi[:, 2 * WC:] + rt * gh[:, 2 * WC:])
            h_new = (1.0 - zt) * nt + zt * hs[i]

            hs[i] = h_new
            a, aC = h_new, ch

        if s in out_slot:                       # static skip of unused frames
            out_ref[out_slot[s]] = a.astype(out_ref.dtype)


# ----------------------------------------------------------------------------
# Weight re-packing: conv taps -> banded matmul weight (host-side, once).
# ----------------------------------------------------------------------------
def _make_banded_weight(w_flat, bias, K, W, P, S, mxu_dtype):
    """(3*K*K, Cin, Ch) per-tap weights -> (K*S+128, 3*W*Ch) banded matrix.

    Row index    = dy*S + x_src*Cin + c    (x_src = un-padded input column)
    Column index = g*W*Ch + x*Ch + o       (gate-major, lane-dense output)
    Row K*S holds the (x-tiled) input-conv bias, matched by the constant-1
    lane the kernel writes at lane K*S of the LHS.  All other rows in the
    padding/unused lane ranges are zero, so stale LHS lanes contribute 0.
    """
    w = np.asarray(w_flat, np.float32)
    Cin, Ch = w.shape[1], w.shape[2]
    B = np.zeros((K * S + 128, 3 * W * Ch), np.float32)
    for g in range(3):
        for dy in range(K):
            for dx in range(K):
                wmat = w[g * K * K + dy * K + dx]            # (Cin, Ch)
                for x in range(W):
                    x_src = x + dx - P
                    if 0 <= x_src < W:                       # padded px -> 0
                        r = dy * S + x_src * Cin
                        c = g * W * Ch + x * Ch
                        B[r:r + Cin, c:c + Ch] = wmat
        if bias is not None:
            B[K * S, g * W * Ch:(g + 1) * W * Ch] = np.tile(
                np.asarray(bias, np.float32)[g], W)
    return jnp.asarray(B, dtype=mxu_dtype)


# ----------------------------------------------------------------------------
# Parameter construction (mirrors nn.Conv2d default init bounds).
# ----------------------------------------------------------------------------
def make_cell_params(key, cin, ch, k):
    k_wi, k_bi, k_wh = jax.random.split(key, 3)
    bound_i = 1.0 / math.sqrt(cin * k * k)
    bound_h = 1.0 / math.sqrt(ch * k * k)
    wi = jax.random.uniform(k_wi, (3 * k * k, cin, ch), jnp.float32,
                            -bound_i, bound_i)
    bi = jax.random.uniform(k_bi, (3, ch), jnp.float32, -bound_i, bound_i)
    wh = jax.random.uniform(k_wh, (3 * k * k, ch, ch), jnp.float32,
                            -bound_h, bound_h)
    return {"wi": wi, "bi": bi, "wh": wh}


# ----------------------------------------------------------------------------
# Full ConvGRU forward: one pallas_call for the whole recurrence.
# ----------------------------------------------------------------------------
def _pick_batch_tile(N, H):
    # Feed the MXU more rows (review: M was 16 of a 128/256-row array):
    # largest divisor of N with B_TILE*H <= 256.
    best = 1
    for d in range(1, N + 1):
        if N % d == 0 and d * H <= 256:
            best = d
    return best


def convgru_forward(x, params, hidden_channels, kernel_size, step,
                    effective_step, mxu_dtype=jnp.bfloat16):
    """x: (N, H, W, Cin0) NHWC.  Returns ([outputs at effective steps], last)."""
    N, H, W, Cin0 = x.shape
    K = kernel_size
    P = (K - 1) // 2
    chs = tuple(int(c) for c in hidden_channels)
    nL = len(chs)
    cins = (Cin0,) + chs[:-1]
    Ch_last = chs[-1]
    Cmax = max((Cin0,) + chs)
    S = _round_up(W * Cmax, 128)          # per-tap lane stride, 128-aligned
    b_tile = _pick_batch_tile(N, H)
    M = b_tile * H
    grid = (N // b_tile,)

    # Only the frames the caller consumes are written back to HBM.
    out_steps = sorted(set(int(s) for s in effective_step) | {step - 1})
    out_slot = {s: i for i, s in enumerate(out_steps)}
    n_out = len(out_steps)

    weight_args = []
    in_specs = [pl.BlockSpec((M, W * Cin0), lambda n: (n, 0))]
    for i in range(nL):
        Bi = _make_banded_weight(params[i]["wi"], params[i]["bi"],
                                 K, W, P, S, mxu_dtype)
        Bh = _make_banded_weight(params[i]["wh"], None, K, W, P, S, mxu_dtype)
        weight_args += [Bi, Bh]
        for wa in (Bi, Bh):
            in_specs.append(pl.BlockSpec(wa.shape, lambda n: (0, 0)))

    x2d = x.reshape(N * H, W * Cin0)      # lane-dense activation layout

    kernel = functools.partial(
        _convgru_fused_kernel, H=H, W=W, K=K, P=P, S=S,
        cins=cins, chs=chs, b_tile=b_tile, n_steps=step,
        out_slot=out_slot, mxu_dtype=mxu_dtype)

    out = pl.pallas_call(
        kernel,
        out_shape=jax.ShapeDtypeStruct((n_out, N * H, W * Ch_last), x.dtype),
        grid=grid,
        in_specs=in_specs,
        out_specs=pl.BlockSpec((n_out, M, W * Ch_last), lambda n: (0, n, 0)),
        scratch_shapes=[pltpu.VMEM((M, K * S + 128), jnp.float32)],
        compiler_params=pltpu.CompilerParams(
            # Batch-tile axis is independent -> megacore-splittable on v7x.
            dimension_semantics=("parallel",),
            # Budget derived against v7x's 64 MiB/TC (the smallest VMEM).
            vmem_limit_bytes=48 * 1024 * 1024),
    )(x2d, *weight_args)

    out = out.reshape(n_out, N, H, W, Ch_last)       # NHWC per stored frame
    outputs = [out[out_slot[int(s)]] for s in effective_step]
    last = out[out_slot[step - 1]]
    return outputs, last


# ----------------------------------------------------------------------------
# Pure-JAX reference (lax conv) for correctness checking.
# ----------------------------------------------------------------------------
def _ref_conv(x, w_flat, k, bias=None):
    cin, ch = w_flat.shape[1], w_flat.shape[2]
    w = w_flat.reshape(k, k, cin, ch)  # HWIO
    out = jax.lax.conv_general_dilated(
        x, w, window_strides=(1, 1), padding="SAME",
        dimension_numbers=("NHWC", "HWIO", "NHWC"),
        precision=jax.lax.Precision.HIGHEST)
    if bias is not None:
        out = out + bias
    return out


def _ref_cell(x, h, p, k):
    wi, bi, wh = p["wi"], p["bi"], p["wh"]
    kk = k * k
    rt = jax.nn.sigmoid(_ref_conv(x, wi[0 * kk:1 * kk], k, bi[0])
                        + _ref_conv(h, wh[0 * kk:1 * kk], k))
    zt = jax.nn.sigmoid(_ref_conv(x, wi[1 * kk:2 * kk], k, bi[1])
                        + _ref_conv(h, wh[1 * kk:2 * kk], k))
    nt = jnp.tanh(_ref_conv(x, wi[2 * kk:3 * kk], k, bi[2])
                  + rt * _ref_conv(h, wh[2 * kk:3 * kk], k))
    return (1.0 - zt) * nt + zt * h


def convgru_forward_ref(x, params, hidden_channels, kernel_size, step,
                        effective_step):
    N, H, W, _ = x.shape
    num_layers = len(hidden_channels)
    internal_state = [None] * num_layers
    outputs = []
    last = None
    for s in range(step):
        xs = x
        for i in range(num_layers):
            if s == 0:
                internal_state[i] = jnp.zeros((N, H, W, hidden_channels[i]),
                                              x.dtype)
            h = internal_state[i]
            xs = _ref_cell(xs, h, params[i], kernel_size)
            internal_state[i] = xs
        if s in effective_step:
            outputs.append(xs)
        last = xs
    return outputs, last


# ----------------------------------------------------------------------------
if __name__ == "__main__":
    # Module config (small, consistent with the PyTorch module signature).
    input_channels = 4
    hidden_channels = [8, 8]          # each must be even
    kernel_size = 3
    step = 2
    effective_step = [1]

    N, H, W = 2, 16, 16

    key = jax.random.PRNGKey(0)
    k_x, k_p = jax.random.split(key)

    # Input built in the PyTorch NCHW convention, transposed to NHWC.
    x_nchw = jax.random.normal(k_x, (N, input_channels, H, W), jnp.float32)
    x = jnp.transpose(x_nchw, (0, 2, 3, 1))  # NHWC

    layer_keys = jax.random.split(k_p, len(hidden_channels))
    cins = [input_channels] + hidden_channels
    params = [make_cell_params(layer_keys[i], cins[i], hidden_channels[i],
                               kernel_size)
              for i in range(len(hidden_channels))]

    mxu_dtype = jnp.bfloat16   # bf16 MXU operands (review item, v6e/v7x)
    outputs, last = convgru_forward(x, params, hidden_channels, kernel_size,
                                    step, effective_step, mxu_dtype=mxu_dtype)
    last = jax.block_until_ready(last)
    outputs = [jax.block_until_ready(o) for o in outputs]

    # Correctness check against the pure-JAX f32 (Precision.HIGHEST) reference.
    # Tolerance is deliberately loosened for bf16 MXU operands (review note);
    # structural/layout bugs would produce O(1) errors and still be caught.
    ref_outputs, ref_last = convgru_forward_ref(x, params, hidden_channels,
                                                kernel_size, step,
                                                effective_step)
    tol = 5e-5 if mxu_dtype == jnp.float32 else 5e-2
    ok = bool(jnp.allclose(last, ref_last, atol=tol, rtol=tol))
    for o, ro in zip(outputs, ref_outputs):
        ok = ok and bool(jnp.allclose(o, ro, atol=tol, rtol=tol))

    if ok:
        print("KERNEL_OK")
    else:
        print("MISMATCH")
</pallas_src>

<mosaic_0001>
module attributes {stable_mosaic.version = 11 : i64} {
  func.func @_convgru_fused_kernel(%arg0: i32, %arg1: memref<32x64xf32, #tpu.memory_space<vmem>>, %arg2: memref<512x384xbf16, #tpu.memory_space<vmem>>, %arg3: memref<512x384xbf16, #tpu.memory_space<vmem>>, %arg4: memref<512x384xbf16, #tpu.memory_space<vmem>>, %arg5: memref<512x384xbf16, #tpu.memory_space<vmem>>, %arg6: memref<1x32x128xf32, #tpu.memory_space<vmem>>, %arg7: memref<32x512xf32, #tpu.memory_space<vmem>>) attributes {dimension_semantics = [#tpu.dimension_semantics<parallel>], iteration_bounds = array<i64: 1>, scalar_prefetch = 0 : i64, scratch_operands = 1 : i64, tpu.core_type = #tpu.core_type<tc>, window_params = [{transform_indices = @transform_0, window_bounds = array<i64: 32, 64>}, {pipeline_mode = #tpu.pipeline_mode<synchronous>, transform_indices = @transform_1, window_bounds = array<i64: 512, 384>}, {pipeline_mode = #tpu.pipeline_mode<synchronous>, transform_indices = @transform_2, window_bounds = array<i64: 512, 384>}, {pipeline_mode = #tpu.pipeline_mode<synchronous>, transform_indices = @transform_3, window_bounds = array<i64: 512, 384>}, {pipeline_mode = #tpu.pipeline_mode<synchronous>, transform_indices = @transform_4, window_bounds = array<i64: 512, 384>}, {transform_indices = @transform_5, window_bounds = array<i64: 1, 32, 128>}]} {
    %cst = arith.constant 0.000000e+00 : f32
    %0 = vector.broadcast %cst : f32 to vector<32x512xf32>
    %c0 = arith.constant 0 : index
    %c0_0 = arith.constant 0 : index
    %1 = vector.load %arg7[%c0, %c0_0] : memref<32x512xf32, #tpu.memory_space<vmem>>, vector<32x512xf32>
    tpu.vector_store %arg7[%c0, %c0_0], %0 {strides = array<i32>} : memref<32x512xf32, #tpu.memory_space<vmem>>, vector<32x512xf32>,
    %2 = tpu.iota {dimensions = array<i32: 1>} : vector<32x128xi32>
    %c0_i32 = arith.constant 0 : i32
    %3 = vector.broadcast %c0_i32 : i32 to vector<32x128xi32>
    %4 = arith.cmpi eq, %2, %3 : vector<32x128xi32>
    %5 = arith.extui %4 : vector<32x128xi1> to vector<32x128xi32>
    %6 = arith.sitofp %5 : vector<32x128xi32> to vector<32x128xf32>
    %c0_1 = arith.constant 0 : index
    %c384 = arith.constant 384 : index
    %7 = vector.load %arg7[%c0_1, %c384] : memref<32x512xf32, #tpu.memory_space<vmem>>, vector<32x128xf32>
    tpu.vector_store %arg7[%c0_1, %c384], %6 {strides = array<i32>} : memref<32x512xf32, #tpu.memory_space<vmem>>, vector<32x128xf32>,
    %c0_2 = arith.constant 0 : index
    %c0_3 = arith.constant 0 : index
    %8 = vector.load %arg1[%c0_2, %c0_3] : memref<32x64xf32, #tpu.memory_space<vmem>>, vector<32x64xf32>
    %cst_4 = arith.constant 0.000000e+00 : f32
    %9 = vector.broadcast %cst_4 : f32 to vector<32x128xf32>
    %cst_5 = arith.constant 0.000000e+00 : f32
    %10 = vector.broadcast %cst_5 : f32 to vector<32x128xf32>
    %11 = vector.extract_strided_slice %8 {offsets = [0, 0], sizes = [15, 64], strides = [1, 1]} : vector<32x64xf32> to vector<15x64xf32>
    %c1 = arith.constant 1 : index
    %c0_6 = arith.constant 0 : index
    %12 = vector.load %arg7[%c1, %c0_6] : memref<32x512xf32, #tpu.memory_space<vmem>>, vector<15x64xf32>
    tpu.vector_store %arg7[%c1, %c0_6], %11 {strides = array<i32>} : memref<32x512xf32, #tpu.memory_space<vmem>>, vector<15x64xf32>,
    %13 = vector.extract_strided_slice %8 {offsets = [0, 0], sizes = [16, 64], strides = [1, 1]} : vector<32x64xf32> to vector<16x64xf32>
    %c0_7 = arith.constant 0 : index
    %c128 = arith.constant 128 : index
    %14 = vector.load %arg7[%c0_7, %c128] : memref<32x512xf32, #tpu.memory_space<vmem>>, vector<16x64xf32>
    tpu.vector_store %arg7[%c0_7, %c128], %13 {strides = array<i32>} : memref<32x512xf32, #tpu.memory_space<vmem>>, vector<16x64xf32>,
    %15 = vector.extract_strided_slice %8 {offsets = [1, 0], sizes = [15, 64], strides = [1, 1]} : vector<32x64xf32> to vector<15x64xf32>
    %c0_8 = arith.constant 0 : index
    %c256 = arith.constant 256 : index
    %16 = vector.load %arg7[%c0_8, %c256] : memref<32x512xf32, #tpu.memory_space<vmem>>, vector<15x64xf32>
    tpu.vector_store %arg7[%c0_8, %c256], %15 {strides = array<i32>} : memref<32x512xf32, #tpu.memory_space<vmem>>, vector<15x64xf32>,
    %17 = vector.extract_strided_slice %8 {offsets = [16, 0], sizes = [15, 64], strides = [1, 1]} : vector<32x64xf32> to vector<15x64xf32>
    %c17 = arith.constant 17 : index
    %c0_9 = arith.constant 0 : index
    %18 = vector.load %arg7[%c17, %c0_9] : memref<32x512xf32, #tpu.memory_space<vmem>>, vector<15x64xf32>
    tpu.vector_store %arg7[%c17, %c0_9], %17 {strides = array<i32>} : memref<32x512xf32, #tpu.memory_space<vmem>>, vector<15x64xf32>,
    %19 = vector.extract_strided_slice %8 {offsets = [16, 0], sizes = [16, 64], strides = [1, 1]} : vector<32x64xf32> to vector<16x64xf32>
    %c16 = arith.constant 16 : index
    %c128_10 = arith.constant 128 : index
    %20 = vector.load %arg7[%c16, %c128_10] : memref<32x512xf32, #tpu.memory_space<vmem>>, vector<16x64xf32>
    tpu.vector_store %arg7[%c16, %c128_10], %19 {strides = array<i32>} : memref<32x512xf32, #tpu.memory_space<vmem>>, vector<16x64xf32>,
    %21 = vector.extract_strided_slice %8 {offsets = [17, 0], sizes = [15, 64], strides = [1, 1]} : vector<32x64xf32> to vector<15x64xf32>
    %c16_11 = arith.constant 16 : index
    %c256_12 = arith.constant 256 : index
    %22 = vector.load %arg7[%c16_11, %c256_12] : memref<32x512xf32, #tpu.memory_space<vmem>>, vector<15x64xf32>
    tpu.vector_store %arg7[%c16_11, %c256_12], %21 {strides = array<i32>} : memref<32x512xf32, #tpu.memory_space<vmem>>, vector<15x64xf32>,
    %c0_13 = arith.constant 0 : index
    %c0_14 = arith.constant 0 : index
    %23 = vector.load %arg7[%c0_13, %c0_14] : memref<32x512xf32, #tpu.memory_space<vmem>>, vector<32x512xf32>
    %24 = arith.truncf %23 : vector<32x512xf32> to vector<32x512xbf16>
    %c0_15 = arith.constant 0 : index
    %c0_16 = arith.constant 0 : index
    %25 = vector.load %arg2[%c0_15, %c0_16] : memref<512x384xbf16, #tpu.memory_space<vmem>>, vector<512x384xbf16>
    %cst_17 = arith.constant dense<0.000000e+00> : vector<32x384xf32>
    %26 = tpu.matmul %24, %25, %cst_17 {dimension_numbers = #tpu.dot_dimension_numbers<[1], [0], [0], [1], [0, 0, 1, 1], [], []>} : vector<32x512xbf16>, vector<512x384xbf16>, vector<32x384xf32> -> vector<32x384xf32>
    %27 = vector.extract_strided_slice %9 {offsets = [0, 0], sizes = [15, 128], strides = [1, 1]} : vector<32x128xf32> to vector<15x128xf32>
    %c1_18 = arith.constant 1 : index
    %c0_19 = arith.constant 0 : index
    %28 = vector.load %arg7[%c1_18, %c0_19] : memref<32x512xf32, #tpu.memory_space<vmem>>, vector<15x128xf32>
    tpu.vector_store %arg7[%c1_18, %c0_19], %27 {strides = array<i32>} : memref<32x512xf32, #tpu.memory_space<vmem>>, vector<15x128xf32>,
    %29 = vector.extract_strided_slice %9 {offsets = [0, 0], sizes = [16, 128], strides = [1, 1]} : vector<32x128xf32> to vector<16x128xf32>
    %c0_20 = arith.constant 0 : index
    %c128_21 = arith.constant 128 : index
    %30 = vector.load %arg7[%c0_20, %c128_21] : memref<32x512xf32, #tpu.memory_space<vmem>>, vector<16x128xf32>
    tpu.vector_store %arg7[%c0_20, %c128_21], %29 {strides = array<i32>} : memref<32x512xf32, #tpu.memory_space<vmem>>, vector<16x128xf32>,
    %31 = vector.extract_strided_slice %9 {offsets = [1, 0], sizes = [15, 128], strides = [1, 1]} : vector<32x128xf32> to vector<15x128xf32>
    %c0_22 = arith.constant 0 : index
    %c256_23 = arith.constant 256 : index
    %32 = vector.load %arg7[%c0_22, %c256_23] : memref<32x512xf32, #tpu.memory_space<vmem>>, vector<15x128xf32>
    tpu.vector_store %arg7[%c0_22, %c256_23], %31 {strides = array<i32>} : memref<32x512xf32, #tpu.memory_space<vmem>>, vector<15x128xf32>,
    %33 = vector.extract_strided_slice %9 {offsets = [16, 0], sizes = [15, 128], strides = [1, 1]} : vector<32x128xf32> to vector<15x128xf32>
    %c17_24 = arith.constant 17 : index
    %c0_25 = arith.constant 0 : index
    %34 = vector.load %arg7[%c17_24, %c0_25] : memref<32x512xf32, #tpu.memory_space<vmem>>, vector<15x128xf32>
    tpu.vector_store %arg7[%c17_24, %c0_25], %33 {strides = array<i32>} : memref<32x512xf32, #tpu.memory_space<vmem>>, vector<15x128xf32>,
    %35 = vector.extract_strided_slice %9 {offsets = [16, 0], sizes = [16, 128], strides = [1, 1]} : vector<32x128xf32> to vector<16x128xf32>
    %c16_26 = arith.constant 16 : index
    %c128_27 = arith.constant 128 : index
    %36 = vector.load %arg7[%c16_26, %c128_27] : memref<32x512xf32, #tpu.memory_space<vmem>>, vector<16x128xf32>
    tpu.vector_store %arg7[%c16_26, %c128_27], %35 {strides = array<i32>} : memref<32x512xf32, #tpu.memory_space<vmem>>, vector<16x128xf32>,
    %37 = vector.extract_strided_slice %9 {offsets = [17, 0], sizes = [15, 128], strides = [1, 1]} : vector<32x128xf32> to vector<15x128xf32>
    %c16_28 = arith.constant 16 : index
    %c256_29 = arith.constant 256 : index
    %38 = vector.load %arg7[%c16_28, %c256_29] : memref<32x512xf32, #tpu.memory_space<vmem>>, vector<15x128xf32>
    tpu.vector_store %arg7[%c16_28, %c256_29], %37 {strides = array<i32>} : memref<32x512xf32, #tpu.memory_space<vmem>>, vector<15x128xf32>,
    %c0_30 = arith.constant 0 : index
    %c0_31 = arith.constant 0 : index
    %39 = vector.load %arg7[%c0_30, %c0_31] : memref<32x512xf32, #tpu.memory_space<vmem>>, vector<32x512xf32>
    %40 = arith.truncf %39 : vector<32x512xf32> to vector<32x512xbf16>
    %c0_32 = arith.constant 0 : index
    %c0_33 = arith.constant 0 : index
    %41 = vector.load %arg3[%c0_32, %c0_33] : memref<512x384xbf16, #tpu.memory_space<vmem>>, vector<512x384xbf16>
    %cst_34 = arith.constant dense<0.000000e+00> : vector<32x384xf32>
    %42 = tpu.matmul %40, %41, %cst_34 {dimension_numbers = #tpu.dot_dimension_numbers<[1], [0], [0], [1], [0, 0, 1, 1], [], []>} : vector<32x512xbf16>, vector<512x384xbf16>, vector<32x384xf32> -> vector<32x384xf32>
    %43 = vector.extract_strided_slice %26 {offsets = [0, 0], sizes = [32, 256], strides = [1, 1]} : vector<32x384xf32> to vector<32x256xf32>
    %44 = vector.extract_strided_slice %42 {offsets = [0, 0], sizes = [32, 256], strides = [1, 1]} : vector<32x384xf32> to vector<32x256xf32>
    %45 = arith.addf %43, %44 : vector<32x256xf32>
    %46 = arith.negf %45 : vector<32x256xf32>
    %47 = math.exp %46 : vector<32x256xf32>
    %cst_35 = arith.constant 1.000000e+00 : f32
    %48 = vector.broadcast %cst_35 : f32 to vector<32x256xf32>
    %49 = arith.addf %48, %47 : vector<32x256xf32>
    %50 = arith.divf %48, %49 : vector<32x256xf32>
    %51 = vector.extract_strided_slice %50 {offsets = [0, 0], sizes = [32, 128], strides = [1, 1]} : vector<32x256xf32> to vector<32x128xf32>
    %52 = vector.extract_strided_slice %50 {offsets = [0, 128], sizes = [32, 128], strides = [1, 1]} : vector<32x256xf32> to vector<32x128xf32>
    %53 = vector.extract_strided_slice %26 {offsets = [0, 256], sizes = [32, 128], strides = [1, 1]} : vector<32x384xf32> to vector<32x128xf32>
    %54 = vector.extract_strided_slice %42 {offsets = [0, 256], sizes = [32, 128], strides = [1, 1]} : vector<32x384xf32> to vector<32x128xf32>
    %55 = arith.mulf %51, %54 : vector<32x128xf32>
    %56 = arith.addf %53, %55 : vector<32x128xf32>
    %57 = math.tanh %56 : vector<32x128xf32>
    %cst_36 = arith.constant 1.000000e+00 : f32
    %58 = vector.broadcast %cst_36 : f32 to vector<32x128xf32>
    %59 = arith.subf %58, %52 : vector<32x128xf32>
    %60 = arith.mulf %59, %57 : vector<32x128xf32>
    %61 = arith.mulf %52, %9 : vector<32x128xf32>
    %62 = arith.addf %60, %61 : vector<32x128xf32>
    %63 = vector.extract_strided_slice %62 {offsets = [0, 0], sizes = [15, 128], strides = [1, 1]} : vector<32x128xf32> to vector<15x128xf32>
    %c1_37 = arith.constant 1 : index
    %c0_38 = arith.constant 0 : index
    %64 = vector.load %arg7[%c1_37, %c0_38] : memref<32x512xf32, #tpu.memory_space<vmem>>, vector<15x128xf32>
    tpu.vector_store %arg7[%c1_37, %c0_38], %63 {strides = array<i32>} : memref<32x512xf32, #tpu.memory_space<vmem>>, vector<15x128xf32>,
    %65 = vector.extract_strided_slice %62 {offsets = [0, 0], sizes = [16, 128], strides = [1, 1]} : vector<32x128xf32> to vector<16x128xf32>
    %c0_39 = arith.constant 0 : index
    %c128_40 = arith.constant 128 : index
    %66 = vector.load %arg7[%c0_39, %c128_40] : memref<32x512xf32, #tpu.memory_space<vmem>>, vector<16x128xf32>
    tpu.vector_store %arg7[%c0_39, %c128_40], %65 {strides = array<i32>} : memref<32x512xf32, #tpu.memory_space<vmem>>, vector<16x128xf32>,
    %67 = vector.extract_strided_slice %62 {offsets = [1, 0], sizes = [15, 128], strides = [1, 1]} : vector<32x128xf32> to vector<15x128xf32>
    %c0_41 = arith.constant 0 : index
    %c256_42 = arith.constant 256 : index
    %68 = vector.load %arg7[%c0_41, %c256_42] : memref<32x512xf32, #tpu.memory_space<vmem>>, vector<15x128xf32>
    tpu.vector_store %arg7[%c0_41, %c256_42], %67 {strides = array<i32>} : memref<32x512xf32, #tpu.memory_space<vmem>>, vector<15x128xf32>,
    %69 = vector.extract_strided_slice %62 {offsets = [16, 0], sizes = [15, 128], strides = [1, 1]} : vector<32x128xf32> to vector<15x128xf32>
    %c17_43 = arith.constant 17 : index
    %c0_44 = arith.constant 0 : index
    %70 = vector.load %arg7[%c17_43, %c0_44] : memref<32x512xf32, #tpu.memory_space<vmem>>, vector<15x128xf32>
    tpu.vector_store %arg7[%c17_43, %c0_44], %69 {strides = array<i32>} : memref<32x512xf32, #tpu.memory_space<vmem>>, vector<15x128xf32>,
    %71 = vector.extract_strided_slice %62 {offsets = [16, 0], sizes = [16, 128], strides = [1, 1]} : vector<32x128xf32> to vector<16x128xf32>
    %c16_45 = arith.constant 16 : index
    %c128_46 = arith.constant 128 : index
    %72 = vector.load %arg7[%c16_45, %c128_46] : memref<32x512xf32, #tpu.memory_space<vmem>>, vector<16x128xf32>
    tpu.vector_store %arg7[%c16_45, %c128_46], %71 {strides = array<i32>} : memref<32x512xf32, #tpu.memory_space<vmem>>, vector<16x128xf32>,
    %73 = vector.extract_strided_slice %62 {offsets = [17, 0], sizes = [15, 128], strides = [1, 1]} : vector<32x128xf32> to vector<15x128xf32>
    %c16_47 = arith.constant 16 : index
    %c256_48 = arith.constant 256 : index
    %74 = vector.load %arg7[%c16_47, %c256_48] : memref<32x512xf32, #tpu.memory_space<vmem>>, vector<15x128xf32>
    tpu.vector_store %arg7[%c16_47, %c256_48], %73 {strides = array<i32>} : memref<32x512xf32, #tpu.memory_space<vmem>>, vector<15x128xf32>,
    %c0_49 = arith.constant 0 : index
    %c0_50 = arith.constant 0 : index
    %75 = vector.load %arg7[%c0_49, %c0_50] : memref<32x512xf32, #tpu.memory_space<vmem>>, vector<32x512xf32>
    %76 = arith.truncf %75 : vector<32x512xf32> to vector<32x512xbf16>
    %c0_51 = arith.constant 0 : index
    %c0_52 = arith.constant 0 : index
    %77 = vector.load %arg4[%c0_51, %c0_52] : memref<512x384xbf16, #tpu.memory_space<vmem>>, vector<512x384xbf16>
    %cst_53 = arith.constant dense<0.000000e+00> : vector<32x384xf32>
    %78 = tpu.matmul %76, %77, %cst_53 {dimension_numbers = #tpu.dot_dimension_numbers<[1], [0], [0], [1], [0, 0, 1, 1], [], []>} : vector<32x512xbf16>, vector<512x384xbf16>, vector<32x384xf32> -> vector<32x384xf32>
    %79 = vector.extract_strided_slice %10 {offsets = [0, 0], sizes = [15, 128], strides = [1, 1]} : vector<32x128xf32> to vector<15x128xf32>
    %c1_54 = arith.constant 1 : index
    %c0_55 = arith.constant 0 : index
    %80 = vector.load %arg7[%c1_54, %c0_55] : memref<32x512xf32, #tpu.memory_space<vmem>>, vector<15x128xf32>
    tpu.vector_store %arg7[%c1_54, %c0_55], %79 {strides = array<i32>} : memref<32x512xf32, #tpu.memory_space<vmem>>, vector<15x128xf32>,
    %81 = vector.extract_strided_slice %10 {offsets = [0, 0], sizes = [16, 128], strides = [1, 1]} : vector<32x128xf32> to vector<16x128xf32>
    %c0_56 = arith.constant 0 : index
    %c128_57 = arith.constant 128 : index
    %82 = vector.load %arg7[%c0_56, %c128_57] : memref<32x512xf32, #tpu.memory_space<vmem>>, vector<16x128xf32>
    tpu.vector_store %arg7[%c0_56, %c128_57], %81 {strides = array<i32>} : memref<32x512xf32, #tpu.memory_space<vmem>>, vector<16x128xf32>,
    %83 = vector.extract_strided_slice %10 {offsets = [1, 0], sizes = [15, 128], strides = [1, 1]} : vector<32x128xf32> to vector<15x128xf32>
    %c0_58 = arith.constant 0 : index
    %c256_59 = arith.constant 256 : index
    %84 = vector.load %arg7[%c0_58, %c256_59] : memref<32x512xf32, #tpu.memory_space<vmem>>, vector<15x128xf32>
    tpu.vector_store %arg7[%c0_58, %c256_59], %83 {strides = array<i32>} : memref<32x512xf32, #tpu.memory_space<vmem>>, vector<15x128xf32>,
    %85 = vector.extract_strided_slice %10 {offsets = [16, 0], sizes = [15, 128], strides = [1, 1]} : vector<32x128xf32> to vector<15x128xf32>
    %c17_60 = arith.constant 17 : index
    %c0_61 = arith.constant 0 : index
    %86 = vector.load %arg7[%c17_60, %c0_61] : memref<32x512xf32, #tpu.memory_space<vmem>>, vector<15x128xf32>
    tpu.vector_store %arg7[%c17_60, %c0_61], %85 {strides = array<i32>} : memref<32x512xf32, #tpu.memory_space<vmem>>, vector<15x128xf32>,
    %87 = vector.extract_strided_slice %10 {offsets = [16, 0], sizes = [16, 128], strides = [1, 1]} : vector<32x128xf32> to vector<16x128xf32>
    %c16_62 = arith.constant 16 : index
    %c128_63 = arith.constant 128 : index
    %88 = vector.load %arg7[%c16_62, %c128_63] : memref<32x512xf32, #tpu.memory_space<vmem>>, vector<16x128xf32>
    tpu.vector_store %arg7[%c16_62, %c128_63], %87 {strides = array<i32>} : memref<32x512xf32, #tpu.memory_space<vmem>>, vector<16x128xf32>,
    %89 = vector.extract_strided_slice %10 {offsets = [17, 0], sizes = [15, 128], strides = [1, 1]} : vector<32x128xf32> to vector<15x128xf32>
    %c16_64 = arith.constant 16 : index
    %c256_65 = arith.constant 256 : index
    %90 = vector.load %arg7[%c16_64, %c256_65] : memref<32x512xf32, #tpu.memory_space<vmem>>, vector<15x128xf32>
    tpu.vector_store %arg7[%c16_64, %c256_65], %89 {strides = array<i32>} : memref<32x512xf32, #tpu.memory_space<vmem>>, vector<15x128xf32>,
    %c0_66 = arith.constant 0 : index
    %c0_67 = arith.constant 0 : index
    %91 = vector.load %arg7[%c0_66, %c0_67] : memref<32x512xf32, #tpu.memory_space<vmem>>, vector<32x512xf32>
    %92 = arith.truncf %91 : vector<32x512xf32> to vector<32x512xbf16>
    %c0_68 = arith.constant 0 : index
    %c0_69 = arith.constant 0 : index
    %93 = vector.load %arg5[%c0_68, %c0_69] : memref<512x384xbf16, #tpu.memory_space<vmem>>, vector<512x384xbf16>
    %cst_70 = arith.constant dense<0.000000e+00> : vector<32x384xf32>
    %94 = tpu.matmul %92, %93, %cst_70 {dimension_numbers = #tpu.dot_dimension_numbers<[1], [0], [0], [1], [0, 0, 1, 1], [], []>} : vector<32x512xbf16>, vector<512x384xbf16>, vector<32x384xf32> -> vector<32x384xf32>
    %95 = vector.extract_strided_slice %78 {offsets = [0, 0], sizes = [32, 256], strides = [1, 1]} : vector<32x384xf32> to vector<32x256xf32>
    %96 = vector.extract_strided_slice %94 {offsets = [0, 0], sizes = [32, 256], strides = [1, 1]} : vector<32x384xf32> to vector<32x256xf32>
    %97 = arith.addf %95, %96 : vector<32x256xf32>
    %98 = arith.negf %97 : vector<32x256xf32>
    %99 = math.exp %98 : vector<32x256xf32>
    %cst_71 = arith.constant 1.000000e+00 : f32
    %100 = vector.broadcast %cst_71 : f32 to vector<32x256xf32>
    %101 = arith.addf %100, %99 : vector<32x256xf32>
    %102 = arith.divf %100, %101 : vector<32x256xf32>
    %103 = vector.extract_strided_slice %102 {offsets = [0, 0], sizes = [32, 128], strides = [1, 1]} : vector<32x256xf32> to vector<32x128xf32>
    %104 = vector.extract_strided_slice %102 {offsets = [0, 128], sizes = [32, 128], strides = [1, 1]} : vector<32x256xf32> to vector<32x128xf32>
    %105 = vector.extract_strided_slice %78 {offsets = [0, 256], sizes = [32, 128], strides = [1, 1]} : vector<32x384xf32> to vector<32x128xf32>
    %106 = vector.extract_strided_slice %94 {offsets = [0, 256], sizes = [32, 128], strides = [1, 1]} : vector<32x384xf32> to vector<32x128xf32>
    %107 = arith.mulf %103, %106 : vector<32x128xf32>
    %108 = arith.addf %105, %107 : vector<32x128xf32>
    %109 = math.tanh %108 : vector<32x128xf32>
    %cst_72 = arith.constant 1.000000e+00 : f32
    %110 = vector.broadcast %cst_72 : f32 to vector<32x128xf32>
    %111 = arith.subf %110, %104 : vector<32x128xf32>
    %112 = arith.mulf %111, %109 : vector<32x128xf32>
    %113 = arith.mulf %104, %10 : vector<32x128xf32>
    %114 = arith.addf %112, %113 : vector<32x128xf32>
    %115 = vector.extract_strided_slice %62 {offsets = [0, 0], sizes = [15, 128], strides = [1, 1]} : vector<32x128xf32> to vector<15x128xf32>
    %c1_73 = arith.constant 1 : index
    %c0_74 = arith.constant 0 : index
    %116 = vector.load %arg7[%c1_73, %c0_74] : memref<32x512xf32, #tpu.memory_space<vmem>>, vector<15x128xf32>
    tpu.vector_store %arg7[%c1_73, %c0_74], %115 {strides = array<i32>} : memref<32x512xf32, #tpu.memory_space<vmem>>, vector<15x128xf32>,
    %117 = vector.extract_strided_slice %62 {offsets = [0, 0], sizes = [16, 128], strides = [1, 1]} : vector<32x128xf32> to vector<16x128xf32>
    %c0_75 = arith.constant 0 : index
    %c128_76 = arith.constant 128 : index
    %118 = vector.load %arg7[%c0_75, %c128_76] : memref<32x512xf32, #tpu.memory_space<vmem>>, vector<16x128xf32>
    tpu.vector_store %arg7[%c0_75, %c128_76], %117 {strides = array<i32>} : memref<32x512xf32, #tpu.memory_space<vmem>>, vector<16x128xf32>,
    %119 = vector.extract_strided_slice %62 {offsets = [1, 0], sizes = [15, 128], strides = [1, 1]} : vector<32x128xf32> to vector<15x128xf32>
    %c0_77 = arith.constant 0 : index
    %c256_78 = arith.constant 256 : index
    %120 = vector.load %arg7[%c0_77, %c256_78] : memref<32x512xf32, #tpu.memory_space<vmem>>, vector<15x128xf32>
    tpu.vector_store %arg7[%c0_77, %c256_78], %119 {strides = array<i32>} : memref<32x512xf32, #tpu.memory_space<vmem>>, vector<15x128xf32>,
    %121 = vector.extract_strided_slice %62 {offsets = [16, 0], sizes = [15, 128], strides = [1, 1]} : vector<32x128xf32> to vector<15x128xf32>
    %c17_79 = arith.constant 17 : index
    %c0_80 = arith.constant 0 : index
    %122 = vector.load %arg7[%c17_79, %c0_80] : memref<32x512xf32, #tpu.memory_space<vmem>>, vector<15x128xf32>
    tpu.vector_store %arg7[%c17_79, %c0_80], %121 {strides = array<i32>} : memref<32x512xf32, #tpu.memory_space<vmem>>, vector<15x128xf32>,
    %123 = vector.extract_strided_slice %62 {offsets = [16, 0], sizes = [16, 128], strides = [1, 1]} : vector<32x128xf32> to vector<16x128xf32>
    %c16_81 = arith.constant 16 : index
    %c128_82 = arith.constant 128 : index
    %124 = vector.load %arg7[%c16_81, %c128_82] : memref<32x512xf32, #tpu.memory_space<vmem>>, vector<16x128xf32>
    tpu.vector_store %arg7[%c16_81, %c128_82], %123 {strides = array<i32>} : memref<32x512xf32, #tpu.memory_space<vmem>>, vector<16x128xf32>,
    %125 = vector.extract_strided_slice %62 {offsets = [17, 0], sizes = [15, 128], strides = [1, 1]} : vector<32x128xf32> to vector<15x128xf32>
    %c16_83 = arith.constant 16 : index
    %c256_84 = arith.constant 256 : index
    %126 = vector.load %arg7[%c16_83, %c256_84] : memref<32x512xf32, #tpu.memory_space<vmem>>, vector<15x128xf32>
    tpu.vector_store %arg7[%c16_83, %c256_84], %125 {strides = array<i32>} : memref<32x512xf32, #tpu.memory_space<vmem>>, vector<15x128xf32>,
    %c0_85 = arith.constant 0 : index
    %c0_86 = arith.constant 0 : index
    %127 = vector.load %arg7[%c0_85, %c0_86] : memref<32x512xf32, #tpu.memory_space<vmem>>, vector<32x512xf32>
    %128 = arith.truncf %127 : vector<32x512xf32> to vector<32x512xbf16>
    %c0_87 = arith.constant 0 : index
    %c0_88 = arith.constant 0 : index
    %129 = vector.load %arg3[%c0_87, %c0_88] : memref<512x384xbf16, #tpu.memory_space<vmem>>, vector<512x384xbf16>
    %cst_89 = arith.constant dense<0.000000e+00> : vector<32x384xf32>
    %130 = tpu.matmul %128, %129, %cst_89 {dimension_numbers = #tpu.dot_dimension_numbers<[1], [0], [0], [1], [0, 0, 1, 1], [], []>} : vector<32x512xbf16>, vector<512x384xbf16>, vector<32x384xf32> -> vector<32x384xf32>
    %131 = vector.extract_strided_slice %26 {offsets = [0, 0], sizes = [32, 256], strides = [1, 1]} : vector<32x384xf32> to vector<32x256xf32>
    %132 = vector.extract_strided_slice %130 {offsets = [0, 0], sizes = [32, 256], strides = [1, 1]} : vector<32x384xf32> to vector<32x256xf32>
    %133 = arith.addf %131, %132 : vector<32x256xf32>
    %134 = arith.negf %133 : vector<32x256xf32>
    %135 = math.exp %134 : vector<32x256xf32>
    %cst_90 = arith.constant 1.000000e+00 : f32
    %136 = vector.broadcast %cst_90 : f32 to vector<32x256xf32>
    %137 = arith.addf %136, %135 : vector<32x256xf32>
    %138 = arith.divf %136, %137 : vector<32x256xf32>
    %139 = vector.extract_strided_slice %138 {offsets = [0, 0], sizes = [32, 128], strides = [1, 1]} : vector<32x256xf32> to vector<32x128xf32>
    %140 = vector.extract_strided_slice %138 {offsets = [0, 128], sizes = [32, 128], strides = [1, 1]} : vector<32x256xf32> to vector<32x128xf32>
    %141 = vector.extract_strided_slice %26 {offsets = [0, 256], sizes = [32, 128], strides = [1, 1]} : vector<32x384xf32> to vector<32x128xf32>
    %142 = vector.extract_strided_slice %130 {offsets = [0, 256], sizes = [32, 128], strides = [1, 1]} : vector<32x384xf32> to vector<32x128xf32>
    %143 = arith.mulf %139, %142 : vector<32x128xf32>
    %144 = arith.addf %141, %143 : vector<32x128xf32>
    %145 = math.tanh %144 : vector<32x128xf32>
    %cst_91 = arith.constant 1.000000e+00 : f32
    %146 = vector.broadcast %cst_91 : f32 to vector<32x128xf32>
    %147 = arith.subf %146, %140 : vector<32x128xf32>
    %148 = arith.mulf %147, %145 : vector<32x128xf32>
    %149 = arith.mulf %140, %62 : vector<32x128xf32>
    %150 = arith.addf %148, %149 : vector<32x128xf32>
    %151 = vector.extract_strided_slice %150 {offsets = [0, 0], sizes = [15, 128], strides = [1, 1]} : vector<32x128xf32> to vector<15x128xf32>
    %c1_92 = arith.constant 1 : index
    %c0_93 = arith.constant 0 : index
    %152 = vector.load %arg7[%c1_92, %c0_93] : memref<32x512xf32, #tpu.memory_space<vmem>>, vector<15x128xf32>
    tpu.vector_store %arg7[%c1_92, %c0_93], %151 {strides = array<i32>} : memref<32x512xf32, #tpu.memory_space<vmem>>, vector<15x128xf32>,
    %153 = vector.extract_strided_slice %150 {offsets = [0, 0], sizes = [16, 128], strides = [1, 1]} : vector<32x128xf32> to vector<16x128xf32>
    %c0_94 = arith.constant 0 : index
    %c128_95 = arith.constant 128 : index
    %154 = vector.load %arg7[%c0_94, %c128_95] : memref<32x512xf32, #tpu.memory_space<vmem>>, vector<16x128xf32>
    tpu.vector_store %arg7[%c0_94, %c128_95], %153 {strides = array<i32>} : memref<32x512xf32, #tpu.memory_space<vmem>>, vector<16x128xf32>,
    %155 = vector.extract_strided_slice %150 {offsets = [1, 0], sizes = [15, 128], strides = [1, 1]} : vector<32x128xf32> to vector<15x128xf32>
    %c0_96 = arith.constant 0 : index
    %c256_97 = arith.constant 256 : index
    %156 = vector.load %arg7[%c0_96, %c256_97] : memref<32x512xf32, #tpu.memory_space<vmem>>, vector<15x128xf32>
    tpu.vector_store %arg7[%c0_96, %c256_97], %155 {strides = array<i32>} : memref<32x512xf32, #tpu.memory_space<vmem>>, vector<15x128xf32>,
    %157 = vector.extract_strided_slice %150 {offsets = [16, 0], sizes = [15, 128], strides = [1, 1]} : vector<32x128xf32> to vector<15x128xf32>
    %c17_98 = arith.constant 17 : index
    %c0_99 = arith.constant 0 : index
    %158 = vector.load %arg7[%c17_98, %c0_99] : memref<32x512xf32, #tpu.memory_space<vmem>>, vector<15x128xf32>
    tpu.vector_store %arg7[%c17_98, %c0_99], %157 {strides = array<i32>} : memref<32x512xf32, #tpu.memory_space<vmem>>, vector<15x128xf32>,
    %159 = vector.extract_strided_slice %150 {offsets = [16, 0], sizes = [16, 128], strides = [1, 1]} : vector<32x128xf32> to vector<16x128xf32>
    %c16_100 = arith.constant 16 : index
    %c128_101 = arith.constant 128 : index
    %160 = vector.load %arg7[%c16_100, %c128_101] : memref<32x512xf32, #tpu.memory_space<vmem>>, vector<16x128xf32>
    tpu.vector_store %arg7[%c16_100, %c128_101], %159 {strides = array<i32>} : memref<32x512xf32, #tpu.memory_space<vmem>>, vector<16x128xf32>,
    %161 = vector.extract_strided_slice %150 {offsets = [17, 0], sizes = [15, 128], strides = [1, 1]} : vector<32x128xf32> to vector<15x128xf32>
    %c16_102 = arith.constant 16 : index
    %c256_103 = arith.constant 256 : index
    %162 = vector.load %arg7[%c16_102, %c256_103] : memref<32x512xf32, #tpu.memory_space<vmem>>, vector<15x128xf32>
    tpu.vector_store %arg7[%c16_102, %c256_103], %161 {strides = array<i32>} : memref<32x512xf32, #tpu.memory_space<vmem>>, vector<15x128xf32>,
    %c0_104 = arith.constant 0 : index
    %c0_105 = arith.constant 0 : index
    %163 = vector.load %arg7[%c0_104, %c0_105] : memref<32x512xf32, #tpu.memory_space<vmem>>, vector<32x512xf32>
    %164 = arith.truncf %163 : vector<32x512xf32> to vector<32x512xbf16>
    %c0_106 = arith.constant 0 : index
    %c0_107 = arith.constant 0 : index
    %165 = vector.load %arg4[%c0_106, %c0_107] : memref<512x384xbf16, #tpu.memory_space<vmem>>, vector<512x384xbf16>
    %cst_108 = arith.constant dense<0.000000e+00> : vector<32x384xf32>
    %166 = tpu.matmul %164, %165, %cst_108 {dimension_numbers = #tpu.dot_dimension_numbers<[1], [0], [0], [1], [0, 0, 1, 1], [], []>} : vector<32x512xbf16>, vector<512x384xbf16>, vector<32x384xf32> -> vector<32x384xf32>
    %167 = vector.extract_strided_slice %114 {offsets = [0, 0], sizes = [15, 128], strides = [1, 1]} : vector<32x128xf32> to vector<15x128xf32>
    %c1_109 = arith.constant 1 : index
    %c0_110 = arith.constant 0 : index
    %168 = vector.load %arg7[%c1_109, %c0_110] : memref<32x512xf32, #tpu.memory_space<vmem>>, vector<15x128xf32>
    tpu.vector_store %arg7[%c1_109, %c0_110], %167 {strides = array<i32>} : memref<32x512xf32, #tpu.memory_space<vmem>>, vector<15x128xf32>,
    %169 = vector.extract_strided_slice %114 {offsets = [0, 0], sizes = [16, 128], strides = [1, 1]} : vector<32x128xf32> to vector<16x128xf32>
    %c0_111 = arith.constant 0 : index
    %c128_112 = arith.constant 128 : index
    %170 = vector.load %arg7[%c0_111, %c128_112] : memref<32x512xf32, #tpu.memory_space<vmem>>, vector<16x128xf32>
    tpu.vector_store %arg7[%c0_111, %c128_112], %169 {strides = array<i32>} : memref<32x512xf32, #tpu.memory_space<vmem>>, vector<16x128xf32>,
    %171 = vector.extract_strided_slice %114 {offsets = [1, 0], sizes = [15, 128], strides = [1, 1]} : vector<32x128xf32> to vector<15x128xf32>
    %c0_113 = arith.constant 0 : index
    %c256_114 = arith.constant 256 : index
    %172 = vector.load %arg7[%c0_113, %c256_114] : memref<32x512xf32, #tpu.memory_space<vmem>>, vector<15x128xf32>
    tpu.vector_store %arg7[%c0_113, %c256_114], %171 {strides = array<i32>} : memref<32x512xf32, #tpu.memory_space<vmem>>, vector<15x128xf32>,
    %173 = vector.extract_strided_slice %114 {offsets = [16, 0], sizes = [15, 128], strides = [1, 1]} : vector<32x128xf32> to vector<15x128xf32>
    %c17_115 = arith.constant 17 : index
    %c0_116 = arith.constant 0 : index
    %174 = vector.load %arg7[%c17_115, %c0_116] : memref<32x512xf32, #tpu.memory_space<vmem>>, vector<15x128xf32>
    tpu.vector_store %arg7[%c17_115, %c0_116], %173 {strides = array<i32>} : memref<32x512xf32, #tpu.memory_space<vmem>>, vector<15x128xf32>,
    %175 = vector.extract_strided_slice %114 {offsets = [16, 0], sizes = [16, 128], strides = [1, 1]} : vector<32x128xf32> to vector<16x128xf32>
    %c16_117 = arith.constant 16 : index
    %c128_118 = arith.constant 128 : index
    %176 = vector.load %arg7[%c16_117, %c128_118] : memref<32x512xf32, #tpu.memory_space<vmem>>, vector<16x128xf32>
    tpu.vector_store %arg7[%c16_117, %c128_118], %175 {strides = array<i32>} : memref<32x512xf32, #tpu.memory_space<vmem>>, vector<16x128xf32>,
    %177 = vector.extract_strided_slice %114 {offsets = [17, 0], sizes = [15, 128], strides = [1, 1]} : vector<32x128xf32> to vector<15x128xf32>
    %c16_119 = arith.constant 16 : index
    %c256_120 = arith.constant 256 : index
    %178 = vector.load %arg7[%c16_119, %c256_120] : memref<32x512xf32, #tpu.memory_space<vmem>>, vector<15x128xf32>
    tpu.vector_store %arg7[%c16_119, %c256_120], %177 {strides = array<i32>} : memref<32x512xf32, #tpu.memory_space<vmem>>, vector<15x128xf32>,
    %c0_121 = arith.constant 0 : index
    %c0_122 = arith.constant 0 : index
    %179 = vector.load %arg7[%c0_121, %c0_122] : memref<32x512xf32, #tpu.memory_space<vmem>>, vector<32x512xf32>
    %180 = arith.truncf %179 : vector<32x512xf32> to vector<32x512xbf16>
    %c0_123 = arith.constant 0 : index
    %c0_124 = arith.constant 0 : index
    %181 = vector.load %arg5[%c0_123, %c0_124] : memref<512x384xbf16, #tpu.memory_space<vmem>>, vector<512x384xbf16>
    %cst_125 = arith.constant dense<0.000000e+00> : vector<32x384xf32>
    %182 = tpu.matmul %180, %181, %cst_125 {dimension_numbers = #tpu.dot_dimension_numbers<[1], [0], [0], [1], [0, 0, 1, 1], [], []>} : vector<32x512xbf16>, vector<512x384xbf16>, vector<32x384xf32> -> vector<32x384xf32>
    %183 = vector.extract_strided_slice %166 {offsets = [0, 0], sizes = [32, 256], strides = [1, 1]} : vector<32x384xf32> to vector<32x256xf32>
    %184 = vector.extract_strided_slice %182 {offsets = [0, 0], sizes = [32, 256], strides = [1, 1]} : vector<32x384xf32> to vector<32x256xf32>
    %185 = arith.addf %183, %184 : vector<32x256xf32>
    %186 = arith.negf %185 : vector<32x256xf32>
    %187 = math.exp %186 : vector<32x256xf32>
    %cst_126 = arith.constant 1.000000e+00 : f32
    %188 = vector.broadcast %cst_126 : f32 to vector<32x256xf32>
    %189 = arith.addf %188, %187 : vector<32x256xf32>
    %190 = arith.divf %188, %189 : vector<32x256xf32>
    %191 = vector.extract_strided_slice %190 {offsets = [0, 0], sizes = [32, 128], strides = [1, 1]} : vector<32x256xf32> to vector<32x128xf32>
    %192 = vector.extract_strided_slice %190 {offsets = [0, 128], sizes = [32, 128], strides = [1, 1]} : vector<32x256xf32> to vector<32x128xf32>
    %193 = vector.extract_strided_slice %166 {offsets = [0, 256], sizes = [32, 128], strides = [1, 1]} : vector<32x384xf32> to vector<32x128xf32>
    %194 = vector.extract_strided_slice %182 {offsets = [0, 256], sizes = [32, 128], strides = [1, 1]} : vector<32x384xf32> to vector<32x128xf32>
    %195 = arith.mulf %191, %194 : vector<32x128xf32>
    %196 = arith.addf %193, %195 : vector<32x128xf32>
    %197 = math.tanh %196 : vector<32x128xf32>
    %cst_127 = arith.constant 1.000000e+00 : f32
    %198 = vector.broadcast %cst_127 : f32 to vector<32x128xf32>
    %199 = arith.subf %198, %192 : vector<32x128xf32>
    %200 = arith.mulf %199, %197 : vector<32x128xf32>
    %201 = arith.mulf %192, %114 : vector<32x128xf32>
    %202 = arith.addf %200, %201 : vector<32x128xf32>
    %c0_128 = arith.constant 0 : index
    %c0_129 = arith.constant 0 : index
    %c0_130 = arith.constant 0 : index
    %203 = vector.load %arg6[%c0_128, %c0_129, %c0_130] : memref<1x32x128xf32, #tpu.memory_space<vmem>>, vector<1x32x128xf32>
    %204 = vector.shape_cast %203 : vector<1x32x128xf32> to vector<32x128xf32>
    %205 = vector.shape_cast %202 : vector<32x128xf32> to vector<1x32x128xf32>
    tpu.vector_store %arg6[%c0_128, %c0_129, %c0_130], %205 {strides = array<i32>} : memref<1x32x128xf32, #tpu.memory_space<vmem>>, vector<1x32x128xf32>,
    return
  }
  func.func @transform_0(%arg0: i32) -> (i32, i32) {
    %c0_i32 = arith.constant 0 : i32
    %c0_i32_0 = arith.constant 0 : i32
    return %arg0, %c0_i32 : i32, i32
  }
  func.func @transform_1(%arg0: i32) -> (i32, i32) {
    %c0_i32 = arith.constant 0 : i32
    %c0_i32_0 = arith.constant 0 : i32
    %c0_i32_1 = arith.constant 0 : i32
    return %c0_i32, %c0_i32_0 : i32, i32
  }
  func.func @transform_2(%arg0: i32) -> (i32, i32) {
    %c0_i32 = arith.constant 0 : i32
    %c0_i32_0 = arith.constant 0 : i32
    %c0_i32_1 = arith.constant 0 : i32
    return %c0_i32, %c0_i32_0 : i32, i32
  }
  func.func @transform_3(%arg0: i32) -> (i32, i32) {
    %c0_i32 = arith.constant 0 : i32
    %c0_i32_0 = arith.constant 0 : i32
    %c0_i32_1 = arith.constant 0 : i32
    return %c0_i32, %c0_i32_0 : i32, i32
  }
  func.func @transform_4(%arg0: i32) -> (i32, i32) {
    %c0_i32 = arith.constant 0 : i32
    %c0_i32_0 = arith.constant 0 : i32
    %c0_i32_1 = arith.constant 0 : i32
    return %c0_i32, %c0_i32_0 : i32, i32
  }
  func.func @transform_5(%arg0: i32) -> (i32, i32, i32) {
    %c0_i32 = arith.constant 0 : i32
    %c0_i32_0 = arith.constant 0 : i32
    %c0_i32_1 = arith.constant 0 : i32
    return %c0_i32, %arg0, %c0_i32_0 : i32, i32, i32
  }
}

</mosaic_0001>

<bundles_post_ra>
// kernel: tpu_custom_call.1
= control target key start
LH: loop header
LB: loop body
LE: loop exit
PB: predicated region body
PF: predicated region fallthrough
CT: control target
= control target key end

     0   :  { %10 = vsyncpa [#allocation4], 0  ;;  %s9751_s0 = inlined_call_operand.hbm [shape: f32[32,64], index: 0, kind: input, shape index: {}]   ;;  %s9752_s1 = inlined_call_operand.hbm [shape: bf16[512,384], index: 1, kind: input, shape index: {}]   ;;  %s9753_s2 = inlined_call_operand.hbm [shape: bf16[512,384], index: 2, kind: input, shape index: {}]   ;;  %s9754_s3 = inlined_call_operand.hbm [shape: bf16[512,384], index: 3, kind: input, shape index: {}]   ;;  %s9755_s4 = inlined_call_operand.hbm [shape: bf16[512,384], index: 4, kind: input, shape index: {}]   ;;  %s9756_s5 = inlined_call_operand.hbm [shape: f32[1,32,128], index: 5, kind: output, shape index: {}]  }
   0x1   :  { %11 = vsyncpa [#allocation7], 0 }
   0x2   :  { %12 = vsyncpa [#allocation10], 0 }
   0x3   :  { %13 = vsyncpa [#allocation5], 0  ;;  %s9127_s18 = smov [#allocation6]   ;;  %s8987_s22 = scalar_lea.hbm %s9752_s1, 12288 }
   0x4   :  { %s31_s19 = sshll.u32 %s9127_s18, 4  ;;  %p8988_p0 = scmp.ne.s32.totalorder %s9752_s1, %s8987_s22  ;;  %s32_s19 = int_to_ptr.vmem [resolvable:$true] %s31_s19 }
   0x5   :  { %p8991_p1 = scmp.lt.u32.totalorder %s8987_s22, %s9752_s1 }
   0x7   :  { %p8993_p2 = pnand %p8991_p1, %p8988_p0 }
   0x9   :  { %8996 = shalt.err (!%p8993_p2)
}
   0xa   :  { %s8997_s27 = scalar_lea.vmem %s32_s19, 12288  ;;  %p9002_p4 = scmp.lt.s32.totalorder %s32_s19, %s32_s19 }
   0xb   :  { %p8998_p3 = scmp.ne.s32.totalorder %s32_s19, %s8997_s27  ;;  %p9003_p5 = scmp.lt.s32.totalorder %s8997_s27, %s8997_s27 }
   0xd   :  { %p9004_p6 = por %p9003_p5, %p9002_p4 }
   0xf   :  { %p9005_p7 = pnand %p9004_p6, %p8998_p3 }
  0x11   :  { %9008 = shalt.err (!%p9005_p7)
}
  0x12   :  { %s9128_s28 = smov 192   ;;  %s9129_s29 = smov 12  }
  0x13   :  { %37 = dma.hbm_to_vmem [thread:$0]  %s9752_s1, 12288, %s32_s19, [#allocation7], %s9128_s28, %s9128_s28, %s9129_s29  }
  0x14   :  { %s9130_s7 = smov [#allocation9]   ;;  %s9131_s9 = smov [#allocation3]  }
  0x15   :  { %s55_s8 = sshll.u32 %s9130_s7, 4  ;;  %s19_s10 = sshll.u32 %s9131_s9, 4  ;;  %s56_s8 = int_to_ptr.vmem [resolvable:$true] %s55_s8  ;;  %s20_s10 = int_to_ptr.vmem [resolvable:$true] %s19_s10 }
  0x16   :  { %s9009_s13 = scalar_lea.hbm %s9754_s3, 12288 }
  0x17   :  { %p9010_p8 = scmp.ne.s32.totalorder %s9754_s3, %s9009_s13  ;;  %p9013_p9 = scmp.lt.u32.totalorder %s9009_s13, %s9754_s3 }
  0x19   :  { %p9015_p10 = pnand %p9013_p9, %p9010_p8 }
  0x1b   :  { %9018 = shalt.err (!%p9015_p10)
}
  0x1c   :  { %s9019_s1 = scalar_lea.vmem %s56_s8, 12288  ;;  %p9024_p12 = scmp.lt.s32.totalorder %s56_s8, %s56_s8 }
  0x1d   :  { %p9020_p11 = scmp.ne.s32.totalorder %s56_s8, %s9019_s1  ;;  %p9025_p13 = scmp.lt.s32.totalorder %s9019_s1, %s9019_s1 }
  0x1f   :  { %p9026_p0 = por %p9025_p13, %p9024_p12 }
  0x21   :  { %p9027_p1 = pnand %p9026_p0, %p9020_p11 }
  0x23   :  { %9030 = shalt.err (!%p9027_p1)
}
  0x24   :  { %61 = dma.hbm_to_vmem [thread:$0]  %s9754_s3, 12288, %s56_s8, [#allocation10], %s9128_s28, %s9128_s28, %s9129_s29  }
  0x25   :  { %s9031_s22 = scalar_lea.hbm %s9751_s0, 512 }
  0x26   :  { %p9032_p2 = scmp.ne.s32.totalorder %s9751_s0, %s9031_s22  ;;  %p9035_p3 = scmp.lt.u32.totalorder %s9031_s22, %s9751_s0 }
  0x28   :  { %p9037_p4 = pnand %p9035_p3, %p9032_p2 }
  0x2a   :  { %9040 = shalt.err (!%p9037_p4)
}
  0x2b   :  { %s9041_s27 = scalar_lea.vmem %s20_s10, 512  ;;  %p9046_p6 = scmp.lt.s32.totalorder %s20_s10, %s20_s10 }
  0x2c   :  { %p9042_p5 = scmp.ne.s32.totalorder %s20_s10, %s9041_s27  ;;  %p9047_p7 = scmp.lt.s32.totalorder %s9041_s27, %s9041_s27 }
  0x2e   :  { %p9048_p8 = por %p9047_p7, %p9046_p6 }
  0x30   :  { %p9049_p9 = pnand %p9048_p8, %p9042_p5 }
  0x32   :  { %9052 = shalt.err (!%p9049_p9)
}
  0x33   :  { %s9132_s3 = smov 128   ;;  %s9133_s30 = smov 8  }
  0x34   :  { %25 = dma.hbm_to_vmem [thread:$0]  %s9751_s0, 512, %s20_s10, [#allocation4], %s9132_s3, %s9132_s3, %s9133_s30  }
  0x35   :  { %s9134_s8 = smov [#allocation8]   ;;  %s9135_s11 = smov [#allocation11]  }
  0x36   :  { %s43_s9 = sshll.u32 %s9134_s8, 4  ;;  %s67_s12 = sshll.u32 %s9135_s11, 4  ;;  %s44_s9 = int_to_ptr.vmem [resolvable:$true] %s43_s9  ;;  %s68_s12 = int_to_ptr.vmem [resolvable:$true] %s67_s12 }
  0x37   :  { %s9053_s15 = scalar_lea.hbm %s9753_s2, 12288 }
  0x38   :  { %p9054_p10 = scmp.ne.s32.totalorder %s9753_s2, %s9053_s15  ;;  %p9057_p11 = scmp.lt.u32.totalorder %s9053_s15, %s9753_s2 }
  0x3a   :  { %p9059_p12 = pnand %p9057_p11, %p9054_p10 }
  0x3c   :  { %9062 = shalt.err (!%p9059_p12)
}
  0x3d   :  { %s9063_s0 = scalar_lea.vmem %s44_s9, 12288  ;;  %p9068_p0 = scmp.lt.s32.totalorder %s44_s9, %s44_s9 }
  0x3e   :  { %p9064_p13 = scmp.ne.s32.totalorder %s44_s9, %s9063_s0  ;;  %p9069_p1 = scmp.lt.s32.totalorder %s9063_s0, %s9063_s0 }
  0x40   :  { %p9070_p2 = por %p9069_p1, %p9068_p0 }
  0x42   :  { %p9071_p3 = pnand %p9070_p2, %p9064_p13 }
  0x44   :  { %9074 = shalt.err (!%p9071_p3)
}
  0x45   :  { %49 = dma.hbm_to_vmem [thread:$0]  %s9753_s2, 12288, %s44_s9, [#allocation7], %s9128_s28, %s9128_s28, %s9129_s29  }
  0x46   :  { %s9075_s22 = scalar_lea.hbm %s9755_s4, 12288 }
  0x47   :  { %p9076_p4 = scmp.ne.s32.totalorder %s9755_s4, %s9075_s22  ;;  %p9079_p5 = scmp.lt.u32.totalorder %s9075_s22, %s9755_s4 }
  0x49   :  { %p9081_p6 = pnand %p9079_p5, %p9076_p4 }
  0x4b   :  { %9084 = shalt.err (!%p9081_p6)
}
  0x4c   :  { %s9085_s27 = scalar_lea.vmem %s68_s12, 12288  ;;  %p9090_p8 = scmp.lt.s32.totalorder %s68_s12, %s68_s12 }
  0x4d   :  { %p9086_p7 = scmp.ne.s32.totalorder %s68_s12, %s9085_s27  ;;  %p9091_p9 = scmp.lt.s32.totalorder %s9085_s27, %s9085_s27 }
  0x4f   :  { %p9092_p10 = por %p9091_p9, %p9090_p8 }
  0x51   :  { %p9093_p11 = pnand %p9092_p10, %p9086_p7 }
  0x53   :  { %9096 = shalt.err (!%p9093_p11)
}
  0x54   :  { %73 = dma.hbm_to_vmem [thread:$0]  %s9755_s4, 12288, %s68_s12, [#allocation10], %s9128_s28, %s9128_s28, %s9129_s29  }
  0x55   :  { %9119 = dma.done.wait [#allocation4], 512  }
  0x56   :  { %9120 = vsyncadd [#allocation4], 4294966784 }
  0x57   :  { %9121 = dma.done.wait [#allocation7], 24576  }
  0x58   :  { %9122 = vsyncadd [#allocation7], 4294942720 }
  0x59   :  { %9123 = dma.done.wait [#allocation10], 24576  }
  0x5a   :  { %9124 = vsyncadd [#allocation10], 4294942720  ;;  %v9136_v0 = vmov 0.0   ;;  %v106_v1 = vlaneseq  ;;  %v7919_v4 = vld [vmem:[#allocation6 + $0x4] ss:$12 sps:$4 sm:$0xff]   ;;  %vm127_vm2 = vcmask 523265  }
  0x5b   :  { %90 = vst [vmem:[#allocation2] sm:$0xff] %v9136_v0  ;;  %91 = vst [vmem:[#allocation2 + $0x8] sm:$0xff] %v9136_v0  ;;  %v7921_v5 = vld [vmem:[#allocation6 + $0x184] ss:$12 sps:$4 sm:$0xff]   ;;  %824 = vmatprep.subr.bf16.mxu1 %v7919_v4  ;;  %v7923_v6 = vld [vmem:[#allocation6] ss:$12 sps:$4 sm:$0xff]  }
  0x5c   :  { %95 = vst [vmem:[#allocation2 + $0x28] sm:$0xff] %v9136_v0  ;;  %96 = vst [vmem:[#allocation2 + $0x30] sm:$0xff] %v9136_v0  ;;  %v107_v2 = vand.u32 127, %v106_v1  ;;  %v7924_v7 = vld [vmem:[#allocation6 + $0x180] ss:$12 sps:$4 sm:$0xff]   ;;  %877 = vmatprep.subr.bf16.mxu0 %v7921_v5  ;;  %825 = vmatpush1.bf16.msra.mxu1 %v7923_v6  ;;  %vm129_vm3 = vcmask 523264  }
  0x5d   :  { %92 = vst [vmem:[#allocation2 + $0x10] sm:$0xff] %v9136_v0  ;;  %94 = vst [vmem:[#allocation2 + $0x20] sm:$0xff] %v9136_v0  ;;  %v9137_v9 = vmov 1.0|1.0   ;;  %v7925_v10 = vld [vmem:[#allocation6 + $0x1c] ss:$12 sps:$4 sm:$0xff]   ;;  %878 = vmatpush1.bf16.msra.mxu0 %v7924_v7 }
  0x5e   :  { %98 = vst [vmem:[#allocation2 + $0x40] sm:$0xff] %v9136_v0  ;;  %99 = vst [vmem:[#allocation2 + $0x48] sm:$0xff] %v9136_v0  ;;  %vm108_vm0 = vcmp.eq.s32.totalorder %v107_v2, 0  ;;  %v7927_v11 = vld [vmem:[#allocation6 + $0x19c] ss:$12 sps:$4 sm:$0xff]   ;;  %826 = vmatprep.subr.bf16.mxu1 %v7925_v10  ;;  %vm140_vm4 = vcmask 522240  }
  0x5f   :  { %100 = vst [vmem:[#allocation2 + $0x50] sm:$0xff] %v9136_v0  ;;  %102 = vst [vmem:[#allocation2 + $0x60] sm:$0xff] %v9136_v0  ;;  %v6739_v3 = vsel %vm108_vm0, 1.0, %v9136_v0  ;;  %v7929_v12 = vld [vmem:[#allocation6 + $0x18] ss:$12 sps:$4 sm:$0xff]   ;;  %879 = vmatprep.subr.bf16.mxu0 %v7927_v11  ;;  %vm121_vm5 = vcmask 1040384  }
  0x60   :  { %103 = vst [vmem:[#allocation2 + $0x68] sm:$0xff] %v9136_v0  ;;  %104 = vst [vmem:[#allocation2 + $0x70] sm:$0xff] %v9136_v0  ;;  %v7930_v13 = vld [vmem:[#allocation6 + $0x198] ss:$12 sps:$4 sm:$0xff]   ;;  %v7931_v14 = vld [vmem:[#allocation6 + $0x34] ss:$12 sps:$4 sm:$0xff]   ;;  %827 = vmatpush1.bf16.msra.mxu1 %v7929_v12 }
  0x61   :  { %111 = vst [vmem:[#allocation2 + $0x18] sm:$0xff] %v6739_v3  ;;  %112 = vst [vmem:[#allocation2 + $0x38] sm:$0xff] %v6739_v3  ;;  %v7933_v15 = vld [vmem:[#allocation6 + $0x1b4] ss:$12 sps:$4 sm:$0xff]   ;;  %v7935_v16 = vld [vmem:[#allocation6 + $0x30] ss:$12 sps:$4 sm:$0xff]   ;;  %880 = vmatpush1.bf16.msra.mxu0 %v7930_v13  ;;  %828 = vmatprep.subr.bf16.mxu1 %v7931_v14 }
  0x62   :  { %113 = vst [vmem:[#allocation2 + $0x58] sm:$0xff] %v6739_v3  ;;  %114 = vst [vmem:[#allocation2 + $0x78] sm:$0xff] %v6739_v3  ;;  %v7936_v17 = vld [vmem:[#allocation6 + $0x1b0] ss:$12 sps:$4 sm:$0xff]   ;;  %v7937_v18 = vld [vmem:[#allocation6 + $0x4c] ss:$12 sps:$4 sm:$0xff]   ;;  %881 = vmatprep.subr.bf16.mxu0 %v7933_v15 }
  0x63   :  { %vm9258_vm1 = vmpackc.low %vm108_vm0, %vm108_vm0  ;;  %v7939_v19 = vld [vmem:[#allocation6 + $0x1cc] ss:$12 sps:$4 sm:$0xff]   ;;  %v7941_v20 = vld [vmem:[#allocation6 + $0x48] ss:$12 sps:$4 sm:$0xff]   ;;  %vm133_vm6 = vcmask 1046528   ;;  %s9139_s4 = smov [#allocation12]  }
  0x64   :  { %8980 = vmatprep.mubr.msk.bf16.mxu0 %vm9258_vm1, %v9137_v9  ;;  %829 = vmatpush1.bf16.msra.mxu1 %v7935_v16  ;;  %v7942_v21 = vld [vmem:[#allocation6 + $0x1c8] ss:$12 sps:$4 sm:$0xff]   ;;  %v7943_v22 = vld [vmem:[#allocation6 + $0x64] ss:$12 sps:$4 sm:$0xff]   ;;  %v7947_v24 = vld [vmem:[#allocation6 + $0x60] ss:$12 sps:$4 sm:$0xff]  }
  0x65   :  { %882 = vmatpush1.bf16.msra.mxu0 %v7936_v17  ;;  %830 = vmatprep.subr.bf16.mxu1 %v7937_v18  ;;  %v7945_v23 = vld [vmem:[#allocation6 + $0x1e4] ss:$12 sps:$4 sm:$0xff]   ;;  %v7948_v25 = vld [vmem:[#allocation6 + $0x1e0] ss:$12 sps:$4 sm:$0xff]   ;;  %v7949_v26 = vld [vmem:[#allocation6 + $0x7c] ss:$12 sps:$4 sm:$0xff]  }
  0x66   :  { %883 = vmatprep.subr.bf16.mxu0 %v7939_v19  ;;  %v7951_v27 = vld [vmem:[#allocation6 + $0x1fc] ss:$12 sps:$4 sm:$0xff]   ;;  %v7953_v28 = vld [vmem:[#allocation6 + $0x78] ss:$12 sps:$4 sm:$0xff]   ;;  %v7955_v30 = vld [vmem:[#allocation6 + $0x94] ss:$12 sps:$4 sm:$0xff]  }
  0x67   :  { %v7954_v29 = vld [vmem:[#allocation6 + $0x1f8] ss:$12 sps:$4 sm:$0xff]   ;;  %v7957_v31 = vld [vmem:[#allocation6 + $0x214] ss:$12 sps:$4 sm:$0xff]   ;;  %v7959_v32 = vld [vmem:[#allocation6 + $0x90] ss:$12 sps:$4 sm:$0xff]  }
  0x68   :  { %831 = vmatpush1.bf16.msra.mxu1 %v7941_v20  ;;  %v7960_v33 = vld [vmem:[#allocation6 + $0x210] ss:$12 sps:$4 sm:$0xff]   ;;  %v7961_v34 = vld [vmem:[#allocation6 + $0xac] ss:$12 sps:$4 sm:$0xff]   ;;  %v7965_v36 = vld [vmem:[#allocation6 + $0xa8] ss:$12 sps:$4 sm:$0xff]  }
  0x69   :  { %884 = vmatpush1.bf16.msra.mxu0 %v7942_v21  ;;  %832 = vmatprep.subr.bf16.mxu1 %v7943_v22  ;;  %v7963_v35 = vld [vmem:[#allocation6 + $0x22c] ss:$12 sps:$4 sm:$0xff]   ;;  %v7966_v37 = vld [vmem:[#allocation6 + $0x228] ss:$12 sps:$4 sm:$0xff]   ;;  %v7967_v38 = vld [vmem:[#allocation6 + $0xc4] ss:$12 sps:$4 sm:$0xff]  }
  0x6a   :  { %885 = vmatprep.subr.bf16.mxu0 %v7945_v23  ;;  %v7969_v39 = vld [vmem:[#allocation6 + $0x244] ss:$12 sps:$4 sm:$0xff]   ;;  %v7971_v40 = vld [vmem:[#allocation6 + $0xc0] ss:$12 sps:$4 sm:$0xff]   ;;  %v7973_v42 = vld [vmem:[#allocation6 + $0xdc] ss:$12 sps:$4 sm:$0xff]  }
  0x6b   :  { %v7972_v41 = vld [vmem:[#allocation6 + $0x240] ss:$12 sps:$4 sm:$0xff]   ;;  %v7975_v43 = vld [vmem:[#allocation6 + $0x25c] ss:$12 sps:$4 sm:$0xff]   ;;  %v7977_v44 = vld [vmem:[#allocation6 + $0xd8] ss:$12 sps:$4 sm:$0xff]  }
  0x6c   :  { %833 = vmatpush1.bf16.msra.mxu1 %v7947_v24  ;;  %v7978_v45 = vld [vmem:[#allocation6 + $0x258] ss:$12 sps:$4 sm:$0xff]   ;;  %v7979_v46 = vld [vmem:[#allocation6 + $0xf4] ss:$12 sps:$4 sm:$0xff]   ;;  %v7983_v48 = vld [vmem:[#allocation6 + $0xf0] ss:$12 sps:$4 sm:$0xff]  }
  0x6d   :  { %886 = vmatpush1.bf16.msra.mxu0 %v7948_v25  ;;  %834 = vmatprep.subr.bf16.mxu1 %v7949_v26  ;;  %v7981_v47 = vld [vmem:[#allocation6 + $0x274] ss:$12 sps:$4 sm:$0xff]   ;;  %v7984_v49 = vld [vmem:[#allocation6 + $0x270] ss:$12 sps:$4 sm:$0xff]   ;;  %v7985_v50 = vld [vmem:[#allocation6 + $0x10c] ss:$12 sps:$4 sm:$0xff]  }
  0x6e   :  { %887 = vmatprep.subr.bf16.mxu0 %v7951_v27  ;;  %v7987_v51 = vld [vmem:[#allocation6 + $0x28c] ss:$12 sps:$4 sm:$0xff]   ;;  %v7989_v52 = vld [vmem:[#allocation6 + $0x108] ss:$12 sps:$4 sm:$0xff]   ;;  %v115_v54 = vld [vmem:[#allocation3] sm:$0xff]  ;;  %s6725_s28 = sshll.u32 %s9139_s4, 4  ;;  %s6726_s28 = int_to_ptr.vmem [resolvable:$true] %s6725_s28 }
  0x6f   :  { %v7990_v53 = vld [vmem:[#allocation6 + $0x288] ss:$12 sps:$4 sm:$0xff]   ;;  %v122_v56 = vrot.slane %v115_v54, 7  ;;  %131 = vst.msk [vmem:[#allocation2 + $0x8] sm:$0xff] %vm129_vm3, %v115_v54  ;;  %v134_v57 = vrot.slane %v115_v54, 1  ;;  %v118_v23 = vld [vmem:[#allocation3 + $0x18] sm:$0xff]  ;;  %p9102_p13 = scmp.lt.s32.totalorder %s6726_s28, %s6726_s28 }
  0x70   :  { %835 = vmatpush1.bf16.msra.mxu1 %v7953_v28  ;;  %v116_v55 = vld [vmem:[#allocation3 + $0x8] sm:$0xff]  ;;  %v9266_v58 = vld [vmem:[#allocation3 + $0x10] sm:$0xff]  ;;  %v8001_v6 = vld [vmem:[#allocation6 + $0x138] ss:$12 sps:$4 sm:$0xff]   ;;  %v145_v27 = vrot.slane %v118_v23, 7  ;;  %152 = vst.msk [vmem:[#allocation2 + $0x68] sm:$0xff] %vm129_vm3, %v118_v23 }
  0x71   :  { %888 = vmatpush1.bf16.msra.mxu0 %v7954_v29  ;;  %836 = vmatprep.subr.bf16.mxu1 %v7955_v30  ;;  %v7991_v59 = vld [vmem:[#allocation6 + $0x124] ss:$12 sps:$4 sm:$0xff]   ;;  %v123_v60 = vrot.slane %v116_v55, 7  ;;  %132 = vst.msk [vmem:[#allocation2 + $0x28] sm:$0xff] %vm129_vm3, %v116_v55  ;;  %v135_v61 = vrot.slane %v116_v55, 1  ;;  %151 = vst.msk [vmem:[#allocation2 + $0x48] sm:$0xff] %vm129_vm3, %v9266_v58 }
  0x72   :  { %889 = vmatprep.subr.bf16.mxu0 %v7957_v31  ;;  %v7993_v62 = vld [vmem:[#allocation6 + $0x2a4] ss:$12 sps:$4 sm:$0xff]   ;;  %128 = vst.msk [vmem:[#allocation2] sm:$0xfe] %vm127_vm2, %v122_v56  ;;  %v7995_v63 = vld [vmem:[#allocation6 + $0x120] ss:$12 sps:$4 sm:$0xff]  }
  0x73   :  { %141 = vst.msk [vmem:[#allocation2 + $0x30] sm:$0x7f] %vm140_vm4, %v135_v61  ;;  %v124_v1 = vsel %vm121_vm5, %v122_v56, %v123_v60  ;;  %v136_v2 = vsel %vm133_vm6, %v134_v57, %v135_v61  ;;  %v7996_v3 = vld [vmem:[#allocation6 + $0x2a0] ss:$12 sps:$4 sm:$0xff]   ;;  %v7997_v4 = vld [vmem:[#allocation6 + $0x13c] ss:$12 sps:$4 sm:$0xff]  }
  0x74   :  { %837 = vmatpush1.bf16.msra.mxu1 %v7959_v32  ;;  %130 = vst.msk [vmem:[#allocation2 + $0x20] sm:$0xff] %vm129_vm3, %v124_v1  ;;  %139 = vst.msk [vmem:[#allocation2 + $0x10] sm:$0xff] %vm129_vm3, %v136_v2  ;;  %v7999_v5 = vld [vmem:[#allocation6 + $0x2bc] ss:$12 sps:$4 sm:$0xff]   ;;  %v8002_v7 = vld [vmem:[#allocation6 + $0x2b8] ss:$12 sps:$4 sm:$0xff]  }
  0x75   :  { %890 = vmatpush1.bf16.msra.mxu0 %v7960_v33  ;;  %838 = vmatprep.subr.bf16.mxu1 %v7961_v34  ;;  %v144_v11 = vrot.slane %v9266_v58, 7  ;;  %v8003_v12 = vld [vmem:[#allocation6 + $0x154] ss:$12 sps:$4 sm:$0xff]   ;;  %v8007_v18 = vld [vmem:[#allocation6 + $0x150] ss:$12 sps:$4 sm:$0xff]   ;;  %v153_v21 = vrot.slane %v9266_v58, 1 }
  0x76   :  { %891 = vmatprep.subr.bf16.mxu0 %v7963_v35  ;;  %v161_v10 = vld [vmem:[#allocation2 + $0x8] sm:$0xff]  ;;  %v8005_v14 = vld [vmem:[#allocation6 + $0x2d4] ss:$12 sps:$4 sm:$0xff]   ;;  %v8008_v19 = vld [vmem:[#allocation6 + $0x2d0] ss:$12 sps:$4 sm:$0xff]   ;;  %v154_v28 = vrot.slane %v118_v23, 1 }
  0x77   :  { %149 = vst.msk [vmem:[#allocation2 + $0x40] sm:$0xfe] %vm127_vm2, %v144_v11  ;;  %v8009_v20 = vld [vmem:[#allocation6 + $0x16c] ss:$12 sps:$4 sm:$0xff]   ;;  %v8013_v24 = vld [vmem:[#allocation6 + $0x168] ss:$12 sps:$4 sm:$0xff]   ;;  %v146_v31 = vsel %vm121_vm5, %v144_v11, %v145_v27 }
  0x78   :  { %839 = vmatpush1.bf16.msra.mxu1 %v7965_v36  ;;  %v165_v13 = vld [vmem:[#allocation2 + $0x28] sm:$0xff]  ;;  %159 = vst.msk [vmem:[#allocation2 + $0x70] sm:$0x7f] %vm140_vm4, %v154_v28  ;;  %v155_v32 = vsel %vm133_vm6, %v153_v21, %v154_v28  ;;  %v8027_v56 = vld [vmem:[#allocation6 + $0x158] ss:$12 sps:$4 sm:$0xff]   ;;  %s9097_s29 = scalar_lea.vmem %s6726_s28, 512 }
  0x79   :  { %892 = vmatpush1.bf16.msra.mxu0 %v7966_v37  ;;  %840 = vmatprep.subr.bf16.mxu1 %v7967_v38  ;;  %v9278_v15 = vpack.c.bf16 %v165_v13, %v161_v10  ;;  %v160_v16 = vld [vmem:[#allocation2] sm:$0xff]  ;;  %v8011_v22 = vld [vmem:[#allocation6 + $0x2ec] ss:$12 sps:$4 sm:$0xff]   ;;  %v8014_v25 = vld [vmem:[#allocation6 + $0x2e8] ss:$12 sps:$4 sm:$0xff]   ;;  %150 = vst.msk [vmem:[#allocation2 + $0x60] sm:$0xff] %vm129_vm3, %v146_v31  ;;  %p9098_p12 = scmp.ne.s32.totalorder %s6726_s28, %s9097_s29  ;;  %p9103_p0 = scmp.lt.s32.totalorder %s9097_s29, %s9097_s29 }
  0x7a   :  { %893 = vmatprep.subr.bf16.mxu0 %v7969_v39  ;;  %1028 = vst [vmem:[#allocation2] sm:$0xfe] %v9136_v0  ;;  %v166_v17 = vld [vmem:[#allocation2 + $0x30] sm:$0xff]  ;;  %158 = vst.msk [vmem:[#allocation2 + $0x50] sm:$0xff] %vm129_vm3, %v155_v32  ;;  %v169_v36 = vld [vmem:[#allocation2 + $0x48] sm:$0xff] }
  0x7b   :  { %856 = vmatprep.mubr.bf16.mxu1 %v9278_v15  ;;  %1033 = vst [vmem:[#allocation2 + $0x30] sm:$0x7f] %v9136_v0  ;;  %v164_v26 = vld [vmem:[#allocation2 + $0x20] sm:$0xff]  ;;  %v162_v30 = vld [vmem:[#allocation2 + $0x10] sm:$0xff]  ;;  %v173_v39 = vld [vmem:[#allocation2 + $0x68] sm:$0xff]  ;;  %p9104_p1 = por %p9103_p0, %p9102_p13 }
  0x7c   :  { %841 = vmatpush1.bf16.msra.mxu1 %v7971_v40  ;;  %v8015_v33 = vld [vmem:[#allocation6 + $0xc8] ss:$12 sps:$4 sm:$0xff]   ;;  %v176_v34 = vpack.c.bf16 %v164_v26, %v160_v16  ;;  %v9292_v35 = vpack.c.bf16 %v166_v17, %v162_v30  ;;  %v8017_v38 = vld [vmem:[#allocation6 + $0xe0] ss:$12 sps:$4 sm:$0xff]   ;;  %v181_v40 = vpack.c.bf16 %v173_v39, %v169_v36  ;;  %v8028_v57 = vld [vmem:[#allocation6 + $0x98] ss:$12 sps:$4 sm:$0xff]  }
  0x7d   :  { %894 = vmatpush1.bf16.msra.mxu0 %v7972_v41  ;;  %842 = vmatprep.subr.bf16.mxu1 %v7973_v42  ;;  %v8016_v37 = vld [vmem:[#allocation6 + $0x8] ss:$12 sps:$4 sm:$0xff]   ;;  %v8018_v41 = vld [vmem:[#allocation6 + $0x20] ss:$12 sps:$4 sm:$0xff]   ;;  %v8029_v58 = vld [vmem:[#allocation6 + $0x170] ss:$12 sps:$4 sm:$0xff]   ;;  %p9105_p2 = pnand %p9104_p1, %p9098_p12 }
  0x7e   :  { %895 = vmatprep.subr.bf16.mxu0 %v7975_v43  ;;  %v168_v29 = vld [vmem:[#allocation2 + $0x40] sm:$0xff]  ;;  %v8031_v60 = vld [vmem:[#allocation6 + $0x248] ss:$12 sps:$4 sm:$0xff]   ;;  %v8045_v26 = vld [vmem:[#allocation6 + $0x2f0] ss:$12 sps:$4 sm:$0xff]  }
  0x7f   :  { %1034 = vst [vmem:[#allocation2 + $0x40] sm:$0xfe] %v9136_v0  ;;  %v174_v42 = vld [vmem:[#allocation2 + $0x70] sm:$0xff]  ;;  %v8025_v54 = vld [vmem:[#allocation6 + $0x140] ss:$12 sps:$4 sm:$0xff]  }
  0x80   :  { %843 = vmatpush1.bf16.msra.mxu1 %v7977_v44  ;;  %v172_v43 = vld [vmem:[#allocation2 + $0x60] sm:$0xff]  ;;  %1039 = vst [vmem:[#allocation2 + $0x70] sm:$0x7f] %v9136_v0  ;;  %v8032_v61 = vld [vmem:[#allocation6 + $0x188] ss:$12 sps:$4 sm:$0xff]  }
  0x81   :  { %896 = vmatpush1.bf16.msra.mxu0 %v7978_v45  ;;  %844 = vmatprep.subr.bf16.mxu1 %v7979_v46  ;;  %v170_v44 = vld [vmem:[#allocation2 + $0x50] sm:$0xff]  ;;  %v8019_v45 = vld [vmem:[#allocation6 + $0xf8] ss:$12 sps:$4 sm:$0xff]   ;;  %v180_v46 = vpack.c.bf16 %v172_v43, %v168_v29  ;;  %v8026_v55 = vld [vmem:[#allocation6 + $0x80] ss:$12 sps:$4 sm:$0xff]  }
  0x82   :  { %897 = vmatprep.subr.bf16.mxu0 %v7981_v47  ;;  %v9299_v47 = vpack.c.bf16 %v174_v42, %v170_v44  ;;  %v8035_v1 = vld [vmem:[#allocation6 + $0x278] ss:$12 sps:$4 sm:$0xff]   ;;  %v8089_v2 = vld [vmem:[#allocation8 + $0xc8] ss:$12 sps:$4 sm:$0xff]   ;;  %v8041_v17 = vld [vmem:[#allocation6 + $0x2c0] ss:$12 sps:$4 sm:$0xff]  }
  0x83   :  { %v8099_v10 = vld [vmem:[#allocation8 + $0xf8] ss:$12 sps:$4 sm:$0xff]   ;;  %v8039_v13 = vld [vmem:[#allocation6 + $0x2a8] ss:$12 sps:$4 sm:$0xff]   ;;  %v8046_v27 = vld [vmem:[#allocation6 + $0x230] ss:$12 sps:$4 sm:$0xff]  }
  0x84   :  { %845 = vmatpush1.bf16.msra.mxu1 %v7983_v48  ;;  %v8020_v48 = vld [vmem:[#allocation6 + $0x38] ss:$12 sps:$4 sm:$0xff]   ;;  %v8040_v16 = vld [vmem:[#allocation6 + $0x1e8] ss:$12 sps:$4 sm:$0xff]   ;;  %v8124_v29 = vld [vmem:[#allocation8 + $0x170] ss:$12 sps:$4 sm:$0xff]  }
  0x85   :  { %898 = vmatpush1.bf16.msra.mxu0 %v7984_v49  ;;  %846 = vmatprep.subr.bf16.mxu1 %v7985_v50  ;;  %v8021_v49 = vld [vmem:[#allocation6 + $0x110] ss:$12 sps:$4 sm:$0xff]   ;;  %v8100_v11 = vld [vmem:[#allocation8 + $0x38] ss:$12 sps:$4 sm:$0xff]   ;;  %v8047_v31 = vld [vmem:[#allocation8] ss:$12 sps:$4 sm:$0xff]  }
  0x86   :  { %899 = vmatprep.subr.bf16.mxu0 %v7987_v51  ;;  %v8022_v50 = vld [vmem:[#allocation6 + $0x50] ss:$12 sps:$4 sm:$0xff]   ;;  %v8023_v51 = vld [vmem:[#allocation6 + $0x128] ss:$12 sps:$4 sm:$0xff]   ;;  %v8043_v21 = vld [vmem:[#allocation6 + $0x2d8] ss:$12 sps:$4 sm:$0xff]  }
  0x87   :  { %v8044_v23 = vld [vmem:[#allocation6 + $0x218] ss:$12 sps:$4 sm:$0xff]   ;;  %v8125_v32 = vld [vmem:[#allocation8 + $0xb0] ss:$12 sps:$4 sm:$0xff]   ;;  %v8129_v36 = vld [vmem:[#allocation8 + $0x248] ss:$12 sps:$4 sm:$0xff]  }
  0x88   :  { %847 = vmatpush1.bf16.msra.mxu1 %v7989_v52  ;;  %v9138_v52 = vmov 0.0|0.0   ;;  %v8120_v28 = vld [vmem:[#allocation8 + $0x98] ss:$12 sps:$4 sm:$0xff]   ;;  %v8053_v42 = vld [vmem:[#allocation8 + $0x30] ss:$12 sps:$4 sm:$0xff]  }
  0x89   :  { %900 = vmatpush1.bf16.msra.mxu0 %v7990_v53  ;;  %848 = vmatprep.subr.bf16.mxu1 %v7991_v59  ;;  %v8024_v53 = vld [vmem:[#allocation6 + $0x68] ss:$12 sps:$4 sm:$0xff]   ;;  %v8030_v59 = vld [vmem:[#allocation6 + $0xb0] ss:$12 sps:$4 sm:$0xff]   ;;  %v8058_v43 = vld [vmem:[#allocation8 + $0x4c] ss:$12 sps:$4 sm:$0xff]  }
  0x8a   :  { %901 = vmatprep.subr.bf16.mxu0 %v7993_v62  ;;  %v8033_v62 = vld [vmem:[#allocation6 + $0x260] ss:$12 sps:$4 sm:$0xff]   ;;  %v8049_v30 = vld [vmem:[#allocation8 + $0x4] ss:$12 sps:$4 sm:$0xff]  }
  0x8b   :  { %v8139_v8 = vld [vmem:[#allocation8 + $0x278] ss:$12 sps:$4 sm:$0xff]  }
  0x8c   :  { %849 = vmatpush1.bf16.msra.mxu1 %v7995_v63  ;;  %v8034_v63 = vld [vmem:[#allocation6 + $0x1a0] ss:$12 sps:$4 sm:$0xff]   ;;  %v8140_v44 = vld [vmem:[#allocation8 + $0x1b8] ss:$12 sps:$4 sm:$0xff]  }
  0x8d   :  { %902 = vmatpush1.bf16.msra.mxu0 %v7996_v3  ;;  %850 = vmatprep.subr.bf16.mxu1 %v7997_v4  ;;  %v8090_v3 = vld [vmem:[#allocation8 + $0x8] ss:$12 sps:$4 sm:$0xff]   ;;  %v8036_v4 = vld [vmem:[#allocation6 + $0x1b8] ss:$12 sps:$4 sm:$0xff]  }
  0x8e   :  { %903 = vmatprep.subr.bf16.mxu0 %v7999_v5  ;;  %v8094_v5 = vld [vmem:[#allocation8 + $0xe0] ss:$12 sps:$4 sm:$0xff]  }
  0x90   :  { %851 = vmatpush1.bf16.msra.mxu1 %v8001_v6  ;;  %v8095_v6 = vld [vmem:[#allocation8 + $0x20] ss:$12 sps:$4 sm:$0xff]  }
  0x91   :  { %904 = vmatpush1.bf16.msra.mxu0 %v8002_v7  ;;  %852 = vmatprep.subr.bf16.mxu1 %v8003_v12  ;;  %v8037_v7 = vld [vmem:[#allocation6 + $0x290] ss:$12 sps:$4 sm:$0xff]  }
  0x92   :  { %905 = vmatprep.subr.bf16.mxu0 %v8005_v14  ;;  %v8038_v12 = vld [vmem:[#allocation6 + $0x1d0] ss:$12 sps:$4 sm:$0xff]  }
  0x93   :  { %v8104_v14 = vld [vmem:[#allocation8 + $0x110] ss:$12 sps:$4 sm:$0xff]  }
  0x94   :  { %853 = vmatpush1.bf16.msra.mxu1 %v8007_v18  ;;  %v8109_v18 = vld [vmem:[#allocation8 + $0x128] ss:$12 sps:$4 sm:$0xff]  }
  0x95   :  { %906 = vmatpush1.bf16.msra.mxu0 %v8008_v19  ;;  %854 = vmatprep.subr.bf16.mxu1 %v8009_v20  ;;  %v8042_v19 = vld [vmem:[#allocation6 + $0x200] ss:$12 sps:$4 sm:$0xff]   ;;  %v8110_v20 = vld [vmem:[#allocation8 + $0x68] ss:$12 sps:$4 sm:$0xff]  }
  0x96   :  { %907 = vmatprep.subr.bf16.mxu0 %v8011_v22  ;;  %v8114_v22 = vld [vmem:[#allocation8 + $0x140] ss:$12 sps:$4 sm:$0xff]  }
  0x98   :  { %855 = vmatpush1.bf16.msra.mxu1 %v8013_v24  ;;  %v8115_v24 = vld [vmem:[#allocation8 + $0x80] ss:$12 sps:$4 sm:$0xff]  }
  0x99   :  { %908 = vmatpush1.bf16.msra.mxu0 %v8014_v25  ;;  %7444 = vmatprep.subr.bf16.mxu1 %v8015_v33  ;;  %v8119_v25 = vld [vmem:[#allocation8 + $0x158] ss:$12 sps:$4 sm:$0xff]   ;;  %v8052_v33 = vld [vmem:[#allocation8 + $0x1c] ss:$12 sps:$4 sm:$0xff]  }
  0x9a   :  { %7500 = vmatprep.subr.bf16.mxu0 %v8089_v2  ;;  %v8160_v2 = vld [vmem:[#allocation8 + $0x218] ss:$12 sps:$4 sm:$0xff]  }
  0x9b   :  { %857 = vmatmul.mubr.bf16.vlgmr.msra.gmra.mrb[0].mxu1 %v176_v34 }
  0x9c   :  { %910 = vmatmul.mubr.bf16.vlgmr.msra.gmra.mrb[0].mxu0 %v9292_v35  ;;  %7445 = vmatpush3.bf16.msra.mxu1 %v8016_v37  ;;  %v8130_v37 = vld [vmem:[#allocation8 + $0x188] ss:$12 sps:$4 sm:$0xff]  }
  0x9d   :  { %866 = vmatprep.mubr.bf16.mxu1 %v181_v40  ;;  %7446 = vmatprep.subr.bf16.mxu1 %v8017_v38  ;;  %v8050_v38 = vld [vmem:[#allocation8 + $0x18] ss:$12 sps:$4 sm:$0xff]  }
  0x9e   :  { %8982 = vmatprep.mubr.msk.bf16.mxu0 %vm9258_vm1, %v9137_v9  ;;  %7501 = vmatpush3.bf16.msra.mxu0 %v8090_v3  ;;  %v8068_v3 = vld [vmem:[#allocation8 + $0xa8] ss:$12 sps:$4 sm:$0xff]  }
  0x9f   :  { %7502 = vmatprep.subr.bf16.mxu0 %v8094_v5  ;;  %v8073_v5 = vld [vmem:[#allocation8 + $0xc4] ss:$12 sps:$4 sm:$0xff]  }
  0xa0   :  { %7447 = vmatpush3.bf16.msra.mxu1 %v8018_v41  ;;  %v8055_v41 = vld [vmem:[#allocation8 + $0x34] ss:$12 sps:$4 sm:$0xff]  }
  0xa1   :  { %7448 = vmatprep.subr.bf16.mxu1 %v8019_v45  ;;  %v8144_v45 = vld [vmem:[#allocation8 + $0x290] ss:$12 sps:$4 sm:$0xff]  }
  0xa2   :  { %7503 = vmatpush3.bf16.msra.mxu0 %v8095_v6  ;;  %v8165_v6 = vld [vmem:[#allocation8 + $0x230] ss:$12 sps:$4 sm:$0xff]  }
  0xa3   :  { %867 = vmatmul.mubr.bf16.gmra.mrb[4].mxu1 %v180_v46  ;;  %7504 = vmatprep.subr.bf16.mxu0 %v8099_v10  ;;  %v8071_v10 = vld [vmem:[#allocation8 + $0xc0] ss:$12 sps:$4 sm:$0xff]  }
  0xa4   :  { %920 = vmatmul.mubr.bf16.gmra.mrb[4].mxu0 %v9299_v47  ;;  %7449 = vmatpush3.bf16.msra.mxu1 %v8020_v48  ;;  %v8059_v48 = vld [vmem:[#allocation8 + $0x60] ss:$12 sps:$4 sm:$0xff]  }
  0xa5   :  { %962 = vmatprep.mubr.bf16.mxu1 %v9278_v15  ;;  %7450 = vmatprep.subr.bf16.mxu1 %v8021_v49  ;;  %v8105_v15 = vld [vmem:[#allocation8 + $0x50] ss:$12 sps:$4 sm:$0xff]  }
  0xa6   :  { %1842 = vmatprep.mubr.bf16.mxu0 %v9138_v52  ;;  %7505 = vmatpush3.bf16.msra.mxu0 %v8100_v11  ;;  %v8145_v49 = vld [vmem:[#allocation8 + $0x1d0] ss:$12 sps:$4 sm:$0xff]  }
  0xa7   :  { %7506 = vmatprep.subr.bf16.mxu0 %v8104_v14  ;;  %v8076_v11 = vld [vmem:[#allocation8 + $0xdc] ss:$12 sps:$4 sm:$0xff]   ;;  %v8074_v14 = vld [vmem:[#allocation8 + $0xd8] ss:$12 sps:$4 sm:$0xff]  }
  0xa8   :  { %7451 = vmatpush3.bf16.msra.mxu1 %v8022_v50  ;;  %v8149_v50 = vld [vmem:[#allocation8 + $0x2a8] ss:$12 sps:$4 sm:$0xff]  }
  0xa9   :  { %7452 = vmatprep.subr.bf16.mxu1 %v8023_v51  ;;  %v8064_v51 = vld [vmem:[#allocation8 + $0x7c] ss:$12 sps:$4 sm:$0xff]  }
  0xaa   :  { %7507 = vmatpush3.bf16.msra.mxu0 %v8105_v15 }
  0xab   :  { %7508 = vmatprep.subr.bf16.mxu0 %v8109_v18  ;;  %v8077_v18 = vld [vmem:[#allocation8 + $0xf0] ss:$12 sps:$4 sm:$0xff]  }
  0xac   :  { %7453 = vmatpush3.bf16.msra.mxu1 %v8024_v53  ;;  %v8062_v53 = vld [vmem:[#allocation8 + $0x78] ss:$12 sps:$4 sm:$0xff]  }
  0xad   :  { %7454 = vmatprep.subr.bf16.mxu1 %v8025_v54  ;;  %v8150_v54 = vld [vmem:[#allocation8 + $0x1e8] ss:$12 sps:$4 sm:$0xff]  }
  0xae   :  { %7509 = vmatpush3.bf16.msra.mxu0 %v8110_v20  ;;  %v1054_v20 = vld [vmem:[#allocation2 + $0x70] sm:$0xff] }
  0xaf   :  { %7510 = vmatprep.subr.bf16.mxu0 %v8114_v22  ;;  %v8085_v22 = vld [vmem:[#allocation8 + $0x124] ss:$12 sps:$4 sm:$0xff]  }
  0xb0   :  { %7455 = vmatpush3.bf16.msra.mxu1 %v8026_v55 }
  0xb1   :  { %7456 = vmatprep.subr.bf16.mxu1 %v8027_v56  ;;  %v8154_v56 = vld [vmem:[#allocation8 + $0x2c0] ss:$12 sps:$4 sm:$0xff]  }
  0xb2   :  { %7511 = vmatpush3.bf16.msra.mxu0 %v8115_v24  ;;  %v8083_v24 = vld [vmem:[#allocation8 + $0x120] ss:$12 sps:$4 sm:$0xff]  }
  0xb3   :  { %7512 = vmatprep.subr.bf16.mxu0 %v8119_v25  ;;  %v8088_v25 = vld [vmem:[#allocation8 + $0x13c] ss:$12 sps:$4 sm:$0xff]  }
  0xb4   :  { %7457 = vmatpush3.bf16.msra.mxu1 %v8028_v57  ;;  %v8067_v57 = vld [vmem:[#allocation8 + $0x94] ss:$12 sps:$4 sm:$0xff]  }
  0xb5   :  { %7458 = vmatprep.subr.bf16.mxu1 %v8029_v58  ;;  %v8065_v58 = vld [vmem:[#allocation8 + $0x90] ss:$12 sps:$4 sm:$0xff]  }
  0xb6   :  { %7513 = vmatpush3.bf16.msra.mxu0 %v8120_v28  ;;  %v8091_v28 = vld [vmem:[#allocation8 + $0x150] ss:$12 sps:$4 sm:$0xff]  }
  0xb7   :  { %7514 = vmatprep.subr.bf16.mxu0 %v8124_v29  ;;  %v8098_v29 = vld [vmem:[#allocation8 + $0x16c] ss:$12 sps:$4 sm:$0xff]  }
  0xb8   :  { %7459 = vmatpush3.bf16.msra.mxu1 %v8030_v59  ;;  %v8155_v59 = vld [vmem:[#allocation8 + $0x200] ss:$12 sps:$4 sm:$0xff]  }
  0xb9   :  { %7472 = vmatprep.subr.bf16.mxu1 %v8031_v60  ;;  %v8159_v60 = vld [vmem:[#allocation8 + $0x2d8] ss:$12 sps:$4 sm:$0xff]  }
  0xba   :  { %7515 = vmatpush3.bf16.msra.mxu0 %v8125_v32  ;;  %v8101_v32 = vld [vmem:[#allocation8 + $0x180] ss:$12 sps:$4 sm:$0xff]  }
  0xbb   :  { %963 = vmatmul.mubr.bf16.vlgmr.msra.gmra.mrb[8].mxu1 %v176_v34  ;;  %v1040_v34 = vld [vmem:[#allocation2] sm:$0xff]  ;;  %7528 = vmatprep.subr.bf16.mxu0 %v8129_v36 }
  0xbc   :  { %7473 = vmatpush3.bf16.msra.mxu1 %v8032_v61  ;;  %970 = vmatprep.mubr.bf16.mxu1 %v181_v40  ;;  %v9312_v39 = vpack.c.bf16 %v9136_v0, %v1040_v34  ;;  %v8134_v40 = vld [vmem:[#allocation8 + $0x260] ss:$12 sps:$4 sm:$0xff]   ;;  %v8106_v34 = vld [vmem:[#allocation8 + $0x198] ss:$12 sps:$4 sm:$0xff]  }
  0xbd   :  { %7474 = vmatprep.subr.bf16.mxu1 %v8033_v62  ;;  %v8070_v61 = vld [vmem:[#allocation8 + $0xac] ss:$12 sps:$4 sm:$0xff]   ;;  %v8113_v36 = vld [vmem:[#allocation8 + $0x1b4] ss:$12 sps:$4 sm:$0xff]  }
  0xbe   :  { %1843 = vmatmul.mubr.bf16.vlgmr.msra.gmra.mrb[8].mxu0 %v9312_v39  ;;  %v1043_v62 = vld [vmem:[#allocation2 + $0x18] sm:$0xff] }
  0xbf   :  { %7529 = vmatpush3.bf16.msra.mxu0 %v8130_v37  ;;  %1850 = vmatprep.mubr.bf16.mxu0 %v9138_v52  ;;  %v8111_v37 = vld [vmem:[#allocation8 + $0x1b0] ss:$12 sps:$4 sm:$0xff]  }
  0xc0   :  { %7475 = vmatpush3.bf16.msra.mxu1 %v8034_v63  ;;  %7530 = vmatprep.subr.bf16.mxu0 %v8134_v40  ;;  %v1047_v63 = vld [vmem:[#allocation2 + $0x38] sm:$0xff]  ;;  %v8116_v40 = vld [vmem:[#allocation8 + $0x1c8] ss:$12 sps:$4 sm:$0xff]  }
  0xc1   :  { %7476 = vmatprep.subr.bf16.mxu1 %v8035_v1  ;;  %v9322_v1 = vpack.c.bf16 %v1047_v63, %v1043_v62  ;;  %v8175_v62 = vld [vmem:[#allocation9] ss:$12 sps:$4 sm:$0xff]   ;;  %v8177_v63 = vld [vmem:[#allocation9 + $0x4] ss:$12 sps:$4 sm:$0xff]  }
  0xc3   :  { %971 = vmatmul.mubr.bf16.gmra.mrb[12].mxu1 %v180_v46  ;;  %v8061_v46 = vld [vmem:[#allocation8 + $0x64] ss:$12 sps:$4 sm:$0xff]  }
  0xc4   :  { %7477 = vmatpush3.bf16.msra.mxu1 %v8036_v4  ;;  %8984 = vmatprep.mubr.msk.bf16.mxu1 %vm9258_vm1, %v9137_v9  ;;  %v8164_v4 = vld [vmem:[#allocation8 + $0x2f0] ss:$12 sps:$4 sm:$0xff]  }
  0xc5   :  { %7478 = vmatprep.subr.bf16.mxu1 %v8037_v7  ;;  %v1046_v7 = vld [vmem:[#allocation2 + $0x30] sm:$0xff] }
  0xc6   :  { %v9326_v15 = vpack.c.bf16 %v1046_v7, %v9136_v0 }
  0xc8   :  { %7479 = vmatpush3.bf16.msra.mxu1 %v8038_v12  ;;  %v1051_v12 = vld [vmem:[#allocation2 + $0x58] sm:$0xff] }
  0xc9   :  { %7480 = vmatprep.subr.bf16.mxu1 %v8039_v13  ;;  %v1055_v13 = vld [vmem:[#allocation2 + $0x78] sm:$0xff] }
  0xcc   :  { %7481 = vmatpush3.bf16.msra.mxu1 %v8040_v16  ;;  %v8079_v16 = vld [vmem:[#allocation8 + $0xf4] ss:$12 sps:$4 sm:$0xff]  }
  0xcd   :  { %7482 = vmatprep.subr.bf16.mxu1 %v8041_v17  ;;  %v9328_v17 = vpack.c.bf16 %v1055_v13, %v1051_v12 }
  0xd0   :  { %7483 = vmatpush3.bf16.msra.mxu1 %v8042_v19  ;;  %v8082_v19 = vld [vmem:[#allocation8 + $0x10c] ss:$12 sps:$4 sm:$0xff]  }
  0xd1   :  { %7484 = vmatprep.subr.bf16.mxu1 %v8043_v21  ;;  %v8080_v21 = vld [vmem:[#allocation8 + $0x108] ss:$12 sps:$4 sm:$0xff]  }
  0xd4   :  { %7485 = vmatpush3.bf16.msra.mxu1 %v8044_v23  ;;  %v9333_v23 = vpack.c.bf16 %v1054_v20, %v9136_v0 }
  0xd5   :  { %7486 = vmatprep.subr.bf16.mxu1 %v8045_v26  ;;  %v8086_v26 = vld [vmem:[#allocation8 + $0x138] ss:$12 sps:$4 sm:$0xff]  }
  0xd8   :  { %7487 = vmatpush3.bf16.msra.mxu1 %v8046_v27  ;;  %v8093_v27 = vld [vmem:[#allocation8 + $0x154] ss:$12 sps:$4 sm:$0xff]  }
  0xd9   :  { %1704 = vmatprep.subr.bf16.mxu1 %v8049_v30  ;;  %v8096_v30 = vld [vmem:[#allocation8 + $0x168] ss:$12 sps:$4 sm:$0xff]  }
  0xdb   :  { %1012 = vmatmul.mubr.bf16.vlgmr.msra.gmra.mrb[16].mxu1 %v9292_v35  ;;  %v8135_v35 = vld [vmem:[#allocation8 + $0x1a0] ss:$12 sps:$4 sm:$0xff]  }
  0xdc   :  { %1705 = vmatpush1.bf16.msra.mxu1 %v8047_v31  ;;  %8986 = vmatprep.mubr.msk.bf16.mxu1 %vm9258_vm1, %v9137_v9  ;;  %v8056_v9 = vld [vmem:[#allocation8 + $0x48] ss:$12 sps:$4 sm:$0xff]   ;;  %v8103_v31 = vld [vmem:[#allocation8 + $0x184] ss:$12 sps:$4 sm:$0xff]  }
  0xdd   :  { %1706 = vmatprep.subr.bf16.mxu1 %v8052_v33  ;;  %7531 = vmatpush3.bf16.msra.mxu0 %v8135_v35  ;;  %v8108_v33 = vld [vmem:[#allocation8 + $0x19c] ss:$12 sps:$4 sm:$0xff]  }
  0xde   :  { %7532 = vmatprep.subr.bf16.mxu0 %v8139_v8  ;;  %v8128_v35 = vld [vmem:[#allocation8 + $0x1fc] ss:$12 sps:$4 sm:$0xff]  }
  0xdf   :  { %v8131_v8 = vld [vmem:[#allocation8 + $0x210] ss:$12 sps:$4 sm:$0xff]  }
  0xe0   :  { %1707 = vmatpush1.bf16.msra.mxu1 %v8050_v38  ;;  %v8118_v38 = vld [vmem:[#allocation8 + $0x1cc] ss:$12 sps:$4 sm:$0xff]  }
  0xe1   :  { %1708 = vmatprep.subr.bf16.mxu1 %v8055_v41  ;;  %7533 = vmatpush3.bf16.msra.mxu0 %v8140_v44  ;;  %v8123_v41 = vld [vmem:[#allocation8 + $0x1e4] ss:$12 sps:$4 sm:$0xff]   ;;  %v8136_v44 = vld [vmem:[#allocation8 + $0x228] ss:$12 sps:$4 sm:$0xff]  }
  0xe2   :  { %7534 = vmatprep.subr.bf16.mxu0 %v8144_v45  ;;  %v8143_v45 = vld [vmem:[#allocation8 + $0x244] ss:$12 sps:$4 sm:$0xff]  }
  0xe3   :  { %1020 = vmatmul.mubr.bf16.gmra.mrb[20].mxu1 %v9299_v47  ;;  %v1048_v47 = vld [vmem:[#allocation2 + $0x40] sm:$0xff] }
  0xe4   :  { %1709 = vmatpush1.bf16.msra.mxu1 %v8053_v42  ;;  %1736 = vmatprep.mubr.bf16.mxu1 %v9138_v52  ;;  %v9319_v55 = vpack.c.bf16 %v9136_v0, %v1048_v47  ;;  %v8121_v42 = vld [vmem:[#allocation8 + $0x1e0] ss:$12 sps:$4 sm:$0xff]   ;;  %v8156_v47 = vld [vmem:[#allocation8 + $0x288] ss:$12 sps:$4 sm:$0xff]  }
  0xe5   :  { %1710 = vmatprep.subr.bf16.mxu1 %v8058_v43  ;;  %7535 = vmatpush3.bf16.msra.mxu0 %v8145_v49  ;;  %v8133_v43 = vld [vmem:[#allocation8 + $0x214] ss:$12 sps:$4 sm:$0xff]   ;;  %v8146_v49 = vld [vmem:[#allocation8 + $0x258] ss:$12 sps:$4 sm:$0xff]  }
  0xe6   :  { %7536 = vmatprep.subr.bf16.mxu0 %v8149_v50  ;;  %1851 = vmatmul.mubr.bf16.gmra.mrb[12].mxu0 %v9319_v55  ;;  %v8153_v50 = vld [vmem:[#allocation8 + $0x274] ss:$12 sps:$4 sm:$0xff]  }
  0xe7   :  { %1891 = vmatprep.mubr.bf16.mxu0 %v9322_v1 }
  0xe8   :  { %1711 = vmatpush1.bf16.msra.mxu1 %v8056_v9  ;;  %v8138_v9 = vld [vmem:[#allocation8 + $0x22c] ss:$12 sps:$4 sm:$0xff]  }
  0xe9   :  { %1712 = vmatprep.subr.bf16.mxu1 %v8061_v46  ;;  %7537 = vmatpush3.bf16.msra.mxu0 %v8150_v54  ;;  %v8141_v46 = vld [vmem:[#allocation8 + $0x240] ss:$12 sps:$4 sm:$0xff]   ;;  %v8163_v54 = vld [vmem:[#allocation8 + $0x2a4] ss:$12 sps:$4 sm:$0xff]  }
  0xea   :  { %7538 = vmatprep.subr.bf16.mxu0 %v8154_v56  ;;  %v8168_v56 = vld [vmem:[#allocation8 + $0x2bc] ss:$12 sps:$4 sm:$0xff]  }
  0xec   :  { %1713 = vmatpush1.bf16.msra.mxu1 %v8059_v48  ;;  %v8148_v48 = vld [vmem:[#allocation8 + $0x25c] ss:$12 sps:$4 sm:$0xff]  }
  0xed   :  { %1714 = vmatprep.subr.bf16.mxu1 %v8064_v51  ;;  %7539 = vmatpush3.bf16.msra.mxu0 %v8155_v59  ;;  %v8151_v51 = vld [vmem:[#allocation8 + $0x270] ss:$12 sps:$4 sm:$0xff]  }
  0xee   :  { %7540 = vmatprep.subr.bf16.mxu0 %v8159_v60  ;;  %v8169_v59 = vld [vmem:[#allocation8 + $0x2d0] ss:$12 sps:$4 sm:$0xff]   ;;  %v8174_v60 = vld [vmem:[#allocation8 + $0x2ec] ss:$12 sps:$4 sm:$0xff]  }
  0xf0   :  { %1715 = vmatpush1.bf16.msra.mxu1 %v8062_v53  ;;  %v8158_v53 = vld [vmem:[#allocation8 + $0x28c] ss:$12 sps:$4 sm:$0xff]  }
  0xf1   :  { %1716 = vmatprep.subr.bf16.mxu1 %v8067_v57  ;;  %7541 = vmatpush3.bf16.msra.mxu0 %v8160_v2  ;;  %v8166_v57 = vld [vmem:[#allocation8 + $0x2b8] ss:$12 sps:$4 sm:$0xff]  }
  0xf2   :  { %7542 = vmatprep.subr.bf16.mxu0 %v8164_v4 }
  0xf4   :  { %1717 = vmatpush1.bf16.msra.mxu1 %v8065_v58  ;;  %v8171_v58 = vld [vmem:[#allocation8 + $0x2d4] ss:$12 sps:$4 sm:$0xff]  }
  0xf5   :  { %1718 = vmatprep.subr.bf16.mxu1 %v8070_v61  ;;  %7543 = vmatpush3.bf16.msra.mxu0 %v8165_v6  ;;  %v8172_v61 = vld [vmem:[#allocation8 + $0x2e8] ss:$12 sps:$4 sm:$0xff]  }
  0xf6   :  { %2692 = vmatprep.subr.bf16.mxu0 %v8177_v63 }
  0xf8   :  { %1719 = vmatpush1.bf16.msra.mxu1 %v8068_v3  ;;  %1892 = vmatmul.mubr.bf16.vlgmr.msra.gmra.mrb[16].mxu0 %v9326_v15 }
  0xf9   :  { %1720 = vmatprep.subr.bf16.mxu1 %v8073_v5  ;;  %1899 = vmatprep.mubr.bf16.mxu0 %v9328_v17 }
  0xfa   :  { %2693 = vmatpush1.bf16.msra.mxu0 %v8175_v62 }
  0xfc   :  { %1721 = vmatpush1.bf16.msra.mxu1 %v8071_v10 }
  0xfd   :  { %1722 = vmatprep.subr.bf16.mxu1 %v8076_v11 }
 0x100   :  { %1723 = vmatpush1.bf16.msra.mxu1 %v8074_v14  ;;  %1900 = vmatmul.mubr.bf16.gmra.mrb[20].mxu0 %v9333_v23 }
 0x101   :  { %1724 = vmatprep.subr.bf16.mxu1 %v8079_v16 }
 0x104   :  { %1725 = vmatpush1.bf16.msra.mxu1 %v8077_v18 }
 0x105   :  { %1726 = vmatprep.subr.bf16.mxu1 %v8082_v19 }
 0x108   :  { %1727 = vmatpush1.bf16.msra.mxu1 %v8080_v21 }
 0x109   :  { %1728 = vmatprep.subr.bf16.mxu1 %v8085_v22 }
 0x10c   :  { %1729 = vmatpush1.bf16.msra.mxu1 %v8083_v24 }
 0x10d   :  { %1730 = vmatprep.subr.bf16.mxu1 %v8088_v25 }
 0x110   :  { %1731 = vmatpush1.bf16.msra.mxu1 %v8086_v26 }
 0x111   :  { %1732 = vmatprep.subr.bf16.mxu1 %v8093_v27 }
 0x114   :  { %1733 = vmatpush1.bf16.msra.mxu1 %v8091_v28 }
 0x115   :  { %1734 = vmatprep.subr.bf16.mxu1 %v8098_v29 }
 0x118   :  { %1735 = vmatpush1.bf16.msra.mxu1 %v8096_v30 }
 0x119   :  { %1757 = vmatprep.subr.bf16.mxu1 %v8103_v31 }
 0x11b   :  { %1737 = vmatmul.mubr.bf16.vlgmr.msra.gmra.mrb[24].mxu1 %v9312_v39  ;;  %v8126_v39 = vld [vmem:[#allocation8 + $0x1f8] ss:$12 sps:$4 sm:$0xff]  }
 0x11c   :  { %1758 = vmatpush1.bf16.msra.mxu1 %v8101_v32  ;;  %1746 = vmatprep.mubr.bf16.mxu1 %v9138_v52 }
 0x11d   :  { %1759 = vmatprep.subr.bf16.mxu1 %v8108_v33 }
 0x120   :  { %1760 = vmatpush1.bf16.msra.mxu1 %v8106_v34 }
 0x121   :  { %1761 = vmatprep.subr.bf16.mxu1 %v8113_v36 }
 0x123   :  { %1747 = vmatmul.mubr.bf16.gmra.mrb[28].mxu1 %v9319_v55  ;;  %v8161_v55 = vld [vmem:[#allocation8 + $0x2a0] ss:$12 sps:$4 sm:$0xff]  }
 0x124   :  { %1762 = vmatpush1.bf16.msra.mxu1 %v8111_v37  ;;  %1789 = vmatprep.mubr.bf16.mxu1 %v9322_v1 }
 0x125   :  { %1763 = vmatprep.subr.bf16.mxu1 %v8118_v38 }
 0x128   :  { %1764 = vmatpush1.bf16.msra.mxu1 %v8116_v40 }
 0x129   :  { %1765 = vmatprep.subr.bf16.mxu1 %v8123_v41 }
 0x12c   :  { %1766 = vmatpush1.bf16.msra.mxu1 %v8121_v42  ;;  %v8180_v42 = vld [vmem:[#allocation9 + $0x1c] ss:$12 sps:$4 sm:$0xff]  }
 0x12d   :  { %1767 = vmatprep.subr.bf16.mxu1 %v8128_v35  ;;  %v8178_v35 = vld [vmem:[#allocation9 + $0x18] ss:$12 sps:$4 sm:$0xff]   ;;  %2694 = vmatprep.subr.bf16.mxu0 %v8180_v42 }
 0x12e   :  { %2695 = vmatpush1.bf16.msra.mxu0 %v8178_v35  ;;  %v8213_v42 = vld [vmem:[#allocation9 + $0x38] ss:$12 sps:$4 sm:$0xff]  }
 0x130   :  { %1768 = vmatpush1.bf16.msra.mxu1 %v8126_v39 }
 0x131   :  { %1769 = vmatprep.subr.bf16.mxu1 %v8133_v43 }
 0x134   :  { %1770 = vmatpush1.bf16.msra.mxu1 %v8131_v8  ;;  %v8183_v8 = vld [vmem:[#allocation9 + $0x34] ss:$12 sps:$4 sm:$0xff]  }
 0x135   :  { %1771 = vmatprep.subr.bf16.mxu1 %v8138_v9  ;;  %2696 = vmatprep.subr.bf16.mxu0 %v8183_v8 }
 0x138   :  { %1772 = vmatpush1.bf16.msra.mxu1 %v8136_v44 }
 0x139   :  { %1773 = vmatprep.subr.bf16.mxu1 %v8143_v45  ;;  %v8181_v45 = vld [vmem:[#allocation9 + $0x30] ss:$12 sps:$4 sm:$0xff]  }
 0x13a   :  { %2697 = vmatpush1.bf16.msra.mxu0 %v8181_v45 }
 0x13c   :  { %1774 = vmatpush1.bf16.msra.mxu1 %v8141_v46 }
 0x13d   :  { %1775 = vmatprep.subr.bf16.mxu1 %v8148_v48 }
 0x140   :  { %1776 = vmatpush1.bf16.msra.mxu1 %v8146_v49 }
 0x141   :  { %1777 = vmatprep.subr.bf16.mxu1 %v8153_v50 }
 0x144   :  { %1778 = vmatpush1.bf16.msra.mxu1 %v8151_v51 }
 0x145   :  { %1779 = vmatprep.subr.bf16.mxu1 %v8158_v53 }
 0x148   :  { %1780 = vmatpush1.bf16.msra.mxu1 %v8156_v47 }
 0x149   :  { %1781 = vmatprep.subr.bf16.mxu1 %v8163_v54  ;;  %v8186_v54 = vld [vmem:[#allocation9 + $0x4c] ss:$12 sps:$4 sm:$0xff]  }
 0x14a   :  { %2698 = vmatprep.subr.bf16.mxu0 %v8186_v54  ;;  %v8221_v54 = vld [vmem:[#allocation9 + $0x124] ss:$12 sps:$4 sm:$0xff]  }
 0x14c   :  { %1782 = vmatpush1.bf16.msra.mxu1 %v8161_v55 }
 0x14d   :  { %1783 = vmatprep.subr.bf16.mxu1 %v8168_v56 }
 0x150   :  { %1784 = vmatpush1.bf16.msra.mxu1 %v8166_v57  ;;  %v8184_v57 = vld [vmem:[#allocation9 + $0x48] ss:$12 sps:$4 sm:$0xff]  }
 0x151   :  { %1785 = vmatprep.subr.bf16.mxu1 %v8171_v58  ;;  %2699 = vmatpush1.bf16.msra.mxu0 %v8184_v57  ;;  %v8219_v57 = vld [vmem:[#allocation9 + $0x120] ss:$12 sps:$4 sm:$0xff]  }
 0x154   :  { %1786 = vmatpush1.bf16.msra.mxu1 %v8169_v59 }
 0x155   :  { %1787 = vmatprep.subr.bf16.mxu1 %v8174_v60 }
 0x158   :  { %1788 = vmatpush1.bf16.msra.mxu1 %v8172_v61  ;;  %v8189_v61 = vld [vmem:[#allocation9 + $0x64] ss:$12 sps:$4 sm:$0xff]  }
 0x159   :  { %2700 = vmatprep.subr.bf16.mxu0 %v8189_v61 }
 0x15b   :  { %1790 = vmatmul.mubr.bf16.vlgmr.msra.gmra.mrb[24].mxu1 %v9326_v15 }
 0x15c   :  { %1799 = vmatprep.mubr.bf16.mxu1 %v9328_v17 }
 0x163   :  { %1800 = vmatmul.mubr.bf16.gmra.mrb[28].mxu1 %v9333_v23 }
 0x16e   :  { %v858_v2 = vpop.f32.mrb[0].mxu1 }
 0x16f   :  { %v911_v3 = vpop.f32.mrb[0].mxu0  ;;  %v860_v5 = vpop.f32.mrb[1].mxu1 }
 0x170   :  { %v9343_v4 = vadd.f32 %v911_v3, %v858_v2  ;;  %v913_v6 = vpop.f32.mrb[1].mxu0  ;;  %v862_v10 = vpop.f32.mrb[2].mxu1  ;;  %v8187_v2 = vld [vmem:[#allocation9 + $0x60] ss:$12 sps:$4 sm:$0xff]  }
 0x171   :  { %v9345_v7 = vadd.f32 %v913_v6, %v860_v5  ;;  %v915_v11 = vpop.f32.mrb[2].mxu0  ;;  %v864_v13 = vpop.f32.mrb[3].mxu1  ;;  %2701 = vmatpush1.bf16.msra.mxu0 %v8187_v2  ;;  %v8227_v2 = vld [vmem:[#allocation9 + $0x140] ss:$12 sps:$4 sm:$0xff]  }
 0x172   :  { %v9347_v12 = vadd.f32 %v915_v11, %v862_v10  ;;  %v917_v14 = vpop.f32.mrb[3].mxu0  ;;  %v8192_v10 = vld [vmem:[#allocation9 + $0x7c] ss:$12 sps:$4 sm:$0xff]  }
 0x173   :  { %v9349_v16 = vadd.f32 %v917_v14, %v864_v13  ;;  %v8190_v13 = vld [vmem:[#allocation9 + $0x78] ss:$12 sps:$4 sm:$0xff]   ;;  %2702 = vmatprep.subr.bf16.mxu0 %v8192_v10  ;;  %v8195_v14 = vld [vmem:[#allocation9 + $0x94] ss:$12 sps:$4 sm:$0xff]  }
 0x174   :  { %v8228_v10 = vld [vmem:[#allocation9 + $0x80] ss:$12 sps:$4 sm:$0xff]  }
 0x175   :  { %2703 = vmatpush1.bf16.msra.mxu0 %v8190_v13 }
 0x176   :  { %v868_v15 = vpop.f32.mrb[4].mxu1  ;;  %2704 = vmatprep.subr.bf16.mxu0 %v8195_v14 }
 0x177   :  { %v921_v17 = vpop.f32.mrb[4].mxu0  ;;  %v870_v19 = vpop.f32.mrb[5].mxu1 }
 0x178   :  { %v9351_v18 = vadd.f32 %v921_v17, %v868_v15  ;;  %v923_v20 = vpop.f32.mrb[5].mxu0  ;;  %v872_v22 = vpop.f32.mrb[6].mxu1  ;;  %v8193_v17 = vld [vmem:[#allocation9 + $0x90] ss:$12 sps:$4 sm:$0xff]  }
 0x179   :  { %v9353_v21 = vadd.f32 %v923_v20, %v870_v19  ;;  %v925_v23 = vpop.f32.mrb[6].mxu0  ;;  %v874_v25 = vpop.f32.mrb[7].mxu1  ;;  %2705 = vmatpush1.bf16.msra.mxu0 %v8193_v17  ;;  %v8232_v17 = vld [vmem:[#allocation9 + $0x158] ss:$12 sps:$4 sm:$0xff]  }
 0x17a   :  { %v9355_v24 = vadd.f32 %v925_v23, %v872_v22  ;;  %v927_v26 = vpop.f32.mrb[7].mxu0 }
 0x17b   :  { %v9357_v27 = vadd.f32 %v927_v26, %v874_v25  ;;  %v8198_v25 = vld [vmem:[#allocation9 + $0xac] ss:$12 sps:$4 sm:$0xff]  }
 0x17c   :  { %2706 = vmatprep.subr.bf16.mxu0 %v8198_v25  ;;  %v8237_v25 = vld [vmem:[#allocation9 + $0x170] ss:$12 sps:$4 sm:$0xff]  }
 0x18e   :  { %v7460_v28 = vpop.f32.mrb[8].mxu1 }
 0x18f   :  { %v7461_v29 = vpop.f32.mrb[9].mxu1 }
 0x190   :  { %v7462_v30 = vadd.f32 %v7461_v29, %v7460_v28  ;;  %v7463_v31 = vpop.f32.mrb[10].mxu1  ;;  %v8196_v28 = vld [vmem:[#allocation9 + $0xa8] ss:$12 sps:$4 sm:$0xff]   ;;  %v8201_v29 = vld [vmem:[#allocation9 + $0xc4] ss:$12 sps:$4 sm:$0xff]  }
 0x191   :  { %v7464_v32 = vpop.f32.mrb[11].mxu1  ;;  %v7516_v48 = vpop.f32.mrb[8].mxu0  ;;  %2707 = vmatpush1.bf16.msra.mxu0 %v8196_v28  ;;  %v8238_v28 = vld [vmem:[#allocation9 + $0xb0] ss:$12 sps:$4 sm:$0xff]  }
 0x192   :  { %v7465_v33 = vadd.f32 %v7464_v32, %v7463_v31  ;;  %v7517_v51 = vpop.f32.mrb[9].mxu0  ;;  %v8199_v31 = vld [vmem:[#allocation9 + $0xc0] ss:$12 sps:$4 sm:$0xff]   ;;  %v8203_v32 = vld [vmem:[#allocation9 + $0x8] ss:$12 sps:$4 sm:$0xff]   ;;  %2708 = vmatprep.subr.bf16.mxu0 %v8201_v29 }
 0x193   :  { %v9361_v53 = vadd.f32 %v7517_v51, %v7516_v48  ;;  %v7519_v47 = vpop.f32.mrb[10].mxu0  ;;  %v8218_v48 = vld [vmem:[#allocation9 + $0x50] ss:$12 sps:$4 sm:$0xff]  }
 0x194   :  { %v7520_v56 = vpop.f32.mrb[11].mxu0  ;;  %v8241_v29 = vld [vmem:[#allocation9 + $0x184] ss:$12 sps:$4 sm:$0xff]  }
 0x195   :  { %v9365_v58 = vadd.f32 %v7520_v56, %v7519_v47  ;;  %2709 = vmatpush1.bf16.msra.mxu0 %v8199_v31  ;;  %v8222_v56 = vld [vmem:[#allocation9 + $0x128] ss:$12 sps:$4 sm:$0xff]  }
 0x196   :  { %v7466_v34 = vpop.f32.mrb[12].mxu1 }
 0x197   :  { %v7467_v36 = vpop.f32.mrb[13].mxu1 }
 0x198   :  { %v7468_v37 = vadd.f32 %v7467_v36, %v7466_v34  ;;  %v7469_v38 = vpop.f32.mrb[14].mxu1  ;;  %v8207_v34 = vld [vmem:[#allocation9 + $0xe0] ss:$12 sps:$4 sm:$0xff]   ;;  %v8204_v36 = vld [vmem:[#allocation9 + $0xd8] ss:$12 sps:$4 sm:$0xff]  }
 0x199   :  { %v7470_v40 = vpop.f32.mrb[15].mxu1 }
 0x19a   :  { %v7471_v41 = vadd.f32 %v7470_v40, %v7469_v38  ;;  %v8211_v38 = vld [vmem:[#allocation9 + $0xf4] ss:$12 sps:$4 sm:$0xff]   ;;  %v8212_v40 = vld [vmem:[#allocation9 + $0xf8] ss:$12 sps:$4 sm:$0xff]  }
 0x1ae   :  { %v7488_v39 = vpop.f32.mrb[16].mxu1 }
 0x1af   :  { %v7489_v43 = vpop.f32.mrb[17].mxu1 }
 0x1b0   :  { %v7490_v9 = vadd.f32 %v7489_v43, %v7488_v39  ;;  %v7491_v44 = vpop.f32.mrb[18].mxu1 }
 0x1b1   :  { %v7492_v46 = vpop.f32.mrb[19].mxu1 }
 0x1b2   :  { %v9359_v49 = vadd.f32 %v7490_v9, %v7462_v30  ;;  %v7493_v50 = vadd.f32 %v7492_v46, %v7491_v44  ;;  %v8202_v30 = vld [vmem:[#allocation9 + $0xc8] ss:$12 sps:$4 sm:$0xff]   ;;  %v8216_v9 = vld [vmem:[#allocation9 + $0x10c] ss:$12 sps:$4 sm:$0xff]   ;;  %v8217_v44 = vld [vmem:[#allocation9 + $0x110] ss:$12 sps:$4 sm:$0xff]  }
 0x1b3   :  { %7556 = vmatprep.subr.bf16.mxu1 %v8202_v30  ;;  %v8214_v46 = vld [vmem:[#allocation9 + $0x108] ss:$12 sps:$4 sm:$0xff]  }
 0x1b4   :  { %v9363_v55 = vadd.f32 %v7493_v50, %v7465_v33  ;;  %7557 = vmatpush3.bf16.msra.mxu1 %v8203_v32  ;;  %v8206_v33 = vld [vmem:[#allocation9 + $0xdc] ss:$12 sps:$4 sm:$0xff]  }
 0x1b5   :  { %2710 = vmatprep.subr.bf16.mxu0 %v8206_v33  ;;  %7558 = vmatprep.subr.bf16.mxu1 %v8207_v34  ;;  %v8242_v30 = vld [vmem:[#allocation9 + $0x248] ss:$12 sps:$4 sm:$0xff]  }
 0x1b6   :  { %v7494_v59 = vpop.f32.mrb[20].mxu1  ;;  %2711 = vmatpush1.bf16.msra.mxu0 %v8204_v36 }
 0x1b7   :  { %v7495_v60 = vpop.f32.mrb[21].mxu1  ;;  %2712 = vmatprep.subr.bf16.mxu0 %v8211_v38 }
 0x1b8   :  { %v7496_v62 = vadd.f32 %v7495_v60, %v7494_v59  ;;  %v7497_v63 = vpop.f32.mrb[22].mxu1  ;;  %v8223_v59 = vld [vmem:[#allocation9 + $0x68] ss:$12 sps:$4 sm:$0xff]  }
 0x1b9   :  { %v7498_v3 = vpop.f32.mrb[23].mxu1  ;;  %v7522_v15 = vpop.f32.mrb[12].mxu0 }
 0x1ba   :  { %v9367_v5 = vadd.f32 %v7496_v62, %v7468_v37  ;;  %v7499_v6 = vadd.f32 %v7498_v3, %v7497_v63  ;;  %v7523_v19 = vpop.f32.mrb[13].mxu0  ;;  %v8208_v37 = vld [vmem:[#allocation9 + $0x20] ss:$12 sps:$4 sm:$0xff]   ;;  %v8226_v63 = vld [vmem:[#allocation9 + $0x13c] ss:$12 sps:$4 sm:$0xff]  }
 0x1bb   :  { %v9371_v20 = vadd.f32 %v7523_v19, %v7522_v15  ;;  %v7525_v22 = vpop.f32.mrb[14].mxu0  ;;  %7559 = vmatpush3.bf16.msra.mxu1 %v8208_v37  ;;  %v8231_v15 = vld [vmem:[#allocation9 + $0x154] ss:$12 sps:$4 sm:$0xff]   ;;  %v8229_v19 = vld [vmem:[#allocation9 + $0x150] ss:$12 sps:$4 sm:$0xff]  }
 0x1bc   :  { %v9369_v11 = vadd.f32 %v7499_v6, %v7471_v41  ;;  %v7526_v23 = vpop.f32.mrb[15].mxu0  ;;  %v8209_v41 = vld [vmem:[#allocation9 + $0xf0] ss:$12 sps:$4 sm:$0xff]   ;;  %7560 = vmatprep.subr.bf16.mxu1 %v8212_v40  ;;  %v8224_v6 = vld [vmem:[#allocation9 + $0x138] ss:$12 sps:$4 sm:$0xff]  }
 0x1bd   :  { %v9373_v26 = vadd.f32 %v7526_v23, %v7525_v22  ;;  %2713 = vmatpush1.bf16.msra.mxu0 %v8209_v41  ;;  %v8233_v22 = vld [vmem:[#allocation9 + $0x98] ss:$12 sps:$4 sm:$0xff]  }
 0x1be   :  { %2714 = vmatprep.subr.bf16.mxu0 %v8216_v9  ;;  %v8236_v23 = vld [vmem:[#allocation9 + $0x16c] ss:$12 sps:$4 sm:$0xff]  }
 0x1bf   :  { %7561 = vmatpush3.bf16.msra.mxu1 %v8213_v42 }
 0x1c0   :  { %7562 = vmatprep.subr.bf16.mxu1 %v8217_v44 }
 0x1c1   :  { %2715 = vmatpush1.bf16.msra.mxu0 %v8214_v46 }
 0x1c2   :  { %2716 = vmatprep.subr.bf16.mxu0 %v8221_v54 }
 0x1c3   :  { %7563 = vmatpush3.bf16.msra.mxu1 %v8218_v48 }
 0x1c4   :  { %7564 = vmatprep.subr.bf16.mxu1 %v8222_v56 }
 0x1c5   :  { %2717 = vmatpush1.bf16.msra.mxu0 %v8219_v57 }
 0x1c6   :  { %2718 = vmatprep.subr.bf16.mxu0 %v8226_v63 }
 0x1c7   :  { %7565 = vmatpush3.bf16.msra.mxu1 %v8223_v59 }
 0x1c8   :  { %7566 = vmatprep.subr.bf16.mxu1 %v8227_v2 }
 0x1c9   :  { %2719 = vmatpush1.bf16.msra.mxu0 %v8224_v6 }
 0x1ca   :  { %2720 = vmatprep.subr.bf16.mxu0 %v8231_v15 }
 0x1cb   :  { %v7544_v35 = vpop.f32.mrb[16].mxu0  ;;  %7567 = vmatpush3.bf16.msra.mxu1 %v8228_v10 }
 0x1cc   :  { %v7545_v39 = vpop.f32.mrb[17].mxu0  ;;  %7568 = vmatprep.subr.bf16.mxu1 %v8232_v17 }
 0x1cd   :  { %v7546_v43 = vadd.f32 %v7545_v39, %v7544_v35  ;;  %v7547_v8 = vpop.f32.mrb[18].mxu0  ;;  %2721 = vmatpush1.bf16.msra.mxu0 %v8229_v19 }
 0x1ce   :  { %v7548_v45 = vpop.f32.mrb[19].mxu0  ;;  %2722 = vmatprep.subr.bf16.mxu0 %v8236_v23 }
 0x1cf   :  { %v9376_v50 = vadd.f32 %v7546_v43, %v9361_v53  ;;  %v7549_v51 = vadd.f32 %v7548_v45, %v7547_v8  ;;  %7569 = vmatpush3.bf16.msra.mxu1 %v8233_v22 }
 0x1d0   :  { %7570 = vmatprep.subr.bf16.mxu1 %v8237_v25 }
 0x1d1   :  { %v9379_v47 = vadd.f32 %v7549_v51, %v9365_v58 }
 0x1d3   :  { %v7550_v60 = vpop.f32.mrb[20].mxu0  ;;  %7571 = vmatpush3.bf16.msra.mxu1 %v8238_v28 }
 0x1d4   :  { %v7551_v61 = vpop.f32.mrb[21].mxu0  ;;  %7584 = vmatprep.subr.bf16.mxu1 %v8242_v30 }
 0x1d5   :  { %v7552_v53 = vadd.f32 %v7551_v61, %v7550_v60  ;;  %v7553_v62 = vpop.f32.mrb[22].mxu0 }
 0x1d6   :  { %v7554_v3 = vpop.f32.mrb[23].mxu0 }
 0x1d7   :  { %v9382_v58 = vadd.f32 %v7552_v53, %v9371_v20  ;;  %v7555_v13 = vadd.f32 %v7554_v3, %v7553_v62  ;;  %v8234_v20 = vld [vmem:[#allocation9 + $0x168] ss:$12 sps:$4 sm:$0xff]  }
 0x1d8   :  { %2723 = vmatpush1.bf16.msra.mxu0 %v8234_v20 }
 0x1d9   :  { %v9385_v14 = vadd.f32 %v7555_v13, %v9373_v26  ;;  %2745 = vmatprep.subr.bf16.mxu0 %v8241_v29 }
 0x22e   :  { %v1791_v26 = vpop.f32.mrb[24].mxu1 }
 0x22f   :  { %v1908_v31 = vadd.f32 %v1791_v26, %v9343_v4  ;;  %v1793_v32 = vpop.f32.mrb[25].mxu1 }
 0x230   :  { %v1795_v33 = vpop.f32.mrb[26].mxu1  ;;  %v1909_v38 = vadd.f32 %v1793_v32, %v9345_v7 }
 0x231   :  { %v6932_v34 = vmul.f32 -1.442695, %v1908_v31  ;;  %v1910_v36 = vadd.f32 %v1795_v33, %v9347_v12  ;;  %v1797_v37 = vpop.f32.mrb[27].mxu1 }
 0x232   :  { %v1911_v41 = vadd.f32 %v1797_v37, %v9349_v16  ;;  %v6933_v42 = vmul.f32 -1.442695, %v1909_v38 }
 0x233   :  { %8815 = vpow2.f32 %v6932_v34  ;;  %v6934_v40 = vmul.f32 -1.442695, %v1910_v36 }
 0x234   :  { %v6935_v8 = vmul.f32 -1.442695, %v1911_v41 }
 0x235   :  { %8817 = vpow2.f32 %v6934_v40 }
 0x236   :  { %v1801_v35 = vpop.f32.mrb[28].mxu1  ;;  %8819 = vpow2.f32 %v6933_v42 }
 0x237   :  { %v1912_v39 = vadd.f32 %v1801_v35, %v9351_v18  ;;  %v1803_v43 = vpop.f32.mrb[29].mxu1 }
 0x238   :  { %v1805_v9 = vpop.f32.mrb[30].mxu1  ;;  %v1913_v45 = vadd.f32 %v1803_v43, %v9353_v21 }
 0x239   :  { %v6936_v44 = vmul.f32 -1.442695, %v1912_v39  ;;  %v1914_v46 = vadd.f32 %v1805_v9, %v9355_v24  ;;  %v1807_v48 = vpop.f32.mrb[31].mxu1 }
 0x23a   :  { %v1915_v54 = vadd.f32 %v1807_v48, %v9357_v27  ;;  %v6937_v57 = vmul.f32 -1.442695, %v1913_v45 }
 0x23b   :  { %8821 = vpow2.f32 %v6936_v44  ;;  %v6938_v51 = vmul.f32 -1.442695, %v1914_v46 }
 0x23c   :  { %8823 = vpow2.f32 %v6935_v8  ;;  %v6939_v53 = vmul.f32 -1.442695, %v1915_v54 }
 0x23d   :  { %v8816_v56 = vpop.eup %8815  ;;  %8825 = vpow2.f32 %v6938_v51 }
 0x23e   :  { %v1940_v59 = vadd.f32 1.0, %v8816_v56 }
 0x23f   :  { %v8818_v60 = vpop.eup %8817 }
 0x240   :  { %8827 = vrcp.f32 %v1940_v59  ;;  %v1942_v61 = vadd.f32 1.0, %v8818_v60  ;;  %v8820_v62 = vpop.eup %8819 }
 0x241   :  { %8829 = vpow2.f32 %v6937_v57  ;;  %v1941_v10 = vadd.f32 1.0, %v8820_v62 }
 0x242   :  { %8831 = vrcp.f32 %v1942_v61 }
 0x243   :  { %8833 = vpow2.f32 %v6939_v53 }
 0x245   :  { %v8822_v63 = vpop.eup %8821 }
 0x246   :  { %v8824_v2 = vpop.eup %8823  ;;  %v1944_v3 = vadd.f32 1.0, %v8822_v63 }
 0x247   :  { %v8826_v6 = vpop.eup %8825  ;;  %v1943_v15 = vadd.f32 1.0, %v8824_v2 }
 0x248   :  { %8835 = vrcp.f32 %v1944_v3  ;;  %v1946_v13 = vadd.f32 1.0, %v8826_v6  ;;  %v8239_v6 = vld [vmem:[#allocation9 + $0x180] ss:$12 sps:$4 sm:$0xff]  }
 0x24a   :  { %v8828_v17 = vpop.eup %8827  ;;  %8837 = vrcp.f32 %v1946_v13 }
 0x24b   :  { %v8830_v19 = vpop.eup %8829  ;;  %v1964_v22 = vmul.f32 %v8828_v17, %v9376_v50  ;;  %8839 = vrcp.f32 %v1941_v10 }
 0x24c   :  { %v8832_v23 = vpop.eup %8831  ;;  %8841 = vrcp.f32 %v1943_v15  ;;  %v1945_v30 = vadd.f32 1.0, %v8830_v19  ;;  %v8243_v15 = vld [vmem:[#allocation9 + $0x188] ss:$12 sps:$4 sm:$0xff]  }
 0x24d   :  { %v1968_v25 = vadd.f32 %v1964_v22, %v9359_v49  ;;  %v1965_v20 = vmul.f32 %v8832_v23, %v9379_v47  ;;  %v8834_v28 = vpop.eup %8833  ;;  %v8246_v19 = vld [vmem:[#allocation9 + $0x19c] ss:$12 sps:$4 sm:$0xff]   ;;  %v8247_v22 = vld [vmem:[#allocation9 + $0x260] ss:$12 sps:$4 sm:$0xff]  }
 0x24e   :  { %v1947_v26 = vadd.f32 1.0, %v8834_v28  ;;  %v8244_v28 = vld [vmem:[#allocation9 + $0x198] ss:$12 sps:$4 sm:$0xff]  }
 0x24f   :  { %8843 = vtanh.f32 %v1968_v25  ;;  %v1969_v29 = vadd.f32 %v1965_v20, %v9363_v55 }
 0x251   :  { %8845 = vtanh.f32 %v1969_v29  ;;  %v8248_v29 = vld [vmem:[#allocation9 + $0x1a0] ss:$12 sps:$4 sm:$0xff]  }
 0x252   :  { %v8836_v31 = vpop.eup %8835  ;;  %8847 = vrcp.f32 %v1945_v30 }
 0x253   :  { %v1966_v32 = vmul.f32 %v8836_v31, %v9382_v58  ;;  %8849 = vrcp.f32 %v1947_v26  ;;  %v8251_v26 = vld [vmem:[#allocation9 + $0x1b4] ss:$12 sps:$4 sm:$0xff]   ;;  %v8252_v31 = vld [vmem:[#allocation9 + $0x278] ss:$12 sps:$4 sm:$0xff]  }
 0x254   :  { %v8838_v33 = vpop.eup %8837 }
 0x255   :  { %v8840_v50 = vpop.eup %8839  ;;  %v1970_v34 = vadd.f32 %v1966_v32, %v9367_v5  ;;  %v1967_v36 = vmul.f32 %v8838_v33, %v9385_v14  ;;  %v8249_v32 = vld [vmem:[#allocation9 + $0x1b0] ss:$12 sps:$4 sm:$0xff]  }
 0x256   :  { %v8842_v47 = vpop.eup %8841  ;;  %v1976_v38 = vsub.f32 1.0, %v8840_v50  ;;  %v1984_v42 = vmul.f32 0.0, %v8840_v50 }
 0x257   :  { %8851 = vtanh.f32 %v1970_v34  ;;  %v1971_v37 = vadd.f32 %v1967_v36, %v9369_v11  ;;  %v1977_v35 = vsub.f32 1.0, %v8842_v47  ;;  %v1985_v8 = vmul.f32 0.0, %v8842_v47  ;;  %v8253_v34 = vld [vmem:[#allocation9 + $0x1b8] ss:$12 sps:$4 sm:$0xff]  }
 0x259   :  { %v8844_v40 = vpop.eup %8843  ;;  %8853 = vtanh.f32 %v1971_v37  ;;  %v8256_v37 = vld [vmem:[#allocation9 + $0x1cc] ss:$12 sps:$4 sm:$0xff]  }
 0x25a   :  { %v1980_v41 = vmul.f32 %v8844_v40, %v1976_v38  ;;  %v8257_v38 = vld [vmem:[#allocation9 + $0x290] ss:$12 sps:$4 sm:$0xff]  }
 0x25b   :  { %v8846_v39 = vpop.eup %8845 }
 0x25c   :  { %v9403_v43 = vadd.f32 %v1984_v42, %v1980_v41  ;;  %v1981_v58 = vmul.f32 %v8846_v39, %v1977_v35  ;;  %v8848_v9 = vpop.eup %8847  ;;  %v8254_v42 = vld [vmem:[#allocation9 + $0x1c8] ss:$12 sps:$4 sm:$0xff]   ;;  %v8258_v35 = vld [vmem:[#allocation9 + $0x1d0] ss:$12 sps:$4 sm:$0xff]  }
 0x25d   :  { %v8850_v45 = vpop.eup %8849  ;;  %v1978_v46 = vsub.f32 1.0, %v8848_v9  ;;  %v1986_v56 = vmul.f32 0.0, %v8848_v9  ;;  %v8261_v39 = vld [vmem:[#allocation9 + $0x1e4] ss:$12 sps:$4 sm:$0xff]   ;;  %v8263_v9 = vld [vmem:[#allocation9 + $0x1e8] ss:$12 sps:$4 sm:$0xff]  }
 0x25e   :  { %v9405_v44 = vadd.f32 %v1985_v8, %v1981_v58  ;;  %v1994_v14 = vrot.slane %v9403_v43, 7  ;;  %v1979_v57 = vsub.f32 1.0, %v8850_v45  ;;  %v1987_v53 = vmul.f32 0.0, %v8850_v45  ;;  %v8262_v58 = vld [vmem:[#allocation9 + $0x2a8] ss:$12 sps:$4 sm:$0xff]  }
 0x25f   :  { %v8259_v8 = vld [vmem:[#allocation9 + $0x1e0] ss:$12 sps:$4 sm:$0xff]   ;;  %v8266_v45 = vld [vmem:[#allocation9 + $0x1fc] ss:$12 sps:$4 sm:$0xff]  }
 0x260   :  { %v9410_v48 = vpack.c.bf16 %v9405_v44, %v9403_v43  ;;  %1999 = vst [vmem:[#allocation2] sm:$0xfe] %v1994_v14  ;;  %v9413_v51 = vrot.slane %v9405_v44, 1  ;;  %v1995_v61 = vrot.slane %v9405_v44, 7 }
 0x261   :  { %v8852_v54 = vpop.eup %8851 }
 0x262   :  { %v1982_v59 = vmul.f32 %v8852_v54, %v1978_v46  ;;  %2724 = vmatprep.mubr.bf16.mxu0 %v9410_v48  ;;  %2830 = vmatprep.mubr.bf16.mxu1 %v9410_v48  ;;  %2009 = vst [vmem:[#allocation2 + $0x30] sm:$0x7f] %v9413_v51  ;;  %v9427_v10 = vsel %vm121_vm5, %v1994_v14, %v1995_v61  ;;  %v8267_v46 = vld [vmem:[#allocation9 + $0x2c0] ss:$12 sps:$4 sm:$0xff]   ;;  %v8273_v61 = vld [vmem:[#allocation9 + $0x218] ss:$12 sps:$4 sm:$0xff]  }
 0x263   :  { %v8854_v60 = vpop.eup %8853 }
 0x264   :  { %v9419_v62 = vadd.f32 %v1986_v56, %v1982_v59  ;;  %v1983_v63 = vmul.f32 %v8854_v60, %v1979_v57  ;;  %v8264_v56 = vld [vmem:[#allocation9 + $0x1f8] ss:$12 sps:$4 sm:$0xff]   ;;  %v8271_v57 = vld [vmem:[#allocation9 + $0x214] ss:$12 sps:$4 sm:$0xff]   ;;  %v8269_v60 = vld [vmem:[#allocation9 + $0x210] ss:$12 sps:$4 sm:$0xff]  }
 0x265   :  { %v8272_v59 = vld [vmem:[#allocation9 + $0x2d8] ss:$12 sps:$4 sm:$0xff]  }
 0x266   :  { %v9421_v2 = vadd.f32 %v1987_v53, %v1983_v63  ;;  %v9424_v3 = vrot.slane %v9419_v62, 7  ;;  %v8276_v53 = vld [vmem:[#allocation9 + $0x22c] ss:$12 sps:$4 sm:$0xff]   ;;  %v8277_v63 = vld [vmem:[#allocation9 + $0x2f0] ss:$12 sps:$4 sm:$0xff]  }
 0x267   :  { %v2028_v13 = vld [vmem:[#allocation2] sm:$0xff] }
 0x268   :  { %v2044_v17 = vpack.c.bf16 %v9427_v10, %v2028_v13  ;;  %2896 = vst [vmem:[#allocation2] sm:$0xfe] %v9136_v0  ;;  %2017 = vst [vmem:[#allocation2 + $0x40] sm:$0xfe] %v9424_v3  ;;  %v9433_v23 = vrot.slane %v9421_v2, 1  ;;  %v9437_v25 = vpack.c.bf16 %v9421_v2, %v9419_v62  ;;  %v2013_v30 = vrot.slane %v9421_v2, 7 }
 0x269   :  { %v9439_v20 = vld [vmem:[#allocation2 + $0x30] sm:$0xff] }
 0x26a   :  { %2725 = vmatmul.mubr.bf16.vlgmr.msra.gmra.mrb[24].mxu0 %v2044_v17  ;;  %2831 = vmatmul.mubr.bf16.vlgmr.msra.gmra.mrb[32].mxu1 %v2044_v17  ;;  %2901 = vst [vmem:[#allocation2 + $0x30] sm:$0x7f] %v9136_v0  ;;  %2027 = vst [vmem:[#allocation2 + $0x70] sm:$0x7f] %v9433_v23  ;;  %v9448_v33 = vsel %vm121_vm5, %v9424_v3, %v2013_v30  ;;  %v8281_v13 = vld [vmem:[#allocation9 + $0x244] ss:$12 sps:$4 sm:$0xff]  }
 0x26b   :  { %2746 = vmatpush1.bf16.msra.mxu0 %v8239_v6  ;;  %7585 = vmatpush3.bf16.msra.mxu1 %v8243_v15  ;;  %v8278_v6 = vld [vmem:[#allocation9 + $0x230] ss:$12 sps:$4 sm:$0xff]   ;;  %v8282_v15 = vld [vmem:[#allocation11 + $0xc8] ss:$12 sps:$4 sm:$0xff]   ;;  %v2003_v17 = vrot.slane %v9403_v43, 1 }
 0x26c   :  { %2747 = vmatprep.subr.bf16.mxu0 %v8246_v19  ;;  %7586 = vmatprep.subr.bf16.mxu1 %v8247_v22  ;;  %v2039_v19 = vld [vmem:[#allocation2 + $0x58] sm:$0xff]  ;;  %v8283_v30 = vld [vmem:[#allocation11 + $0x8] ss:$12 sps:$4 sm:$0xff]  }
 0x26d   :  { %2734 = vmatprep.mubr.bf16.mxu0 %v9437_v25  ;;  %2838 = vmatprep.mubr.bf16.mxu1 %v9437_v25  ;;  %v2043_v22 = vld [vmem:[#allocation2 + $0x78] sm:$0xff] }
 0x26f   :  { %2748 = vmatpush1.bf16.msra.mxu0 %v8244_v28  ;;  %7587 = vmatpush3.bf16.msra.mxu1 %v8248_v29  ;;  %v2036_v50 = vld [vmem:[#allocation2 + $0x40] sm:$0xff]  ;;  %v9471_v29 = vsel %vm133_vm6, %v2003_v17, %v9413_v51  ;;  %v8318_v17 = vld [vmem:[#allocation11 + $0xb0] ss:$12 sps:$4 sm:$0xff]  }
 0x270   :  { %v9450_v36 = vld [vmem:[#allocation2] sm:$0xff]  ;;  %2749 = vmatprep.subr.bf16.mxu0 %v8251_v26  ;;  %7588 = vmatprep.subr.bf16.mxu1 %v8252_v31  ;;  %v2048_v47 = vpack.c.bf16 %v9448_v33, %v2036_v50  ;;  %2902 = vst [vmem:[#allocation2 + $0x40] sm:$0xfe] %v9136_v0  ;;  %v9475_v26 = vpack.c.bf16 %v9439_v20, %v9471_v29  ;;  %v8286_v31 = vld [vmem:[#allocation9 + $0x25c] ss:$12 sps:$4 sm:$0xff]   ;;  %v2021_v20 = vrot.slane %v9419_v62, 1 }
 0x271   :  { %3860 = vst [vmem:[#allocation2] sm:$0xfe] %v1994_v14  ;;  %v9454_v40 = vld [vmem:[#allocation2 + $0x70] sm:$0xff]  ;;  %v8279_v28 = vld [vmem:[#allocation9 + $0x240] ss:$12 sps:$4 sm:$0xff]   ;;  %v9477_v50 = vpack.c.bf16 %v2043_v22, %v2039_v19 }
 0x272   :  { %v9456_v41 = vld [vmem:[#allocation2 + $0x30] sm:$0xff]  ;;  %2735 = vmatmul.mubr.bf16.gmra.mrb[28].mxu0 %v2048_v47  ;;  %2839 = vmatmul.mubr.bf16.gmra.mrb[36].mxu1 %v2048_v47  ;;  %2907 = vst [vmem:[#allocation2 + $0x70] sm:$0x7f] %v9136_v0  ;;  %v8288_v47 = vld [vmem:[#allocation11 + $0x20] ss:$12 sps:$4 sm:$0xff]  }
 0x273   :  { %3865 = vst [vmem:[#allocation2 + $0x30] sm:$0x7f] %v9413_v51  ;;  %2750 = vmatpush1.bf16.msra.mxu0 %v8249_v32  ;;  %7589 = vmatpush3.bf16.msra.mxu1 %v8253_v34  ;;  %v8287_v32 = vld [vmem:[#allocation11 + $0xe0] ss:$12 sps:$4 sm:$0xff]   ;;  %v8284_v34 = vld [vmem:[#allocation9 + $0x258] ss:$12 sps:$4 sm:$0xff]  }
 0x274   :  { %2751 = vmatprep.subr.bf16.mxu0 %v8256_v37  ;;  %7590 = vmatprep.subr.bf16.mxu1 %v8257_v38  ;;  %v8291_v51 = vld [vmem:[#allocation9 + $0x274] ss:$12 sps:$4 sm:$0xff]   ;;  %v8292_v37 = vld [vmem:[#allocation11 + $0xf8] ss:$12 sps:$4 sm:$0xff]   ;;  %v8289_v38 = vld [vmem:[#allocation9 + $0x270] ss:$12 sps:$4 sm:$0xff]  }
 0x275   :  { %2879 = vmatprep.mubr.bf16.mxu1 %v9322_v1  ;;  %2777 = vmatprep.mubr.bf16.mxu0 %v9322_v1  ;;  %v8268_v1 = vld [vmem:[#allocation9 + $0x200] ss:$12 sps:$4 sm:$0xff]   ;;  %v8321_v19 = vld [vmem:[#allocation11 + $0x4] ss:$12 sps:$4 sm:$0xff]   ;;  %v8322_v22 = vld [vmem:[#allocation11 + $0x248] ss:$12 sps:$4 sm:$0xff]  }
 0x277   :  { %2752 = vmatpush1.bf16.msra.mxu0 %v8254_v42  ;;  %7591 = vmatpush3.bf16.msra.mxu1 %v8258_v35  ;;  %v9462_v14 = vld [vmem:[#allocation2 + $0x40] sm:$0xff]  ;;  %v9484_v42 = vsel %vm133_vm6, %v2021_v20, %v9433_v23 }
 0x278   :  { %2753 = vmatprep.subr.bf16.mxu0 %v8261_v39  ;;  %7592 = vmatprep.subr.bf16.mxu1 %v8262_v58  ;;  %3866 = vst [vmem:[#allocation2 + $0x40] sm:$0xfe] %v9424_v3  ;;  %v8274_v3 = vld [vmem:[#allocation9 + $0x228] ss:$12 sps:$4 sm:$0xff]   ;;  %v8293_v35 = vld [vmem:[#allocation11 + $0x38] ss:$12 sps:$4 sm:$0xff]   ;;  %v9488_v39 = vpack.c.bf16 %v9454_v40, %v9484_v42  ;;  %v9502_v20 = vpack.c.bf16 %v9136_v0, %v9462_v14 }
 0x279   :  { %v9465_v54 = vld [vmem:[#allocation2 + $0x70] sm:$0xff]  ;;  %v8296_v58 = vld [vmem:[#allocation9 + $0x28c] ss:$12 sps:$4 sm:$0xff]  }
 0x27a   :  { %3871 = vst [vmem:[#allocation2 + $0x70] sm:$0x7f] %v9433_v23  ;;  %v8302_v23 = vld [vmem:[#allocation11 + $0x128] ss:$12 sps:$4 sm:$0xff]  }
 0x27b   :  { %2754 = vmatpush1.bf16.msra.mxu0 %v8259_v8  ;;  %7593 = vmatpush3.bf16.msra.mxu1 %v8263_v9  ;;  %v8297_v8 = vld [vmem:[#allocation11 + $0x110] ss:$12 sps:$4 sm:$0xff]   ;;  %v8294_v9 = vld [vmem:[#allocation9 + $0x288] ss:$12 sps:$4 sm:$0xff]  }
 0x27c   :  { %2755 = vmatprep.subr.bf16.mxu0 %v8266_v45  ;;  %7594 = vmatprep.subr.bf16.mxu1 %v8267_v46  ;;  %v8298_v45 = vld [vmem:[#allocation11 + $0x50] ss:$12 sps:$4 sm:$0xff]   ;;  %v8303_v40 = vld [vmem:[#allocation11 + $0x68] ss:$12 sps:$4 sm:$0xff]  }
 0x27d   :  { %v8301_v46 = vld [vmem:[#allocation9 + $0x2a4] ss:$12 sps:$4 sm:$0xff]   ;;  %v8334_v14 = vld [vmem:[#allocation11 + $0x48] ss:$12 sps:$4 sm:$0xff]  }
 0x27f   :  { %2756 = vmatpush1.bf16.msra.mxu0 %v8264_v56  ;;  %7595 = vmatpush3.bf16.msra.mxu1 %v8268_v1  ;;  %v8299_v56 = vld [vmem:[#allocation9 + $0x2a0] ss:$12 sps:$4 sm:$0xff]   ;;  %v8306_v1 = vld [vmem:[#allocation9 + $0x2bc] ss:$12 sps:$4 sm:$0xff]  }
 0x280   :  { %2757 = vmatprep.subr.bf16.mxu0 %v8271_v57  ;;  %7596 = vmatprep.subr.bf16.mxu1 %v8272_v59  ;;  %v8307_v57 = vld [vmem:[#allocation11 + $0x140] ss:$12 sps:$4 sm:$0xff]   ;;  %v8304_v59 = vld [vmem:[#allocation9 + $0x2b8] ss:$12 sps:$4 sm:$0xff]  }
 0x283   :  { %2758 = vmatpush1.bf16.msra.mxu0 %v8269_v60  ;;  %7597 = vmatpush3.bf16.msra.mxu1 %v8273_v61  ;;  %v8308_v60 = vld [vmem:[#allocation11 + $0x80] ss:$12 sps:$4 sm:$0xff]  }
 0x284   :  { %2759 = vmatprep.subr.bf16.mxu0 %v8276_v53  ;;  %7598 = vmatprep.subr.bf16.mxu1 %v8277_v63  ;;  %v8311_v61 = vld [vmem:[#allocation9 + $0x2d4] ss:$12 sps:$4 sm:$0xff]   ;;  %v8312_v53 = vld [vmem:[#allocation11 + $0x158] ss:$12 sps:$4 sm:$0xff]   ;;  %v8309_v63 = vld [vmem:[#allocation9 + $0x2d0] ss:$12 sps:$4 sm:$0xff]  }
 0x287   :  { %2760 = vmatpush1.bf16.msra.mxu0 %v8274_v3  ;;  %7599 = vmatpush3.bf16.msra.mxu1 %v8278_v6  ;;  %v8313_v3 = vld [vmem:[#allocation11 + $0x98] ss:$12 sps:$4 sm:$0xff]  }
 0x288   :  { %2761 = vmatprep.subr.bf16.mxu0 %v8281_v13  ;;  %7612 = vmatprep.subr.bf16.mxu1 %v8282_v15  ;;  %v8316_v6 = vld [vmem:[#allocation9 + $0x2ec] ss:$12 sps:$4 sm:$0xff]   ;;  %v8317_v13 = vld [vmem:[#allocation11 + $0x170] ss:$12 sps:$4 sm:$0xff]   ;;  %v8314_v15 = vld [vmem:[#allocation9 + $0x2e8] ss:$12 sps:$4 sm:$0xff]  }
 0x28a   :  { %2880 = vmatmul.mubr.bf16.vlgmr.msra.gmra.mrb[40].mxu1 %v9475_v26 }
 0x28b   :  { %2762 = vmatpush1.bf16.msra.mxu0 %v8279_v28  ;;  %7613 = vmatpush3.bf16.msra.mxu1 %v8283_v30  ;;  %v9494_v28 = vpack.c.bf16 %v9136_v0, %v9450_v36  ;;  %v8319_v30 = vld [vmem:[#allocation11] ss:$12 sps:$4 sm:$0xff]  }
 0x28c   :  { %2763 = vmatprep.subr.bf16.mxu0 %v8286_v31  ;;  %7614 = vmatprep.subr.bf16.mxu1 %v8287_v32  ;;  %v8323_v31 = vld [vmem:[#allocation11 + $0x188] ss:$12 sps:$4 sm:$0xff]  }
 0x28d   :  { %2887 = vmatprep.mubr.bf16.mxu1 %v9477_v50  ;;  %v8326_v32 = vld [vmem:[#allocation11 + $0x1c] ss:$12 sps:$4 sm:$0xff]   ;;  %v8331_v36 = vld [vmem:[#allocation11 + $0x34] ss:$12 sps:$4 sm:$0xff]  }
 0x28f   :  { %2764 = vmatpush1.bf16.msra.mxu0 %v8284_v34  ;;  %7615 = vmatpush3.bf16.msra.mxu1 %v8288_v47  ;;  %v8327_v34 = vld [vmem:[#allocation11 + $0x260] ss:$12 sps:$4 sm:$0xff]   ;;  %v8324_v47 = vld [vmem:[#allocation11 + $0x18] ss:$12 sps:$4 sm:$0xff]  }
 0x290   :  { %2765 = vmatprep.subr.bf16.mxu0 %v8291_v51  ;;  %7616 = vmatprep.subr.bf16.mxu1 %v8292_v37  ;;  %v8328_v51 = vld [vmem:[#allocation11 + $0x1a0] ss:$12 sps:$4 sm:$0xff]   ;;  %v8332_v37 = vld [vmem:[#allocation11 + $0x278] ss:$12 sps:$4 sm:$0xff]  }
 0x292   :  { %2888 = vmatmul.mubr.bf16.gmra.mrb[44].mxu1 %v9488_v39 }
 0x293   :  { %2766 = vmatpush1.bf16.msra.mxu0 %v8289_v38  ;;  %7617 = vmatpush3.bf16.msra.mxu1 %v8293_v35  ;;  %v2911_v38 = vld [vmem:[#allocation2 + $0x18] sm:$0xff] }
 0x294   :  { %2767 = vmatprep.subr.bf16.mxu0 %v8296_v58  ;;  %7618 = vmatprep.subr.bf16.mxu1 %v8297_v8  ;;  %v8329_v35 = vld [vmem:[#allocation11 + $0x30] ss:$12 sps:$4 sm:$0xff]   ;;  %v8333_v58 = vld [vmem:[#allocation11 + $0x1b8] ss:$12 sps:$4 sm:$0xff]  }
 0x295   :  { %3710 = vmatprep.mubr.bf16.mxu1 %v9138_v52  ;;  %v8336_v8 = vld [vmem:[#allocation11 + $0x4c] ss:$12 sps:$4 sm:$0xff]  }
 0x297   :  { %2768 = vmatpush1.bf16.msra.mxu0 %v8294_v9  ;;  %7619 = vmatpush3.bf16.msra.mxu1 %v8298_v45  ;;  %v8337_v9 = vld [vmem:[#allocation11 + $0x290] ss:$12 sps:$4 sm:$0xff]  }
 0x298   :  { %2769 = vmatprep.subr.bf16.mxu0 %v8301_v46  ;;  %7620 = vmatprep.subr.bf16.mxu1 %v8302_v23  ;;  %v8338_v46 = vld [vmem:[#allocation11 + $0x1d0] ss:$12 sps:$4 sm:$0xff]  }
 0x299   :  { %v8341_v23 = vld [vmem:[#allocation11 + $0x64] ss:$12 sps:$4 sm:$0xff]  }
 0x29b   :  { %2770 = vmatpush1.bf16.msra.mxu0 %v8299_v56  ;;  %7621 = vmatpush3.bf16.msra.mxu1 %v8303_v40  ;;  %v8342_v56 = vld [vmem:[#allocation11 + $0x2a8] ss:$12 sps:$4 sm:$0xff]   ;;  %v8339_v40 = vld [vmem:[#allocation11 + $0x60] ss:$12 sps:$4 sm:$0xff]  }
 0x29c   :  { %2771 = vmatprep.subr.bf16.mxu0 %v8306_v1  ;;  %7622 = vmatprep.subr.bf16.mxu1 %v8307_v57  ;;  %v8343_v1 = vld [vmem:[#allocation11 + $0x1e8] ss:$12 sps:$4 sm:$0xff]   ;;  %v8347_v57 = vld [vmem:[#allocation11 + $0x2c0] ss:$12 sps:$4 sm:$0xff]  }
 0x29f   :  { %2772 = vmatpush1.bf16.msra.mxu0 %v8304_v59  ;;  %7623 = vmatpush3.bf16.msra.mxu1 %v8308_v60  ;;  %v8344_v59 = vld [vmem:[#allocation11 + $0x78] ss:$12 sps:$4 sm:$0xff]   ;;  %v8348_v60 = vld [vmem:[#allocation11 + $0x200] ss:$12 sps:$4 sm:$0xff]  }
 0x2a0   :  { %2773 = vmatprep.subr.bf16.mxu0 %v8311_v61  ;;  %7624 = vmatprep.subr.bf16.mxu1 %v8312_v53  ;;  %v8351_v61 = vld [vmem:[#allocation11 + $0x94] ss:$12 sps:$4 sm:$0xff]   ;;  %v8352_v53 = vld [vmem:[#allocation11 + $0x2d8] ss:$12 sps:$4 sm:$0xff]  }
 0x2a3   :  { %2774 = vmatpush1.bf16.msra.mxu0 %v8309_v63  ;;  %7625 = vmatpush3.bf16.msra.mxu1 %v8313_v3  ;;  %v8349_v63 = vld [vmem:[#allocation11 + $0x90] ss:$12 sps:$4 sm:$0xff]   ;;  %v8353_v3 = vld [vmem:[#allocation11 + $0x218] ss:$12 sps:$4 sm:$0xff]  }
 0x2a4   :  { %2775 = vmatprep.subr.bf16.mxu0 %v8316_v6  ;;  %7626 = vmatprep.subr.bf16.mxu1 %v8317_v13  ;;  %v8356_v6 = vld [vmem:[#allocation11 + $0xac] ss:$12 sps:$4 sm:$0xff]   ;;  %v8357_v13 = vld [vmem:[#allocation11 + $0x2f0] ss:$12 sps:$4 sm:$0xff]  }
 0x2a7   :  { %2776 = vmatpush1.bf16.msra.mxu0 %v8314_v15  ;;  %7627 = vmatpush3.bf16.msra.mxu1 %v8318_v17  ;;  %v8354_v15 = vld [vmem:[#allocation11 + $0xa8] ss:$12 sps:$4 sm:$0xff]   ;;  %v8358_v17 = vld [vmem:[#allocation11 + $0x230] ss:$12 sps:$4 sm:$0xff]  }
 0x2a8   :  { %3572 = vmatprep.subr.bf16.mxu0 %v8321_v19  ;;  %7640 = vmatprep.subr.bf16.mxu1 %v8322_v22  ;;  %v8361_v19 = vld [vmem:[#allocation11 + $0xc4] ss:$12 sps:$4 sm:$0xff]  }
 0x2a9   :  { %v8364_v22 = vld [vmem:[#allocation8 + $0x4] ss:$12 sps:$4 sm:$0xff]  }
 0x2aa   :  { %2778 = vmatmul.mubr.bf16.vlgmr.msra.gmra.mrb[24].mxu0 %v9475_v26  ;;  %3711 = vmatmul.mubr.bf16.vlgmr.msra.gmra.mrb[48].mxu1 %v9494_v28  ;;  %v2915_v26 = vld [vmem:[#allocation2 + $0x38] sm:$0xff] }
 0x2ab   :  { %3573 = vmatpush1.bf16.msra.mxu0 %v8319_v30  ;;  %7641 = vmatpush3.bf16.msra.mxu1 %v8323_v31  ;;  %v9504_v45 = vpack.c.bf16 %v2915_v26, %v2911_v38  ;;  %v9512_v30 = vpack.c.bf16 %v9456_v41, %v9136_v0  ;;  %v8359_v31 = vld [vmem:[#allocation11 + $0xc0] ss:$12 sps:$4 sm:$0xff]   ;;  %v9518_v41 = vpack.c.bf16 %v9465_v54, %v9136_v0  ;;  %v8371_v26 = vld [vmem:[#allocation11 + $0xf0] ss:$12 sps:$4 sm:$0xff]  }
 0x2ac   :  { %3574 = vmatprep.subr.bf16.mxu0 %v8326_v32  ;;  %7642 = vmatprep.subr.bf16.mxu1 %v8327_v34  ;;  %v8362_v32 = vld [vmem:[#allocation8] ss:$12 sps:$4 sm:$0xff]   ;;  %v8367_v34 = vld [vmem:[#allocation11 + $0xdc] ss:$12 sps:$4 sm:$0xff]   ;;  %v8388_v0 = vld [vmem:[#allocation8 + $0x64] ss:$12 sps:$4 sm:$0xff]  }
 0x2ad   :  { %2787 = vmatprep.mubr.bf16.mxu0 %v9477_v50  ;;  %3718 = vmatprep.mubr.bf16.mxu1 %v9138_v52  ;;  %v8376_v38 = vld [vmem:[#allocation8 + $0x34] ss:$12 sps:$4 sm:$0xff]  }
 0x2ae   :  { %v8383_v54 = vld [vmem:[#allocation11 + $0x120] ss:$12 sps:$4 sm:$0xff]  }
 0x2af   :  { %3575 = vmatpush1.bf16.msra.mxu0 %v8324_v47  ;;  %7643 = vmatpush3.bf16.msra.mxu1 %v8328_v51  ;;  %v8370_v47 = vld [vmem:[#allocation8 + $0x1c] ss:$12 sps:$4 sm:$0xff]   ;;  %v8365_v51 = vld [vmem:[#allocation11 + $0xd8] ss:$12 sps:$4 sm:$0xff]  }
 0x2b0   :  { %3576 = vmatprep.subr.bf16.mxu0 %v8331_v36  ;;  %7644 = vmatprep.subr.bf16.mxu1 %v8332_v37  ;;  %v8368_v36 = vld [vmem:[#allocation8 + $0x18] ss:$12 sps:$4 sm:$0xff]   ;;  %v8373_v37 = vld [vmem:[#allocation11 + $0xf4] ss:$12 sps:$4 sm:$0xff]  }
 0x2b2   :  { %2788 = vmatmul.mubr.bf16.gmra.mrb[28].mxu0 %v9488_v39  ;;  %3719 = vmatmul.mubr.bf16.gmra.mrb[52].mxu1 %v9502_v20  ;;  %v8346_v39 = vld [vmem:[#allocation11 + $0x7c] ss:$12 sps:$4 sm:$0xff]  }
 0x2b3   :  { %3577 = vmatpush1.bf16.msra.mxu0 %v8329_v35  ;;  %7645 = vmatpush3.bf16.msra.mxu1 %v8333_v58  ;;  %v8374_v35 = vld [vmem:[#allocation8 + $0x30] ss:$12 sps:$4 sm:$0xff]   ;;  %v8379_v58 = vld [vmem:[#allocation11 + $0x10c] ss:$12 sps:$4 sm:$0xff]  }
 0x2b4   :  { %3578 = vmatprep.subr.bf16.mxu0 %v8336_v8  ;;  %7646 = vmatprep.subr.bf16.mxu1 %v8337_v9  ;;  %v8382_v8 = vld [vmem:[#allocation8 + $0x4c] ss:$12 sps:$4 sm:$0xff]   ;;  %v8377_v9 = vld [vmem:[#allocation11 + $0x108] ss:$12 sps:$4 sm:$0xff]  }
 0x2b5   :  { %3759 = vmatprep.mubr.bf16.mxu1 %v9504_v45  ;;  %3604 = vmatprep.mubr.bf16.mxu0 %v9138_v52 }
 0x2b7   :  { %3579 = vmatpush1.bf16.msra.mxu0 %v8334_v14  ;;  %7647 = vmatpush3.bf16.msra.mxu1 %v8338_v46  ;;  %v8380_v14 = vld [vmem:[#allocation8 + $0x48] ss:$12 sps:$4 sm:$0xff]   ;;  %v8385_v46 = vld [vmem:[#allocation11 + $0x124] ss:$12 sps:$4 sm:$0xff]  }
 0x2b8   :  { %3580 = vmatprep.subr.bf16.mxu0 %v8341_v23  ;;  %7648 = vmatprep.subr.bf16.mxu1 %v8342_v56  ;;  %v8386_v23 = vld [vmem:[#allocation8 + $0x60] ss:$12 sps:$4 sm:$0xff]   ;;  %v8391_v56 = vld [vmem:[#allocation11 + $0x13c] ss:$12 sps:$4 sm:$0xff]  }
 0x2bb   :  { %3581 = vmatpush1.bf16.msra.mxu0 %v8339_v40  ;;  %7649 = vmatpush3.bf16.msra.mxu1 %v8343_v1  ;;  %v8394_v40 = vld [vmem:[#allocation8 + $0x7c] ss:$12 sps:$4 sm:$0xff]   ;;  %v8389_v1 = vld [vmem:[#allocation11 + $0x138] ss:$12 sps:$4 sm:$0xff]  }
 0x2bc   :  { %3582 = vmatprep.subr.bf16.mxu0 %v8346_v39  ;;  %7650 = vmatprep.subr.bf16.mxu1 %v8347_v57  ;;  %v8392_v39 = vld [vmem:[#allocation8 + $0x78] ss:$12 sps:$4 sm:$0xff]   ;;  %v8397_v57 = vld [vmem:[#allocation11 + $0x154] ss:$12 sps:$4 sm:$0xff]  }
 0x2bf   :  { %3583 = vmatpush1.bf16.msra.mxu0 %v8344_v59  ;;  %7651 = vmatpush3.bf16.msra.mxu1 %v8348_v60  ;;  %v8400_v59 = vld [vmem:[#allocation8 + $0x94] ss:$12 sps:$4 sm:$0xff]   ;;  %v8395_v60 = vld [vmem:[#allocation11 + $0x150] ss:$12 sps:$4 sm:$0xff]  }
 0x2c0   :  { %3584 = vmatprep.subr.bf16.mxu0 %v8351_v61  ;;  %7652 = vmatprep.subr.bf16.mxu1 %v8352_v53  ;;  %v8398_v61 = vld [vmem:[#allocation8 + $0x90] ss:$12 sps:$4 sm:$0xff]   ;;  %v8403_v53 = vld [vmem:[#allocation11 + $0x16c] ss:$12 sps:$4 sm:$0xff]  }
 0x2c3   :  { %3585 = vmatpush1.bf16.msra.mxu0 %v8349_v63  ;;  %7653 = vmatpush3.bf16.msra.mxu1 %v8353_v3  ;;  %v8406_v63 = vld [vmem:[#allocation8 + $0xac] ss:$12 sps:$4 sm:$0xff]   ;;  %v8401_v3 = vld [vmem:[#allocation11 + $0x168] ss:$12 sps:$4 sm:$0xff]  }
 0x2c4   :  { %3586 = vmatprep.subr.bf16.mxu0 %v8356_v6  ;;  %7654 = vmatprep.subr.bf16.mxu1 %v8357_v13  ;;  %v8404_v6 = vld [vmem:[#allocation8 + $0xa8] ss:$12 sps:$4 sm:$0xff]   ;;  %v8409_v13 = vld [vmem:[#allocation11 + $0x184] ss:$12 sps:$4 sm:$0xff]  }
 0x2c7   :  { %3587 = vmatpush1.bf16.msra.mxu0 %v8354_v15  ;;  %7655 = vmatpush3.bf16.msra.mxu1 %v8358_v17  ;;  %v8412_v15 = vld [vmem:[#allocation8 + $0xc4] ss:$12 sps:$4 sm:$0xff]   ;;  %v8407_v17 = vld [vmem:[#allocation11 + $0x180] ss:$12 sps:$4 sm:$0xff]  }
 0x2c8   :  { %3588 = vmatprep.subr.bf16.mxu0 %v8361_v19  ;;  %4536 = vmatprep.subr.bf16.mxu1 %v8364_v22  ;;  %v8410_v19 = vld [vmem:[#allocation8 + $0xc0] ss:$12 sps:$4 sm:$0xff]   ;;  %v8415_v22 = vld [vmem:[#allocation11 + $0x19c] ss:$12 sps:$4 sm:$0xff]  }
 0x2ca   :  { %3760 = vmatmul.mubr.bf16.vlgmr.msra.gmra.mrb[56].mxu1 %v9512_v30 }
 0x2cb   :  { %3589 = vmatpush1.bf16.msra.mxu0 %v8359_v31  ;;  %4537 = vmatpush1.bf16.msra.mxu1 %v8362_v32  ;;  %v8418_v31 = vld [vmem:[#allocation8 + $0xdc] ss:$12 sps:$4 sm:$0xff]   ;;  %v8413_v32 = vld [vmem:[#allocation11 + $0x198] ss:$12 sps:$4 sm:$0xff]  }
 0x2cc   :  { %3590 = vmatprep.subr.bf16.mxu0 %v8367_v34  ;;  %4538 = vmatprep.subr.bf16.mxu1 %v8370_v47  ;;  %v8416_v34 = vld [vmem:[#allocation8 + $0xd8] ss:$12 sps:$4 sm:$0xff]   ;;  %v8421_v47 = vld [vmem:[#allocation11 + $0x1b4] ss:$12 sps:$4 sm:$0xff]  }
 0x2cd   :  { %3767 = vmatprep.mubr.bf16.mxu1 %v9477_v50 }
 0x2cf   :  { %3591 = vmatpush1.bf16.msra.mxu0 %v8365_v51  ;;  %4539 = vmatpush1.bf16.msra.mxu1 %v8368_v36  ;;  %v8424_v51 = vld [vmem:[#allocation8 + $0xf4] ss:$12 sps:$4 sm:$0xff]   ;;  %v8419_v36 = vld [vmem:[#allocation11 + $0x1b0] ss:$12 sps:$4 sm:$0xff]  }
 0x2d0   :  { %3592 = vmatprep.subr.bf16.mxu0 %v8373_v37  ;;  %4540 = vmatprep.subr.bf16.mxu1 %v8376_v38  ;;  %v8422_v37 = vld [vmem:[#allocation8 + $0xf0] ss:$12 sps:$4 sm:$0xff]   ;;  %v8427_v38 = vld [vmem:[#allocation11 + $0x1cc] ss:$12 sps:$4 sm:$0xff]  }
 0x2d2   :  { %3768 = vmatmul.mubr.bf16.gmra.mrb[60].mxu1 %v9518_v41 }
 0x2d3   :  { %3593 = vmatpush1.bf16.msra.mxu0 %v8371_v26  ;;  %4541 = vmatpush1.bf16.msra.mxu1 %v8374_v35  ;;  %v8430_v26 = vld [vmem:[#allocation8 + $0x10c] ss:$12 sps:$4 sm:$0xff]   ;;  %v8428_v35 = vld [vmem:[#allocation8 + $0x108] ss:$12 sps:$4 sm:$0xff]  }
 0x2d4   :  { %4568 = vmatprep.mubr.bf16.mxu1 %v9410_v48  ;;  %3594 = vmatprep.subr.bf16.mxu0 %v8379_v58  ;;  %v8433_v58 = vld [vmem:[#allocation11 + $0x1e4] ss:$12 sps:$4 sm:$0xff]  }
 0x2d5   :  { %4542 = vmatprep.subr.bf16.mxu1 %v8382_v8  ;;  %v8436_v8 = vld [vmem:[#allocation8 + $0x124] ss:$12 sps:$4 sm:$0xff]  }
 0x2d7   :  { %3595 = vmatpush1.bf16.msra.mxu0 %v8377_v9  ;;  %4543 = vmatpush1.bf16.msra.mxu1 %v8380_v14  ;;  %v8434_v9 = vld [vmem:[#allocation8 + $0x120] ss:$12 sps:$4 sm:$0xff]   ;;  %v8439_v14 = vld [vmem:[#allocation11 + $0x1fc] ss:$12 sps:$4 sm:$0xff]  }
 0x2d8   :  { %3596 = vmatprep.subr.bf16.mxu0 %v8385_v46  ;;  %4544 = vmatprep.subr.bf16.mxu1 %v8388_v0  ;;  %v8442_v46 = vld [vmem:[#allocation8 + $0x13c] ss:$12 sps:$4 sm:$0xff]   ;;  %v8440_v0 = vld [vmem:[#allocation8 + $0x138] ss:$12 sps:$4 sm:$0xff]  }
 0x2db   :  { %3597 = vmatpush1.bf16.msra.mxu0 %v8383_v54  ;;  %4545 = vmatpush1.bf16.msra.mxu1 %v8386_v23  ;;  %v8445_v54 = vld [vmem:[#allocation11 + $0x214] ss:$12 sps:$4 sm:$0xff]  }
 0x2dc   :  { %3598 = vmatprep.subr.bf16.mxu0 %v8391_v56  ;;  %4546 = vmatprep.subr.bf16.mxu1 %v8394_v40  ;;  %v8448_v23 = vld [vmem:[#allocation8 + $0x154] ss:$12 sps:$4 sm:$0xff]   ;;  %v8443_v56 = vld [vmem:[#allocation11 + $0x210] ss:$12 sps:$4 sm:$0xff]  }
 0x2dd   :  { %v8446_v40 = vld [vmem:[#allocation8 + $0x150] ss:$12 sps:$4 sm:$0xff]  }
 0x2df   :  { %3599 = vmatpush1.bf16.msra.mxu0 %v8389_v1  ;;  %4547 = vmatpush1.bf16.msra.mxu1 %v8392_v39  ;;  %v8451_v1 = vld [vmem:[#allocation11 + $0x22c] ss:$12 sps:$4 sm:$0xff]  }
 0x2e0   :  { %3600 = vmatprep.subr.bf16.mxu0 %v8397_v57  ;;  %4548 = vmatprep.subr.bf16.mxu1 %v8400_v59  ;;  %v8454_v39 = vld [vmem:[#allocation8 + $0x16c] ss:$12 sps:$4 sm:$0xff]   ;;  %v8449_v57 = vld [vmem:[#allocation11 + $0x228] ss:$12 sps:$4 sm:$0xff]  }
 0x2e1   :  { %v8452_v59 = vld [vmem:[#allocation8 + $0x168] ss:$12 sps:$4 sm:$0xff]  }
 0x2e3   :  { %3601 = vmatpush1.bf16.msra.mxu0 %v8395_v60  ;;  %4549 = vmatpush1.bf16.msra.mxu1 %v8398_v61  ;;  %v8457_v60 = vld [vmem:[#allocation11 + $0x244] ss:$12 sps:$4 sm:$0xff]  }
 0x2e4   :  { %3602 = vmatprep.subr.bf16.mxu0 %v8403_v53  ;;  %4550 = vmatprep.subr.bf16.mxu1 %v8406_v63  ;;  %v8460_v61 = vld [vmem:[#allocation8 + $0x184] ss:$12 sps:$4 sm:$0xff]   ;;  %v8455_v63 = vld [vmem:[#allocation11 + $0x240] ss:$12 sps:$4 sm:$0xff]  }
 0x2e5   :  { %v3872_v53 = vld [vmem:[#allocation2] sm:$0xff] }
 0x2e7   :  { %3603 = vmatpush1.bf16.msra.mxu0 %v8401_v3  ;;  %4551 = vmatpush1.bf16.msra.mxu1 %v8404_v6  ;;  %v9527_v3 = vpack.c.bf16 %v9427_v10, %v3872_v53  ;;  %v8458_v6 = vld [vmem:[#allocation8 + $0x180] ss:$12 sps:$4 sm:$0xff]   ;;  %v8467_v10 = vld [vmem:[#allocation11 + $0x270] ss:$12 sps:$4 sm:$0xff]  }
 0x2e8   :  { %3625 = vmatprep.subr.bf16.mxu0 %v8409_v13  ;;  %4552 = vmatprep.subr.bf16.mxu1 %v8412_v15  ;;  %v8463_v13 = vld [vmem:[#allocation11 + $0x25c] ss:$12 sps:$4 sm:$0xff]   ;;  %v8512_v53 = vld [vmem:[#allocation8 + $0x20] ss:$12 sps:$4 sm:$0xff]  }
 0x2e9   :  { %v8466_v15 = vld [vmem:[#allocation8 + $0x19c] ss:$12 sps:$4 sm:$0xff]  }
 0x2ea   :  { %3605 = vmatmul.mubr.bf16.vlgmr.msra.gmra.mrb[24].mxu0 %v9494_v28  ;;  %v8425_v28 = vld [vmem:[#allocation11 + $0x1c8] ss:$12 sps:$4 sm:$0xff]  }
 0x2eb   :  { %3626 = vmatpush1.bf16.msra.mxu0 %v8407_v17  ;;  %4553 = vmatpush1.bf16.msra.mxu1 %v8410_v19  ;;  %v8461_v17 = vld [vmem:[#allocation11 + $0x258] ss:$12 sps:$4 sm:$0xff]  }
 0x2ec   :  { %3627 = vmatprep.subr.bf16.mxu0 %v8415_v22  ;;  %4554 = vmatprep.subr.bf16.mxu1 %v8418_v31  ;;  %v8464_v19 = vld [vmem:[#allocation8 + $0x198] ss:$12 sps:$4 sm:$0xff]   ;;  %v8469_v22 = vld [vmem:[#allocation11 + $0x274] ss:$12 sps:$4 sm:$0xff]  }
 0x2ed   :  { %3614 = vmatprep.mubr.bf16.mxu0 %v9138_v52  ;;  %v8431_v52 = vld [vmem:[#allocation11 + $0x1e0] ss:$12 sps:$4 sm:$0xff]  }
 0x2ee   :  { %v3880_v31 = vld [vmem:[#allocation2 + $0x40] sm:$0xff] }
 0x2ef   :  { %3628 = vmatpush1.bf16.msra.mxu0 %v8413_v32  ;;  %4555 = vmatpush1.bf16.msra.mxu1 %v8416_v34  ;;  %v8472_v32 = vld [vmem:[#allocation8 + $0x1b4] ss:$12 sps:$4 sm:$0xff]   ;;  %v9532_v34 = vpack.c.bf16 %v9448_v33, %v3880_v31 }
 0x2f0   :  { %3629 = vmatprep.subr.bf16.mxu0 %v8421_v47  ;;  %4556 = vmatprep.subr.bf16.mxu1 %v8424_v51  ;;  %v8470_v47 = vld [vmem:[#allocation8 + $0x1b0] ss:$12 sps:$4 sm:$0xff]   ;;  %v8475_v51 = vld [vmem:[#allocation11 + $0x28c] ss:$12 sps:$4 sm:$0xff]   ;;  %v8526_v31 = vld [vmem:[#allocation8 + $0x128] ss:$12 sps:$4 sm:$0xff]  }
 0x2f1   :  { %v8482_v33 = vld [vmem:[#allocation8 + $0x1e0] ss:$12 sps:$4 sm:$0xff]  }
 0x2f2   :  { %3615 = vmatmul.mubr.bf16.gmra.mrb[28].mxu0 %v9502_v20  ;;  %v8437_v20 = vld [vmem:[#allocation11 + $0x1f8] ss:$12 sps:$4 sm:$0xff]  }
 0x2f3   :  { %3630 = vmatpush1.bf16.msra.mxu0 %v8419_v36  ;;  %4557 = vmatpush1.bf16.msra.mxu1 %v8422_v37  ;;  %v8478_v36 = vld [vmem:[#allocation8 + $0x1cc] ss:$12 sps:$4 sm:$0xff]   ;;  %v8473_v37 = vld [vmem:[#allocation11 + $0x288] ss:$12 sps:$4 sm:$0xff]  }
 0x2f4   :  { %3631 = vmatprep.subr.bf16.mxu0 %v8427_v38  ;;  %4558 = vmatprep.subr.bf16.mxu1 %v8430_v26  ;;  %v8476_v38 = vld [vmem:[#allocation8 + $0x1c8] ss:$12 sps:$4 sm:$0xff]   ;;  %v8481_v26 = vld [vmem:[#allocation11 + $0x2a4] ss:$12 sps:$4 sm:$0xff]  }
 0x2f5   :  { %3657 = vmatprep.mubr.bf16.mxu0 %v9504_v45 }
 0x2f7   :  { %3632 = vmatpush1.bf16.msra.mxu0 %v8425_v28  ;;  %4559 = vmatpush1.bf16.msra.mxu1 %v8428_v35  ;;  %v8484_v28 = vld [vmem:[#allocation8 + $0x1e4] ss:$12 sps:$4 sm:$0xff]   ;;  %v8479_v35 = vld [vmem:[#allocation11 + $0x2a0] ss:$12 sps:$4 sm:$0xff]  }
 0x2f8   :  { %3633 = vmatprep.subr.bf16.mxu0 %v8433_v58  ;;  %4560 = vmatprep.subr.bf16.mxu1 %v8436_v8  ;;  %v8487_v58 = vld [vmem:[#allocation11 + $0x2bc] ss:$12 sps:$4 sm:$0xff]  }
 0x2f9   :  { %v8490_v8 = vld [vmem:[#allocation8 + $0x1fc] ss:$12 sps:$4 sm:$0xff]  }
 0x2fb   :  { %3634 = vmatpush1.bf16.msra.mxu0 %v8431_v52  ;;  %4561 = vmatpush1.bf16.msra.mxu1 %v8434_v9  ;;  %v8485_v52 = vld [vmem:[#allocation11 + $0x2b8] ss:$12 sps:$4 sm:$0xff]  }
 0x2fc   :  { %3635 = vmatprep.subr.bf16.mxu0 %v8439_v14  ;;  %4562 = vmatprep.subr.bf16.mxu1 %v8442_v46  ;;  %v8488_v9 = vld [vmem:[#allocation8 + $0x1f8] ss:$12 sps:$4 sm:$0xff]   ;;  %v8493_v14 = vld [vmem:[#allocation11 + $0x2d4] ss:$12 sps:$4 sm:$0xff]  }
 0x2fd   :  { %v8496_v46 = vld [vmem:[#allocation8 + $0x214] ss:$12 sps:$4 sm:$0xff]  }
 0x2ff   :  { %3636 = vmatpush1.bf16.msra.mxu0 %v8437_v20  ;;  %4563 = vmatpush1.bf16.msra.mxu1 %v8440_v0  ;;  %v8491_v20 = vld [vmem:[#allocation11 + $0x2d0] ss:$12 sps:$4 sm:$0xff]  }
 0x300   :  { %3637 = vmatprep.subr.bf16.mxu0 %v8445_v54  ;;  %4564 = vmatprep.subr.bf16.mxu1 %v8448_v23  ;;  %v8494_v0 = vld [vmem:[#allocation8 + $0x210] ss:$12 sps:$4 sm:$0xff]   ;;  %v8499_v54 = vld [vmem:[#allocation11 + $0x2ec] ss:$12 sps:$4 sm:$0xff]  }
 0x301   :  { %v8502_v23 = vld [vmem:[#allocation8 + $0x22c] ss:$12 sps:$4 sm:$0xff]  }
 0x303   :  { %3638 = vmatpush1.bf16.msra.mxu0 %v8443_v56  ;;  %4565 = vmatpush1.bf16.msra.mxu1 %v8446_v40  ;;  %v8497_v56 = vld [vmem:[#allocation11 + $0x2e8] ss:$12 sps:$4 sm:$0xff]  }
 0x304   :  { %3639 = vmatprep.subr.bf16.mxu0 %v8451_v1  ;;  %4566 = vmatprep.subr.bf16.mxu1 %v8454_v39  ;;  %v8500_v40 = vld [vmem:[#allocation8 + $0x228] ss:$12 sps:$4 sm:$0xff]   ;;  %v8505_v39 = vld [vmem:[#allocation8 + $0x244] ss:$12 sps:$4 sm:$0xff]  }
 0x305   :  { %v8506_v1 = vld [vmem:[#allocation8 + $0xc8] ss:$12 sps:$4 sm:$0xff]  }
 0x307   :  { %3640 = vmatpush1.bf16.msra.mxu0 %v8449_v57  ;;  %4567 = vmatpush1.bf16.msra.mxu1 %v8452_v59  ;;  %v8507_v57 = vld [vmem:[#allocation8 + $0x8] ss:$12 sps:$4 sm:$0xff]   ;;  %v8503_v59 = vld [vmem:[#allocation8 + $0x240] ss:$12 sps:$4 sm:$0xff]  }
 0x308   :  { %3641 = vmatprep.subr.bf16.mxu0 %v8457_v60  ;;  %4589 = vmatprep.subr.bf16.mxu1 %v8460_v61  ;;  %v8511_v60 = vld [vmem:[#allocation8 + $0xe0] ss:$12 sps:$4 sm:$0xff]   ;;  %v8510_v61 = vld [vmem:[#allocation8 + $0x25c] ss:$12 sps:$4 sm:$0xff]  }
 0x30a   :  { %4569 = vmatmul.mubr.bf16.vlgmr.msra.gmra.mrb[64].mxu1 %v9527_v3 }
 0x30b   :  { %3642 = vmatpush1.bf16.msra.mxu0 %v8455_v63  ;;  %4578 = vmatprep.mubr.bf16.mxu1 %v9437_v25  ;;  %v8508_v63 = vld [vmem:[#allocation8 + $0x258] ss:$12 sps:$4 sm:$0xff]  }
 0x30c   :  { %4590 = vmatpush1.bf16.msra.mxu1 %v8458_v6  ;;  %3643 = vmatprep.subr.bf16.mxu0 %v8463_v13  ;;  %v8516_v6 = vld [vmem:[#allocation8 + $0xf8] ss:$12 sps:$4 sm:$0xff]   ;;  %v8515_v13 = vld [vmem:[#allocation8 + $0x274] ss:$12 sps:$4 sm:$0xff]  }
 0x30d   :  { %4591 = vmatprep.subr.bf16.mxu1 %v8466_v15  ;;  %v8517_v15 = vld [vmem:[#allocation8 + $0x38] ss:$12 sps:$4 sm:$0xff]  }
 0x30f   :  { %3644 = vmatpush1.bf16.msra.mxu0 %v8461_v17  ;;  %v8513_v17 = vld [vmem:[#allocation8 + $0x270] ss:$12 sps:$4 sm:$0xff]  }
 0x310   :  { %4592 = vmatpush1.bf16.msra.mxu1 %v8464_v19  ;;  %3645 = vmatprep.subr.bf16.mxu0 %v8469_v22  ;;  %v8521_v19 = vld [vmem:[#allocation8 + $0x110] ss:$12 sps:$4 sm:$0xff]   ;;  %v8520_v22 = vld [vmem:[#allocation8 + $0x28c] ss:$12 sps:$4 sm:$0xff]  }
 0x311   :  { %4593 = vmatprep.subr.bf16.mxu1 %v8472_v32  ;;  %v8525_v32 = vld [vmem:[#allocation8 + $0x2a4] ss:$12 sps:$4 sm:$0xff]  }
 0x312   :  { %4579 = vmatmul.mubr.bf16.gmra.mrb[68].mxu1 %v9532_v34 }
 0x313   :  { %3646 = vmatpush1.bf16.msra.mxu0 %v8467_v10  ;;  %4621 = vmatprep.mubr.bf16.mxu1 %v9504_v45  ;;  %v8527_v10 = vld [vmem:[#allocation8 + $0x68] ss:$12 sps:$4 sm:$0xff]  }
 0x314   :  { %4594 = vmatpush1.bf16.msra.mxu1 %v8470_v47  ;;  %3647 = vmatprep.subr.bf16.mxu0 %v8475_v51  ;;  %v8523_v47 = vld [vmem:[#allocation8 + $0x2a0] ss:$12 sps:$4 sm:$0xff]  }
 0x315   :  { %4595 = vmatprep.subr.bf16.mxu1 %v8478_v36  ;;  %v8531_v51 = vld [vmem:[#allocation8 + $0x140] ss:$12 sps:$4 sm:$0xff]   ;;  %v8530_v36 = vld [vmem:[#allocation8 + $0x2bc] ss:$12 sps:$4 sm:$0xff]  }
 0x317   :  { %3648 = vmatpush1.bf16.msra.mxu0 %v8473_v37  ;;  %v8528_v37 = vld [vmem:[#allocation8 + $0x2b8] ss:$12 sps:$4 sm:$0xff]  }
 0x318   :  { %4596 = vmatpush1.bf16.msra.mxu1 %v8476_v38  ;;  %3649 = vmatprep.subr.bf16.mxu0 %v8481_v26  ;;  %v8535_v26 = vld [vmem:[#allocation8 + $0x2d4] ss:$12 sps:$4 sm:$0xff]  }
 0x319   :  { %4597 = vmatprep.subr.bf16.mxu1 %v8484_v28 }
 0x31b   :  { %3650 = vmatpush1.bf16.msra.mxu0 %v8479_v35 }
 0x31c   :  { %4598 = vmatpush1.bf16.msra.mxu1 %v8482_v33  ;;  %3651 = vmatprep.subr.bf16.mxu0 %v8487_v58  ;;  %v8537_v58 = vld [vmem:[#allocation8 + $0x98] ss:$12 sps:$4 sm:$0xff]  }
 0x31d   :  { %4599 = vmatprep.subr.bf16.mxu1 %v8490_v8 }
 0x31f   :  { %3652 = vmatpush1.bf16.msra.mxu0 %v8485_v52  ;;  %v8533_v52 = vld [vmem:[#allocation8 + $0x2d0] ss:$12 sps:$4 sm:$0xff]  }
 0x320   :  { %4600 = vmatpush1.bf16.msra.mxu1 %v8488_v9  ;;  %3653 = vmatprep.subr.bf16.mxu0 %v8493_v14  ;;  %v8541_v9 = vld [vmem:[#allocation8 + $0x170] ss:$12 sps:$4 sm:$0xff]  }
 0x321   :  { %4601 = vmatprep.subr.bf16.mxu1 %v8496_v46  ;;  %v8540_v46 = vld [vmem:[#allocation8 + $0x2ec] ss:$12 sps:$4 sm:$0xff]  }
 0x323   :  { %3654 = vmatpush1.bf16.msra.mxu0 %v8491_v20  ;;  %v8542_v20 = vld [vmem:[#allocation8 + $0xb0] ss:$12 sps:$4 sm:$0xff]  }
 0x324   :  { %4602 = vmatpush1.bf16.msra.mxu1 %v8494_v0  ;;  %3655 = vmatprep.subr.bf16.mxu0 %v8499_v54  ;;  %v8538_v0 = vld [vmem:[#allocation8 + $0x2e8] ss:$12 sps:$4 sm:$0xff]  }
 0x325   :  { %4603 = vmatprep.subr.bf16.mxu1 %v8502_v23  ;;  %v8543_v23 = vld [vmem:[#allocation8 + $0x248] ss:$12 sps:$4 sm:$0xff]  }
 0x327   :  { %3656 = vmatpush1.bf16.msra.mxu0 %v8497_v56  ;;  %v3883_v56 = vld [vmem:[#allocation2 + $0x58] sm:$0xff] }
 0x328   :  { %4604 = vmatpush1.bf16.msra.mxu1 %v8500_v40  ;;  %7668 = vmatprep.subr.bf16.mxu0 %v8506_v1  ;;  %v3887_v40 = vld [vmem:[#allocation2 + $0x78] sm:$0xff] }
 0x329   :  { %4605 = vmatprep.subr.bf16.mxu1 %v8505_v39  ;;  %v3878_v39 = vld [vmem:[#allocation2 + $0x30] sm:$0xff] }
 0x32a   :  { %3658 = vmatmul.mubr.bf16.vlgmr.msra.gmra.mrb[24].mxu0 %v9512_v30  ;;  %v8518_v30 = vld [vmem:[#allocation8 + $0x288] ss:$12 sps:$4 sm:$0xff]  }
 0x32b   :  { %7669 = vmatpush3.bf16.msra.mxu0 %v8507_v57  ;;  %3667 = vmatprep.mubr.bf16.mxu0 %v9477_v50  ;;  %v8522_v50 = vld [vmem:[#allocation8 + $0x50] ss:$12 sps:$4 sm:$0xff]  }
 0x32c   :  { %4606 = vmatpush1.bf16.msra.mxu1 %v8503_v59  ;;  %7670 = vmatprep.subr.bf16.mxu0 %v8511_v60 }
 0x32d   :  { %4607 = vmatprep.subr.bf16.mxu1 %v8510_v61  ;;  %v8544_v61 = vld [vmem:[#allocation8 + $0x188] ss:$12 sps:$4 sm:$0xff]  }
 0x32f   :  { %7671 = vmatpush3.bf16.msra.mxu0 %v8512_v53  ;;  %v3895_v53 = vpack.c.bf16 %v3887_v40, %v3883_v56 }
 0x330   :  { %4608 = vmatpush1.bf16.msra.mxu1 %v8508_v63  ;;  %7672 = vmatprep.subr.bf16.mxu0 %v8516_v6  ;;  %v3890_v6 = vpack.c.bf16 %v3878_v39, %v9471_v29  ;;  %v8550_v29 = vld [vmem:[#allocation8 + $0x1d0] ss:$12 sps:$4 sm:$0xff]  }
 0x331   :  { %4609 = vmatprep.subr.bf16.mxu1 %v8515_v13  ;;  %v8545_v13 = vld [vmem:[#allocation8 + $0x260] ss:$12 sps:$4 sm:$0xff]  }
 0x332   :  { %3668 = vmatmul.mubr.bf16.gmra.mrb[28].mxu0 %v9518_v41  ;;  %v8532_v41 = vld [vmem:[#allocation8 + $0x80] ss:$12 sps:$4 sm:$0xff]  }
 0x333   :  { %7673 = vmatpush3.bf16.msra.mxu0 %v8517_v15  ;;  %4674 = vmatprep.mubr.bf16.mxu0 %v9410_v48  ;;  %v8536_v48 = vld [vmem:[#allocation8 + $0x158] ss:$12 sps:$4 sm:$0xff]   ;;  %v8546_v15 = vld [vmem:[#allocation8 + $0x1a0] ss:$12 sps:$4 sm:$0xff]  }
 0x334   :  { %4610 = vmatpush1.bf16.msra.mxu1 %v8513_v17  ;;  %7674 = vmatprep.subr.bf16.mxu0 %v8521_v19  ;;  %v8547_v17 = vld [vmem:[#allocation8 + $0x278] ss:$12 sps:$4 sm:$0xff]   ;;  %v3886_v19 = vld [vmem:[#allocation2 + $0x70] sm:$0xff] }
 0x335   :  { %4611 = vmatprep.subr.bf16.mxu1 %v8520_v22  ;;  %v8548_v22 = vld [vmem:[#allocation8 + $0x1b8] ss:$12 sps:$4 sm:$0xff]  }
 0x337   :  { %7675 = vmatpush3.bf16.msra.mxu0 %v8522_v50  ;;  %v3894_v50 = vpack.c.bf16 %v3886_v19, %v9484_v42  ;;  %v8555_v42 = vld [vmem:[#allocation8 + $0x2d8] ss:$12 sps:$4 sm:$0xff]  }
 0x338   :  { %4612 = vmatpush1.bf16.msra.mxu1 %v8518_v30  ;;  %7676 = vmatprep.subr.bf16.mxu0 %v8526_v31  ;;  %v8549_v30 = vld [vmem:[#allocation8 + $0x290] ss:$12 sps:$4 sm:$0xff]   ;;  %v8553_v31 = vld [vmem:[#allocation8 + $0x2c0] ss:$12 sps:$4 sm:$0xff]  }
 0x339   :  { %4613 = vmatprep.subr.bf16.mxu1 %v8525_v32  ;;  %v8554_v32 = vld [vmem:[#allocation8 + $0x200] ss:$12 sps:$4 sm:$0xff]   ;;  %v8561_v19 = vld [vmem:[#allocation9 + $0x4] ss:$12 sps:$4 sm:$0xff]  }
 0x33b   :  { %7677 = vmatpush3.bf16.msra.mxu0 %v8527_v10 }
 0x33c   :  { %4614 = vmatpush1.bf16.msra.mxu1 %v8523_v47  ;;  %7678 = vmatprep.subr.bf16.mxu0 %v8531_v51 }
 0x33d   :  { %v7572_v38 = vpop.f32.mrb[32].mxu1  ;;  %4615 = vmatprep.subr.bf16.mxu1 %v8530_v36 }
 0x33e   :  { %v7573_v28 = vpop.f32.mrb[33].mxu1 }
 0x33f   :  { %v9540_v35 = vadd.f32 %v7573_v28, %v7572_v38  ;;  %7679 = vmatpush3.bf16.msra.mxu0 %v8532_v41  ;;  %v7575_v33 = vpop.f32.mrb[34].mxu1  ;;  %v8556_v41 = vld [vmem:[#allocation8 + $0x218] ss:$12 sps:$4 sm:$0xff]  }
 0x340   :  { %4616 = vmatpush1.bf16.msra.mxu1 %v8528_v37  ;;  %v7576_v8 = vpop.f32.mrb[35].mxu1  ;;  %7680 = vmatprep.subr.bf16.mxu0 %v8536_v48  ;;  %v8557_v48 = vld [vmem:[#allocation8 + $0x2f0] ss:$12 sps:$4 sm:$0xff]  }
 0x341   :  { %v9542_v14 = vadd.f32 %v7576_v8, %v7575_v33  ;;  %4617 = vmatprep.subr.bf16.mxu1 %v8535_v26  ;;  %v8558_v26 = vld [vmem:[#allocation8 + $0x230] ss:$12 sps:$4 sm:$0xff]  }
 0x343   :  { %7681 = vmatpush3.bf16.msra.mxu0 %v8537_v58 }
 0x344   :  { %4618 = vmatpush1.bf16.msra.mxu1 %v8533_v52  ;;  %7682 = vmatprep.subr.bf16.mxu0 %v8541_v9 }
 0x345   :  { %v7578_v54 = vpop.f32.mrb[36].mxu1  ;;  %4619 = vmatprep.subr.bf16.mxu1 %v8540_v46 }
 0x346   :  { %v7579_v1 = vpop.f32.mrb[37].mxu1 }
 0x347   :  { %v7580_v57 = vadd.f32 %v7579_v1, %v7578_v54  ;;  %7683 = vmatpush3.bf16.msra.mxu0 %v8542_v20  ;;  %v7581_v59 = vpop.f32.mrb[38].mxu1 }
 0x348   :  { %4620 = vmatpush1.bf16.msra.mxu1 %v8538_v0  ;;  %v7582_v60 = vpop.f32.mrb[39].mxu1  ;;  %5524 = vmatprep.subr.bf16.mxu0 %v8561_v19  ;;  %v8603_v19 = vld [vmem:[#allocation9 + $0x120] ss:$12 sps:$4 sm:$0xff]  }
 0x349   :  { %v7583_v63 = vadd.f32 %v7582_v60, %v7581_v59  ;;  %7696 = vmatprep.subr.bf16.mxu1 %v8543_v23 }
 0x34a   :  { %4675 = vmatmul.mubr.bf16.vlgmr.msra.gmra.mrb[32].mxu0 %v9527_v3  ;;  %v8552_v3 = vld [vmem:[#allocation8 + $0x1e8] ss:$12 sps:$4 sm:$0xff]  }
 0x34b   :  { %4622 = vmatmul.mubr.bf16.vlgmr.msra.gmra.mrb[64].mxu1 %v3890_v6  ;;  %4682 = vmatprep.mubr.bf16.mxu0 %v9437_v25  ;;  %v8551_v25 = vld [vmem:[#allocation8 + $0x2a8] ss:$12 sps:$4 sm:$0xff]  }
 0x34c   :  { %7697 = vmatpush3.bf16.msra.mxu1 %v8544_v61  ;;  %4631 = vmatprep.mubr.bf16.mxu1 %v3895_v53 }
 0x34d   :  { %7698 = vmatprep.subr.bf16.mxu1 %v8545_v13 }
 0x350   :  { %7699 = vmatpush3.bf16.msra.mxu1 %v8546_v15 }
 0x351   :  { %7700 = vmatprep.subr.bf16.mxu1 %v8547_v17 }
 0x352   :  { %4683 = vmatmul.mubr.bf16.gmra.mrb[36].mxu0 %v9532_v34 }
 0x353   :  { %4632 = vmatmul.mubr.bf16.gmra.mrb[68].mxu1 %v3894_v50 }
 0x354   :  { %7701 = vmatpush3.bf16.msra.mxu1 %v8548_v22  ;;  %4723 = vmatprep.mubr.bf16.mxu1 %v9504_v45 }
 0x355   :  { %7702 = vmatprep.subr.bf16.mxu1 %v8549_v30 }
 0x358   :  { %7703 = vmatpush3.bf16.msra.mxu1 %v8550_v29 }
 0x359   :  { %7704 = vmatprep.subr.bf16.mxu1 %v8551_v25  ;;  %v8564_v25 = vld [vmem:[#allocation9 + $0x1c] ss:$12 sps:$4 sm:$0xff]  }
 0x35c   :  { %7705 = vmatpush3.bf16.msra.mxu1 %v8552_v3 }
 0x35d   :  { %v7600_v10 = vpop.f32.mrb[40].mxu1  ;;  %7706 = vmatprep.subr.bf16.mxu1 %v8553_v31 }
 0x35e   :  { %v7601_v47 = vpop.f32.mrb[41].mxu1 }
 0x35f   :  { %v7602_v51 = vadd.f32 %v7601_v47, %v7600_v10  ;;  %v7603_v36 = vpop.f32.mrb[42].mxu1 }
 0x360   :  { %7707 = vmatpush3.bf16.msra.mxu1 %v8554_v32  ;;  %v7604_v34 = vpop.f32.mrb[43].mxu1  ;;  %v8562_v32 = vld [vmem:[#allocation9 + $0x18] ss:$12 sps:$4 sm:$0xff]  }
 0x361   :  { %v9551_v37 = vadd.f32 %v7602_v51, %v9540_v35  ;;  %v7605_v45 = vadd.f32 %v7604_v34, %v7603_v36  ;;  %7708 = vmatprep.subr.bf16.mxu1 %v8555_v42  ;;  %v8567_v51 = vld [vmem:[#allocation9 + $0x34] ss:$12 sps:$4 sm:$0xff]   ;;  %v8565_v34 = vld [vmem:[#allocation9 + $0x30] ss:$12 sps:$4 sm:$0xff]  }
 0x363   :  { %v9554_v38 = vadd.f32 %v7605_v45, %v9542_v14  ;;  %v8568_v45 = vld [vmem:[#allocation9 + $0x48] ss:$12 sps:$4 sm:$0xff]  }
 0x364   :  { %7709 = vmatpush3.bf16.msra.mxu1 %v8556_v41  ;;  %v8570_v41 = vld [vmem:[#allocation9 + $0x4c] ss:$12 sps:$4 sm:$0xff]  }
 0x365   :  { %v7606_v28 = vpop.f32.mrb[44].mxu1  ;;  %7710 = vmatprep.subr.bf16.mxu1 %v8557_v48  ;;  %v8573_v48 = vld [vmem:[#allocation9 + $0x64] ss:$12 sps:$4 sm:$0xff]  }
 0x366   :  { %v7607_v33 = vpop.f32.mrb[45].mxu1 }
 0x367   :  { %v7608_v58 = vadd.f32 %v7607_v33, %v7606_v28  ;;  %v7609_v8 = vpop.f32.mrb[46].mxu1  ;;  %v8576_v28 = vld [vmem:[#allocation9 + $0x7c] ss:$12 sps:$4 sm:$0xff]   ;;  %v8574_v33 = vld [vmem:[#allocation9 + $0x78] ss:$12 sps:$4 sm:$0xff]  }
 0x368   :  { %7711 = vmatpush3.bf16.msra.mxu1 %v8558_v26  ;;  %v7610_v52 = vpop.f32.mrb[47].mxu1  ;;  %v8571_v26 = vld [vmem:[#allocation9 + $0x60] ss:$12 sps:$4 sm:$0xff]  }
 0x369   :  { %v9556_v9 = vadd.f32 %v7608_v58, %v7580_v57  ;;  %v7611_v46 = vadd.f32 %v7610_v52, %v7609_v8  ;;  %v8579_v58 = vld [vmem:[#allocation9 + $0x94] ss:$12 sps:$4 sm:$0xff]   ;;  %v8577_v8 = vld [vmem:[#allocation9 + $0x90] ss:$12 sps:$4 sm:$0xff]   ;;  %v8582_v52 = vld [vmem:[#allocation9 + $0xac] ss:$12 sps:$4 sm:$0xff]  }
 0x36b   :  { %v9558_v35 = vadd.f32 %v7611_v46, %v7583_v63  ;;  %4724 = vmatmul.mubr.bf16.vlgmr.msra.gmra.mrb[72].mxu1 %v3890_v6  ;;  %v8580_v46 = vld [vmem:[#allocation9 + $0xa8] ss:$12 sps:$4 sm:$0xff]  }
 0x36c   :  { %4731 = vmatprep.mubr.bf16.mxu1 %v3895_v53 }
 0x373   :  { %4732 = vmatmul.mubr.bf16.gmra.mrb[76].mxu1 %v3894_v50  ;;  %v8559_v50 = vld [vmem:[#allocation9] ss:$12 sps:$4 sm:$0xff]  }
 0x374   :  { %5525 = vmatpush1.bf16.msra.mxu0 %v8559_v50  ;;  %v8607_v50 = vld [vmem:[#allocation9 + $0x68] ss:$12 sps:$4 sm:$0xff]  }
 0x375   :  { %5526 = vmatprep.subr.bf16.mxu0 %v8564_v25  ;;  %v8608_v25 = vld [vmem:[#allocation9 + $0x138] ss:$12 sps:$4 sm:$0xff]  }
 0x378   :  { %5527 = vmatpush1.bf16.msra.mxu0 %v8562_v32  ;;  %v8616_v32 = vld [vmem:[#allocation9 + $0x158] ss:$12 sps:$4 sm:$0xff]  }
 0x379   :  { %5528 = vmatprep.subr.bf16.mxu0 %v8567_v51  ;;  %v8620_v51 = vld [vmem:[#allocation9 + $0x16c] ss:$12 sps:$4 sm:$0xff]  }
 0x37c   :  { %5529 = vmatpush1.bf16.msra.mxu0 %v8565_v34  ;;  %v8621_v34 = vld [vmem:[#allocation9 + $0x170] ss:$12 sps:$4 sm:$0xff]  }
 0x37d   :  { %v7628_v20 = vpop.f32.mrb[48].mxu1  ;;  %5530 = vmatprep.subr.bf16.mxu0 %v8570_v41  ;;  %v8618_v41 = vld [vmem:[#allocation9 + $0x168] ss:$12 sps:$4 sm:$0xff]  }
 0x37e   :  { %v7629_v14 = vpop.f32.mrb[49].mxu1 }
 0x37f   :  { %v7630_v0 = vadd.f32 %v7629_v14, %v7628_v20  ;;  %v7631_v54 = vpop.f32.mrb[50].mxu1  ;;  %v8585_v20 = vld [vmem:[#allocation9 + $0xc4] ss:$12 sps:$4 sm:$0xff]   ;;  %v8586_v14 = vld [vmem:[#allocation9 + $0xc8] ss:$12 sps:$4 sm:$0xff]  }
 0x380   :  { %v7632_v23 = vpop.f32.mrb[51].mxu1  ;;  %5531 = vmatpush1.bf16.msra.mxu0 %v8568_v45  ;;  %7724 = vmatprep.subr.bf16.mxu1 %v8586_v14  ;;  %v8622_v45 = vld [vmem:[#allocation9 + $0xb0] ss:$12 sps:$4 sm:$0xff]  }
 0x381   :  { %v7633_v56 = vadd.f32 %v7632_v23, %v7631_v54  ;;  %5532 = vmatprep.subr.bf16.mxu0 %v8573_v48  ;;  %v8587_v54 = vld [vmem:[#allocation9 + $0x8] ss:$12 sps:$4 sm:$0xff]   ;;  %v8625_v48 = vld [vmem:[#allocation9 + $0x184] ss:$12 sps:$4 sm:$0xff]  }
 0x382   :  { %7725 = vmatpush3.bf16.msra.mxu1 %v8587_v54  ;;  %v8590_v23 = vld [vmem:[#allocation9 + $0xdc] ss:$12 sps:$4 sm:$0xff]  }
 0x384   :  { %5533 = vmatpush1.bf16.msra.mxu0 %v8571_v26  ;;  %v8626_v26 = vld [vmem:[#allocation9 + $0x248] ss:$12 sps:$4 sm:$0xff]  }
 0x385   :  { %v7634_v40 = vpop.f32.mrb[52].mxu1  ;;  %5534 = vmatprep.subr.bf16.mxu0 %v8576_v28 }
 0x386   :  { %v7635_v1 = vpop.f32.mrb[53].mxu1 }
 0x387   :  { %v7636_v39 = vadd.f32 %v7635_v1, %v7634_v40  ;;  %v7637_v59 = vpop.f32.mrb[54].mxu1  ;;  %v8588_v40 = vld [vmem:[#allocation9 + $0xd8] ss:$12 sps:$4 sm:$0xff]   ;;  %v8592_v1 = vld [vmem:[#allocation9 + $0x20] ss:$12 sps:$4 sm:$0xff]  }
 0x388   :  { %v7638_v60 = vpop.f32.mrb[55].mxu1  ;;  %5535 = vmatpush1.bf16.msra.mxu0 %v8574_v33 }
 0x389   :  { %v7639_v61 = vadd.f32 %v7638_v60, %v7637_v59  ;;  %5536 = vmatprep.subr.bf16.mxu0 %v8579_v58  ;;  %v8596_v59 = vld [vmem:[#allocation9 + $0xf8] ss:$12 sps:$4 sm:$0xff]   ;;  %v8593_v60 = vld [vmem:[#allocation9 + $0xf0] ss:$12 sps:$4 sm:$0xff]  }
 0x38c   :  { %5537 = vmatpush1.bf16.msra.mxu0 %v8577_v8 }
 0x38d   :  { %5538 = vmatprep.subr.bf16.mxu0 %v8582_v52 }
 0x390   :  { %5539 = vmatpush1.bf16.msra.mxu0 %v8580_v46 }
 0x391   :  { %5540 = vmatprep.subr.bf16.mxu0 %v8585_v20 }
 0x39d   :  { %v7656_v57 = vpop.f32.mrb[56].mxu1 }
 0x39e   :  { %v7657_v13 = vpop.f32.mrb[57].mxu1 }
 0x39f   :  { %v7658_v15 = vadd.f32 %v7657_v13, %v7656_v57  ;;  %v7659_v63 = vpop.f32.mrb[58].mxu1  ;;  %v8600_v57 = vld [vmem:[#allocation9 + $0x10c] ss:$12 sps:$4 sm:$0xff]   ;;  %v8601_v13 = vld [vmem:[#allocation9 + $0x110] ss:$12 sps:$4 sm:$0xff]  }
 0x3a0   :  { %v7660_v17 = vpop.f32.mrb[59].mxu1 }
 0x3a1   :  { %v9560_v6 = vadd.f32 %v7658_v15, %v7630_v0  ;;  %v7661_v53 = vadd.f32 %v7660_v17, %v7659_v63  ;;  %v8583_v0 = vld [vmem:[#allocation9 + $0xc0] ss:$12 sps:$4 sm:$0xff]   ;;  %v8598_v15 = vld [vmem:[#allocation9 + $0x108] ss:$12 sps:$4 sm:$0xff]   ;;  %v8602_v63 = vld [vmem:[#allocation9 + $0x50] ss:$12 sps:$4 sm:$0xff]  }
 0x3a2   :  { %5541 = vmatpush1.bf16.msra.mxu0 %v8583_v0  ;;  %v8605_v17 = vld [vmem:[#allocation9 + $0x124] ss:$12 sps:$4 sm:$0xff]  }
 0x3a3   :  { %v9562_v22 = vadd.f32 %v7661_v53, %v7633_v56  ;;  %v8591_v56 = vld [vmem:[#allocation9 + $0xe0] ss:$12 sps:$4 sm:$0xff]   ;;  %5542 = vmatprep.subr.bf16.mxu0 %v8590_v23  ;;  %v8606_v53 = vld [vmem:[#allocation9 + $0x128] ss:$12 sps:$4 sm:$0xff]  }
 0x3a4   :  { %7726 = vmatprep.subr.bf16.mxu1 %v8591_v56 }
 0x3a5   :  { %v7662_v30 = vpop.f32.mrb[60].mxu1  ;;  %7727 = vmatpush3.bf16.msra.mxu1 %v8592_v1 }
 0x3a6   :  { %v7663_v29 = vpop.f32.mrb[61].mxu1  ;;  %5543 = vmatpush1.bf16.msra.mxu0 %v8588_v40  ;;  %7728 = vmatprep.subr.bf16.mxu1 %v8596_v59 }
 0x3a7   :  { %v7664_v3 = vadd.f32 %v7663_v29, %v7662_v30  ;;  %v7665_v31 = vpop.f32.mrb[62].mxu1  ;;  %v8610_v30 = vld [vmem:[#allocation9 + $0x13c] ss:$12 sps:$4 sm:$0xff]   ;;  %v8611_v29 = vld [vmem:[#allocation9 + $0x140] ss:$12 sps:$4 sm:$0xff]  }
 0x3a8   :  { %v7666_v10 = vpop.f32.mrb[63].mxu1 }
 0x3a9   :  { %v9564_v42 = vadd.f32 %v7664_v3, %v7636_v39  ;;  %v7667_v47 = vadd.f32 %v7666_v10, %v7665_v31  ;;  %v8595_v39 = vld [vmem:[#allocation9 + $0xf4] ss:$12 sps:$4 sm:$0xff]   ;;  %v8613_v10 = vld [vmem:[#allocation9 + $0x150] ss:$12 sps:$4 sm:$0xff]  }
 0x3aa   :  { %5544 = vmatprep.subr.bf16.mxu0 %v8595_v39  ;;  %v8612_v3 = vld [vmem:[#allocation9 + $0x80] ss:$12 sps:$4 sm:$0xff]  }
 0x3ab   :  { %v9566_v36 = vadd.f32 %v7667_v47, %v7639_v61  ;;  %v8597_v61 = vld [vmem:[#allocation9 + $0x38] ss:$12 sps:$4 sm:$0xff]   ;;  %5545 = vmatpush1.bf16.msra.mxu0 %v8593_v60  ;;  %v8615_v31 = vld [vmem:[#allocation9 + $0x154] ss:$12 sps:$4 sm:$0xff]  }
 0x3ac   :  { %7729 = vmatpush3.bf16.msra.mxu1 %v8597_v61  ;;  %5546 = vmatprep.subr.bf16.mxu0 %v8600_v57  ;;  %v8617_v47 = vld [vmem:[#allocation9 + $0x98] ss:$12 sps:$4 sm:$0xff]  }
 0x3ad   :  { %7730 = vmatprep.subr.bf16.mxu1 %v8601_v13 }
 0x3af   :  { %5547 = vmatpush1.bf16.msra.mxu0 %v8598_v15 }
 0x3b0   :  { %7731 = vmatpush3.bf16.msra.mxu1 %v8602_v63  ;;  %5548 = vmatprep.subr.bf16.mxu0 %v8605_v17 }
 0x3b1   :  { %7732 = vmatprep.subr.bf16.mxu1 %v8606_v53 }
 0x3b3   :  { %5549 = vmatpush1.bf16.msra.mxu0 %v8603_v19 }
 0x3b4   :  { %7733 = vmatpush3.bf16.msra.mxu1 %v8607_v50  ;;  %5550 = vmatprep.subr.bf16.mxu0 %v8610_v30 }
 0x3b5   :  { %7734 = vmatprep.subr.bf16.mxu1 %v8611_v29 }
 0x3b7   :  { %5551 = vmatpush1.bf16.msra.mxu0 %v8608_v25 }
 0x3b8   :  { %7735 = vmatpush3.bf16.msra.mxu1 %v8612_v3  ;;  %5552 = vmatprep.subr.bf16.mxu0 %v8615_v31 }
 0x3b9   :  { %7736 = vmatprep.subr.bf16.mxu1 %v8616_v32 }
 0x3bb   :  { %5553 = vmatpush1.bf16.msra.mxu0 %v8613_v10 }
 0x3bc   :  { %7737 = vmatpush3.bf16.msra.mxu1 %v8617_v47  ;;  %5554 = vmatprep.subr.bf16.mxu0 %v8620_v51 }
 0x3bd   :  { %7738 = vmatprep.subr.bf16.mxu1 %v8621_v34 }
 0x3bf   :  { %5555 = vmatpush1.bf16.msra.mxu0 %v8618_v41 }
 0x3c0   :  { %7739 = vmatpush3.bf16.msra.mxu1 %v8622_v45  ;;  %5577 = vmatprep.subr.bf16.mxu0 %v8625_v48 }
 0x3c1   :  { %7752 = vmatprep.subr.bf16.mxu1 %v8626_v26 }
 0x3fd   :  { %v3659_v28 = vpop.f32.mrb[24].mxu0 }
 0x3fe   :  { %v7132_v33 = vmul.f32 -1.442695, %v3659_v28  ;;  %v3661_v58 = vpop.f32.mrb[25].mxu0 }
 0x3ff   :  { %v3663_v8 = vpop.f32.mrb[26].mxu0  ;;  %v7133_v20 = vmul.f32 -1.442695, %v3661_v58 }
 0x400   :  { %8855 = vpow2.f32 %v7132_v33  ;;  %v7134_v52 = vmul.f32 -1.442695, %v3663_v8  ;;  %v3665_v46 = vpop.f32.mrb[27].mxu0 }
 0x401   :  { %v7135_v14 = vmul.f32 -1.442695, %v3665_v46 }
 0x402   :  { %8857 = vpow2.f32 %v7134_v52 }
 0x403   :  { %8859 = vpow2.f32 %v7133_v20 }
 0x405   :  { %v3669_v0 = vpop.f32.mrb[28].mxu0 }
 0x406   :  { %v7136_v54 = vmul.f32 -1.442695, %v3669_v0  ;;  %v3671_v23 = vpop.f32.mrb[29].mxu0 }
 0x407   :  { %v3673_v56 = vpop.f32.mrb[30].mxu0  ;;  %v7137_v59 = vmul.f32 -1.442695, %v3671_v23 }
 0x408   :  { %8861 = vpow2.f32 %v7136_v54  ;;  %v7138_v40 = vmul.f32 -1.442695, %v3673_v56  ;;  %v3675_v1 = vpop.f32.mrb[31].mxu0 }
 0x409   :  { %8863 = vpow2.f32 %v7135_v14  ;;  %v7139_v13 = vmul.f32 -1.442695, %v3675_v1 }
 0x40a   :  { %v8856_v39 = vpop.eup %8855  ;;  %8865 = vpow2.f32 %v7138_v40 }
 0x40b   :  { %v3808_v60 = vadd.f32 1.0, %v8856_v39 }
 0x40c   :  { %v8858_v61 = vpop.eup %8857 }
 0x40d   :  { %8867 = vrcp.f32 %v3808_v60  ;;  %v3810_v57 = vadd.f32 1.0, %v8858_v61  ;;  %v8860_v15 = vpop.eup %8859 }
 0x40e   :  { %8869 = vpow2.f32 %v7137_v59  ;;  %v3809_v50 = vadd.f32 1.0, %v8860_v15 }
 0x40f   :  { %8871 = vrcp.f32 %v3810_v57 }
 0x410   :  { %8873 = vpow2.f32 %v7139_v13 }
 0x412   :  { %v8862_v63 = vpop.eup %8861 }
 0x413   :  { %v8864_v17 = vpop.eup %8863  ;;  %v3812_v53 = vadd.f32 1.0, %v8862_v63 }
 0x414   :  { %v8866_v19 = vpop.eup %8865  ;;  %v3811_v29 = vadd.f32 1.0, %v8864_v17 }
 0x415   :  { %8875 = vrcp.f32 %v3812_v53  ;;  %v3814_v30 = vadd.f32 1.0, %v8866_v19 }
 0x417   :  { %v8868_v25 = vpop.eup %8867  ;;  %8877 = vrcp.f32 %v3814_v30 }
 0x418   :  { %v8870_v3 = vpop.eup %8869  ;;  %v3832_v31 = vmul.f32 %v8868_v25, %v9560_v6  ;;  %8879 = vrcp.f32 %v3809_v50 }
 0x419   :  { %v8872_v32 = vpop.eup %8871  ;;  %8881 = vrcp.f32 %v3811_v29  ;;  %v3813_v34 = vadd.f32 1.0, %v8870_v3 }
 0x41a   :  { %v3836_v10 = vadd.f32 %v3832_v31, %v9551_v37  ;;  %v3833_v47 = vmul.f32 %v8872_v32, %v9562_v22  ;;  %v8874_v51 = vpop.eup %8873 }
 0x41b   :  { %v3815_v48 = vadd.f32 1.0, %v8874_v51 }
 0x41c   :  { %8883 = vtanh.f32 %v3836_v10  ;;  %v3837_v41 = vadd.f32 %v3833_v47, %v9554_v38 }
 0x41d   :  { %v7684_v45 = vpop.f32.mrb[32].mxu0 }
 0x41e   :  { %8885 = vtanh.f32 %v3837_v41  ;;  %v4623_v26 = vpop.f32.mrb[64].mxu1  ;;  %v7685_v28 = vpop.f32.mrb[33].mxu0 }
 0x41f   :  { %v8876_v33 = vpop.eup %8875  ;;  %8887 = vrcp.f32 %v3813_v34  ;;  %v4740_v6 = vadd.f32 %v4623_v26, %v9343_v4  ;;  %v4625_v58 = vpop.f32.mrb[65].mxu1  ;;  %v9573_v8 = vadd.f32 %v7685_v28, %v7684_v45 }
 0x420   :  { %v7687_v37 = vpop.f32.mrb[34].mxu0  ;;  %v3834_v22 = vmul.f32 %v8876_v33, %v9564_v42  ;;  %v4627_v52 = vpop.f32.mrb[66].mxu1  ;;  %8889 = vrcp.f32 %v3815_v48  ;;  %v4741_v31 = vadd.f32 %v4625_v58, %v9345_v7 }
 0x421   :  { %v7688_v46 = vpop.f32.mrb[35].mxu0  ;;  %v8878_v20 = vpop.eup %8877  ;;  %v4742_v23 = vadd.f32 %v4627_v52, %v9347_v12  ;;  %v7236_v56 = vmul.f32 -1.442695, %v4740_v6 }
 0x422   :  { %v4629_v14 = vpop.f32.mrb[67].mxu1  ;;  %v8880_v38 = vpop.eup %8879  ;;  %v3838_v0 = vadd.f32 %v3834_v22, %v9556_v9  ;;  %v3835_v54 = vmul.f32 %v8878_v20, %v9566_v36  ;;  %v9580_v1 = vadd.f32 %v7688_v46, %v7687_v37  ;;  %v7237_v33 = vmul.f32 -1.442695, %v4741_v31 }
 0x423   :  { %v8882_v4 = vpop.eup %8881  ;;  %v3844_v42 = vsub.f32 1.0, %v8880_v38  ;;  %v7238_v60 = vmul.f32 -1.442695, %v4742_v23  ;;  %v3852_v17 = vmul.f32 0.0, %v8880_v38 }
 0x424   :  { %8891 = vtanh.f32 %v3838_v0  ;;  %v3839_v40 = vadd.f32 %v3835_v54, %v9558_v35  ;;  %v3845_v13 = vsub.f32 1.0, %v8882_v4  ;;  %v3853_v29 = vmul.f32 0.0, %v8882_v4 }
 0x425   :  { %v7690_v39 = vpop.f32.mrb[36].mxu0 }
 0x426   :  { %v8884_v59 = vpop.eup %8883  ;;  %8893 = vtanh.f32 %v3839_v40  ;;  %v4633_v61 = vpop.f32.mrb[68].mxu1 }
 0x427   :  { %v7691_v57 = vpop.f32.mrb[37].mxu0  ;;  %v3848_v9 = vmul.f32 %v8884_v59, %v3844_v42  ;;  %8895 = vpow2.f32 %v7236_v56  ;;  %v4635_v36 = vpop.f32.mrb[69].mxu1  ;;  %v4744_v35 = vadd.f32 %v4633_v61, %v9351_v18  ;;  %v4743_v18 = vadd.f32 %v4629_v14, %v9349_v16 }
 0x428   :  { %v9582_v15 = vadd.f32 %v7691_v57, %v7690_v39  ;;  %v7693_v12 = vpop.f32.mrb[38].mxu0  ;;  %v8886_v63 = vpop.eup %8885  ;;  %8897 = vpow2.f32 %v7238_v60  ;;  %v4745_v54 = vadd.f32 %v4635_v36, %v9353_v21 }
 0x429   :  { %v4637_v53 = vpop.f32.mrb[70].mxu1  ;;  %v7694_v19 = vpop.f32.mrb[39].mxu0  ;;  %v3849_v30 = vmul.f32 %v8886_v63, %v3845_v13  ;;  %v9589_v10 = vadd.f32 %v3852_v17, %v3848_v9  ;;  %v7240_v41 = vmul.f32 -1.442695, %v4744_v35  ;;  %v7239_v46 = vmul.f32 -1.442695, %v4743_v18 }
 0x42a   :  { %v8888_v50 = vpop.eup %8887  ;;  %v4639_v25 = vpop.f32.mrb[71].mxu1  ;;  %v9585_v3 = vadd.f32 %v7694_v19, %v7693_v12  ;;  %v4746_v32 = vadd.f32 %v4637_v53, %v9355_v24  ;;  %v7241_v60 = vmul.f32 -1.442695, %v4745_v54 }
 0x42b   :  { %v9591_v47 = vadd.f32 %v3853_v29, %v3849_v30  ;;  %v8890_v51 = vpop.eup %8889  ;;  %v3846_v34 = vsub.f32 1.0, %v8888_v50  ;;  %5737 = vst [vmem:[#allocation2 + $0x8] sm:$0xff] %v9589_v10  ;;  %v5730_v45 = vrot.slane %v9589_v10, 7  ;;  %v5739_v7 = vrot.slane %v9589_v10, 1 }
 0x42c   :  { %v3854_v28 = vmul.f32 0.0, %v8888_v50  ;;  %v7242_v6 = vmul.f32 -1.442695, %v4746_v32  ;;  %v3847_v37 = vsub.f32 1.0, %v8890_v51  ;;  %8899 = vpow2.f32 %v7240_v41 }
 0x42d   :  { %v5731_v48 = vrot.slane %v9591_v47, 7  ;;  %5738 = vst [vmem:[#allocation2 + $0x28] sm:$0xff] %v9591_v47  ;;  %v5740_v24 = vrot.slane %v9591_v47, 1  ;;  %v3855_v38 = vmul.f32 0.0, %v8890_v51  ;;  %v4747_v40 = vadd.f32 %v4639_v25, %v9357_v27 }
 0x42e   :  { %v8892_v26 = vpop.eup %8891  ;;  %8901 = vpow2.f32 %v7242_v6 }
 0x42f   :  { %v3850_v58 = vmul.f32 %v8892_v26, %v3846_v34  ;;  %v9603_v16 = vsel %vm121_vm5, %v5730_v45, %v5731_v48  ;;  %v9608_v22 = vsel %vm133_vm6, %v5739_v7, %v5740_v24  ;;  %8903 = vpow2.f32 %v7237_v33 }
 0x430   :  { %v8894_v52 = vpop.eup %8893  ;;  %5736 = vst [vmem:[#allocation2 + $0x20] sm:$0xff] %v9603_v16  ;;  %5744 = vst [vmem:[#allocation2 + $0x10] sm:$0xff] %v9608_v22  ;;  %8905 = vpow2.f32 %v7239_v46  ;;  %v7243_v9 = vmul.f32 -1.442695, %v4747_v40 }
 0x431   :  { %v8896_v20 = vpop.eup %8895  ;;  %v3851_v14 = vmul.f32 %v8894_v52, %v3847_v37  ;;  %v9612_v0 = vadd.f32 %v3854_v28, %v3850_v58 }
 0x432   :  { %v8898_v56 = vpop.eup %8897  ;;  %v4772_v4 = vadd.f32 1.0, %v8896_v20 }
 0x433   :  { %v9615_v23 = vadd.f32 %v3855_v38, %v3851_v14  ;;  %5755 = vst [vmem:[#allocation2 + $0x48] sm:$0xff] %v9612_v0  ;;  %v5748_v42 = vrot.slane %v9612_v0, 7  ;;  %v5757_v59 = vrot.slane %v9612_v0, 1  ;;  %v4774_v61 = vadd.f32 1.0, %v8898_v56 }
 0x434   :  { %8907 = vrcp.f32 %v4772_v4 }
 0x435   :  { %5756 = vst [vmem:[#allocation2 + $0x68] sm:$0xff] %v9615_v23  ;;  %v5749_v39 = vrot.slane %v9615_v23, 7  ;;  %v5758_v21 = vrot.slane %v9615_v23, 1  ;;  %8909 = vpow2.f32 %v7241_v60 }
 0x436   :  { %v8900_v13 = vpop.eup %8899  ;;  %8911 = vrcp.f32 %v4774_v61 }
 0x437   :  { %v9627_v57 = vsel %vm121_vm5, %v5748_v42, %v5749_v39  ;;  %v9632_v27 = vsel %vm133_vm6, %v5757_v59, %v5758_v21  ;;  %v4776_v63 = vadd.f32 1.0, %v8900_v13  ;;  %8913 = vpow2.f32 %v7243_v9 }
 0x438   :  { %5754 = vst [vmem:[#allocation2 + $0x60] sm:$0xff] %v9627_v57  ;;  %5762 = vst [vmem:[#allocation2 + $0x50] sm:$0xff] %v9632_v27  ;;  %v8902_v36 = vpop.eup %8901 }
 0x439   :  { %v8904_v12 = vpop.eup %8903  ;;  %v4778_v53 = vadd.f32 1.0, %v8902_v36  ;;  %8915 = vrcp.f32 %v4776_v63 }
 0x43a   :  { %v8906_v17 = vpop.eup %8905  ;;  %v4773_v50 = vadd.f32 1.0, %v8904_v12 }
 0x43b   :  { %v4775_v31 = vadd.f32 1.0, %v8906_v17  ;;  %8917 = vrcp.f32 %v4778_v53 }
 0x43c   :  { %8919 = vrcp.f32 %v4773_v50 }
 0x43d   :  { %8921 = vrcp.f32 %v4775_v31 }
 0x43e   :  { %v7712_v35 = vpop.f32.mrb[72].mxu1  ;;  %v8908_v34 = vpop.eup %8907 }
 0x43f   :  { %v7713_v19 = vpop.f32.mrb[73].mxu1  ;;  %v8910_v18 = vpop.eup %8909 }
 0x440   :  { %v7714_v30 = vadd.f32 %v7713_v19, %v7712_v35  ;;  %v7715_v29 = vpop.f32.mrb[74].mxu1  ;;  %v8912_v7 = vpop.eup %8911  ;;  %v4777_v58 = vadd.f32 1.0, %v8910_v18 }
 0x441   :  { %v7716_v25 = vpop.f32.mrb[75].mxu1  ;;  %v8914_v6 = vpop.eup %8913 }
 0x442   :  { %v4726_v32 = vadd.f32 %v7714_v30, %v9573_v8  ;;  %v7717_v51 = vadd.f32 %v7716_v25, %v7715_v29  ;;  %v4779_v14 = vadd.f32 1.0, %v8914_v6 }
 0x443   :  { %v8916_v54 = vpop.eup %8915 }
 0x444   :  { %v4796_v41 = vmul.f32 %v8908_v34, %v4726_v32  ;;  %v4729_v48 = vadd.f32 %v7717_v51, %v9580_v1 }
 0x445   :  { %v8918_v4 = vpop.eup %8917 }
 0x446   :  { %v4800_v26 = vadd.f32 %v4796_v41, %v9359_v49  ;;  %v4797_v28 = vmul.f32 %v8912_v7, %v4729_v48  ;;  %v7718_v33 = vpop.f32.mrb[76].mxu1  ;;  %v8920_v40 = vpop.eup %8919 }
 0x447   :  { %v7719_v37 = vpop.f32.mrb[77].mxu1  ;;  %v4808_v61 = vsub.f32 1.0, %v8920_v40 }
 0x448   :  { %8923 = vtanh.f32 %v4800_v26  ;;  %v4801_v8 = vadd.f32 %v4797_v28, %v9363_v55  ;;  %v7720_v52 = vadd.f32 %v7719_v37, %v7718_v33  ;;  %v7721_v46 = vpop.f32.mrb[78].mxu1  ;;  %v8922_v55 = vpop.eup %8921  ;;  %v8623_v33 = vld [vmem:[#allocation9 + $0x180] ss:$12 sps:$4 sm:$0xff]  }
 0x449   :  { %v7722_v20 = vpop.f32.mrb[79].mxu1  ;;  %v4809_v13 = vsub.f32 1.0, %v8922_v55 }
 0x44a   :  { %8925 = vtanh.f32 %v4801_v8  ;;  %v4734_v38 = vadd.f32 %v7720_v52, %v9582_v15  ;;  %v7723_v1 = vadd.f32 %v7722_v20, %v7721_v46  ;;  %v4816_v15 = vmul.f32 %v8920_v40, %v9403_v43  ;;  %v8630_v8 = vld [vmem:[#allocation9 + $0x19c] ss:$12 sps:$4 sm:$0xff]   ;;  %v8631_v52 = vld [vmem:[#allocation9 + $0x260] ss:$12 sps:$4 sm:$0xff]  }
 0x44b   :  { %8927 = vrcp.f32 %v4777_v58  ;;  %v4867_v40 = vld [vmem:[#allocation2 + $0x38] sm:$0xff] }
 0x44c   :  { %v4798_v56 = vmul.f32 %v8916_v54, %v4734_v38  ;;  %v4737_v49 = vadd.f32 %v7723_v1, %v9585_v3  ;;  %8929 = vrcp.f32 %v4779_v14  ;;  %v4817_v3 = vmul.f32 %v8922_v55, %v9405_v44  ;;  %v8632_v54 = vld [vmem:[#allocation9 + $0x1a0] ss:$12 sps:$4 sm:$0xff]  }
 0x44e   :  { %v4802_v39 = vadd.f32 %v4798_v56, %v9367_v5  ;;  %v4799_v59 = vmul.f32 %v8918_v4, %v4737_v49  ;;  %v8635_v56 = vld [vmem:[#allocation9 + $0x1b4] ss:$12 sps:$4 sm:$0xff]   ;;  %v8636_v49 = vld [vmem:[#allocation9 + $0x278] ss:$12 sps:$4 sm:$0xff]  }
 0x44f   :  { %v4863_v4 = vld [vmem:[#allocation2 + $0x18] sm:$0xff] }
 0x450   :  { %8931 = vtanh.f32 %v4802_v39  ;;  %v4803_v60 = vadd.f32 %v4799_v59, %v9369_v11  ;;  %v8633_v39 = vld [vmem:[#allocation9 + $0x1b0] ss:$12 sps:$4 sm:$0xff]   ;;  %v8637_v59 = vld [vmem:[#allocation9 + $0x1b8] ss:$12 sps:$4 sm:$0xff]  }
 0x452   :  { %v8924_v9 = vpop.eup %8923  ;;  %8933 = vtanh.f32 %v4803_v60  ;;  %v8640_v60 = vld [vmem:[#allocation9 + $0x1cc] ss:$12 sps:$4 sm:$0xff]  }
 0x453   :  { %v4812_v36 = vmul.f32 %v8924_v9, %v4808_v61  ;;  %v8641_v61 = vld [vmem:[#allocation9 + $0x290] ss:$12 sps:$4 sm:$0xff]   ;;  %v9664_v9 = vpack.c.bf16 %v4867_v40, %v4863_v4  ;;  %v8695_v4 = vld [vmem:[#allocation9 + $0x2d4] ss:$12 sps:$4 sm:$0xff]   ;;  %v8696_v40 = vld [vmem:[#allocation11 + $0x158] ss:$12 sps:$4 sm:$0xff]  }
 0x454   :  { %v8926_v12 = vpop.eup %8925 }
 0x455   :  { %v8928_v63 = vpop.eup %8927  ;;  %v4820_v17 = vadd.f32 %v4816_v15, %v4812_v36  ;;  %v4813_v35 = vmul.f32 %v8926_v12, %v4809_v13  ;;  %v8638_v13 = vld [vmem:[#allocation9 + $0x1c8] ss:$12 sps:$4 sm:$0xff]   ;;  %v8642_v36 = vld [vmem:[#allocation9 + $0x1d0] ss:$12 sps:$4 sm:$0xff]  }
 0x456   :  { %v8930_v19 = vpop.eup %8929  ;;  %v4810_v50 = vsub.f32 1.0, %v8928_v63  ;;  %v4818_v43 = vmul.f32 %v8928_v63, %v9419_v62  ;;  %v8627_v62 = vld [vmem:[#allocation9 + $0x188] ss:$12 sps:$4 sm:$0xff]   ;;  %v8645_v12 = vld [vmem:[#allocation9 + $0x1e4] ss:$12 sps:$4 sm:$0xff]  }
 0x457   :  { %v4826_v53 = vrot.slane %v4820_v17, 7  ;;  %v4821_v5 = vadd.f32 %v4817_v3, %v4813_v35  ;;  %v4835_v30 = vrot.slane %v4820_v17, 1  ;;  %v4811_v32 = vsub.f32 1.0, %v8930_v19  ;;  %v8646_v63 = vld [vmem:[#allocation9 + $0x2a8] ss:$12 sps:$4 sm:$0xff]  }
 0x458   :  { %v4819_v41 = vmul.f32 %v8930_v19, %v9421_v2  ;;  %v8647_v3 = vld [vmem:[#allocation9 + $0x1e8] ss:$12 sps:$4 sm:$0xff]   ;;  %v8648_v35 = vld [vmem:[#allocation9 + $0x1f8] ss:$12 sps:$4 sm:$0xff]  }
 0x459   :  { %4831 = vst [vmem:[#allocation2] sm:$0xfe] %v4826_v53  ;;  %v4827_v11 = vrot.slane %v4821_v5, 7  ;;  %v4836_v29 = vrot.slane %v4821_v5, 1  ;;  %v4877_v25 = vpack.c.bf16 %v4821_v5, %v4820_v17  ;;  %v8650_v17 = vld [vmem:[#allocation9 + $0x1fc] ss:$12 sps:$4 sm:$0xff]  }
 0x45a   :  { %v8932_v31 = vpop.eup %8931  ;;  %v8655_v5 = vld [vmem:[#allocation9 + $0x214] ss:$12 sps:$4 sm:$0xff]   ;;  %v8656_v19 = vld [vmem:[#allocation9 + $0x2d8] ss:$12 sps:$4 sm:$0xff]  }
 0x45b   :  { %4841 = vst [vmem:[#allocation2 + $0x30] sm:$0x7f] %v4836_v29  ;;  %v4814_v51 = vmul.f32 %v8932_v31, %v4810_v50  ;;  %5556 = vmatprep.mubr.bf16.mxu0 %v4877_v25  ;;  %5662 = vmatprep.mubr.bf16.mxu1 %v4877_v25  ;;  %v4828_v44 = vsel %vm121_vm5, %v4826_v53, %v4827_v11  ;;  %v8652_v53 = vld [vmem:[#allocation9 + $0x200] ss:$12 sps:$4 sm:$0xff]   ;;  %v8653_v50 = vld [vmem:[#allocation9 + $0x210] ss:$12 sps:$4 sm:$0xff]  }
 0x45c   :  { %v9649_v34 = vsel %vm133_vm6, %v4835_v30, %v4836_v29  ;;  %v8934_v18 = vpop.eup %8933  ;;  %v8657_v30 = vld [vmem:[#allocation9 + $0x218] ss:$12 sps:$4 sm:$0xff]   ;;  %v8661_v29 = vld [vmem:[#allocation9 + $0x2f0] ss:$12 sps:$4 sm:$0xff]   ;;  %v8658_v25 = vld [vmem:[#allocation9 + $0x228] ss:$12 sps:$4 sm:$0xff]  }
 0x45d   :  { %v4822_v48 = vadd.f32 %v4818_v43, %v4814_v51  ;;  %v4815_v7 = vmul.f32 %v8934_v18, %v4811_v32  ;;  %v8660_v11 = vld [vmem:[#allocation9 + $0x22c] ss:$12 sps:$4 sm:$0xff]   ;;  %v8662_v31 = vld [vmem:[#allocation9 + $0x230] ss:$12 sps:$4 sm:$0xff]   ;;  %v8666_v32 = vld [vmem:[#allocation11 + $0xc8] ss:$12 sps:$4 sm:$0xff]  }
 0x45e   :  { %v8665_v43 = vld [vmem:[#allocation9 + $0x244] ss:$12 sps:$4 sm:$0xff]   ;;  %v4871_v51 = vld [vmem:[#allocation2 + $0x58] sm:$0xff]  ;;  %v8663_v18 = vld [vmem:[#allocation9 + $0x240] ss:$12 sps:$4 sm:$0xff]  }
 0x45f   :  { %v4823_v26 = vadd.f32 %v4819_v41, %v4815_v7  ;;  %v4844_v28 = vrot.slane %v4822_v48, 7  ;;  %v4853_v58 = vrot.slane %v4822_v48, 1  ;;  %v8667_v41 = vld [vmem:[#allocation11 + $0x8] ss:$12 sps:$4 sm:$0xff]  }
 0x460   :  { %v4860_v6 = vld [vmem:[#allocation2] sm:$0xff]  ;;  %v8670_v7 = vld [vmem:[#allocation9 + $0x25c] ss:$12 sps:$4 sm:$0xff]  }
 0x461   :  { %v4876_v37 = vpack.c.bf16 %v4828_v44, %v4860_v6  ;;  %5735 = vst [vmem:[#allocation2] sm:$0xfe] %v5730_v45  ;;  %v4881_v46 = vpack.c.bf16 %v4823_v26, %v4822_v48  ;;  %v4845_v20 = vrot.slane %v4823_v26, 7  ;;  %4849 = vst [vmem:[#allocation2 + $0x40] sm:$0xfe] %v4844_v28  ;;  %v4854_v14 = vrot.slane %v4823_v26, 1 }
 0x462   :  { %v9654_v38 = vld [vmem:[#allocation2 + $0x30] sm:$0xff]  ;;  %v8628_v45 = vld [vmem:[#allocation9 + $0x198] ss:$12 sps:$4 sm:$0xff]   ;;  %v8671_v26 = vld [vmem:[#allocation11 + $0xe0] ss:$12 sps:$4 sm:$0xff]  }
 0x463   :  { %5557 = vmatmul.mubr.bf16.vlgmr.msra.gmra.mrb[40].mxu0 %v4876_v37  ;;  %5663 = vmatmul.mubr.bf16.vlgmr.msra.gmra.mrb[80].mxu1 %v4876_v37  ;;  %v4846_v2 = vsel %vm121_vm5, %v4844_v28, %v4845_v20  ;;  %5745 = vst [vmem:[#allocation2 + $0x30] sm:$0x7f] %v5740_v24  ;;  %v9660_v1 = vsel %vm133_vm6, %v4853_v58, %v4854_v14  ;;  %4859 = vst [vmem:[#allocation2 + $0x70] sm:$0x7f] %v4854_v14  ;;  %v4875_v44 = vld [vmem:[#allocation2 + $0x78] sm:$0xff] }
 0x464   :  { %5578 = vmatpush1.bf16.msra.mxu0 %v8623_v33  ;;  %7753 = vmatpush3.bf16.msra.mxu1 %v8627_v62  ;;  %v9674_v48 = vpack.c.bf16 %v9654_v38, %v9649_v34  ;;  %v9676_v28 = vpack.c.bf16 %v4875_v44, %v4871_v51  ;;  %v8668_v33 = vld [vmem:[#allocation9 + $0x258] ss:$12 sps:$4 sm:$0xff]   ;;  %v8672_v6 = vld [vmem:[#allocation11 + $0x20] ss:$12 sps:$4 sm:$0xff]   ;;  %v8673_v34 = vld [vmem:[#allocation9 + $0x270] ss:$12 sps:$4 sm:$0xff]   ;;  %v9687_v20 = vpack.c.bf16 %v9591_v47, %v9589_v10 }
 0x465   :  { %5579 = vmatprep.subr.bf16.mxu0 %v8630_v8  ;;  %7754 = vmatprep.subr.bf16.mxu1 %v8631_v52  ;;  %v8675_v62 = vld [vmem:[#allocation9 + $0x274] ss:$12 sps:$4 sm:$0xff]   ;;  %v8676_v58 = vld [vmem:[#allocation11 + $0xf8] ss:$12 sps:$4 sm:$0xff]   ;;  %v8682_v38 = vld [vmem:[#allocation11 + $0x50] ss:$12 sps:$4 sm:$0xff]  }
 0x466   :  { %5566 = vmatprep.mubr.bf16.mxu0 %v4881_v46  ;;  %5670 = vmatprep.mubr.bf16.mxu1 %v4881_v46  ;;  %v8677_v37 = vld [vmem:[#allocation11 + $0x38] ss:$12 sps:$4 sm:$0xff]   ;;  %v8681_v46 = vld [vmem:[#allocation11 + $0x110] ss:$12 sps:$4 sm:$0xff]   ;;  %v8678_v14 = vld [vmem:[#allocation9 + $0x288] ss:$12 sps:$4 sm:$0xff]  }
 0x467   :  { %v8680_v52 = vld [vmem:[#allocation9 + $0x28c] ss:$12 sps:$4 sm:$0xff]   ;;  %v8730_v51 = vld [vmem:[#allocation11 + $0x7c] ss:$12 sps:$4 sm:$0xff]  }
 0x468   :  { %5580 = vmatpush1.bf16.msra.mxu0 %v8628_v45  ;;  %7755 = vmatpush3.bf16.msra.mxu1 %v8632_v54  ;;  %v4868_v24 = vld [vmem:[#allocation2 + $0x40] sm:$0xff]  ;;  %v8686_v45 = vld [vmem:[#allocation11 + $0x128] ss:$12 sps:$4 sm:$0xff]  }
 0x469   :  { %5581 = vmatprep.subr.bf16.mxu0 %v8635_v56  ;;  %7756 = vmatprep.subr.bf16.mxu1 %v8636_v49  ;;  %v4880_v55 = vpack.c.bf16 %v4846_v2, %v4868_v24  ;;  %5753 = vst [vmem:[#allocation2 + $0x40] sm:$0xfe] %v5748_v42  ;;  %v8643_v42 = vld [vmem:[#allocation9 + $0x1e0] ss:$12 sps:$4 sm:$0xff]   ;;  %v8685_v2 = vld [vmem:[#allocation9 + $0x2a4] ss:$12 sps:$4 sm:$0xff]  }
 0x46a   :  { %v9666_v15 = vld [vmem:[#allocation2 + $0x70] sm:$0xff]  ;;  %v8690_v56 = vld [vmem:[#allocation9 + $0x2bc] ss:$12 sps:$4 sm:$0xff]   ;;  %v8691_v49 = vld [vmem:[#allocation11 + $0x140] ss:$12 sps:$4 sm:$0xff]  }
 0x46b   :  { %5567 = vmatmul.mubr.bf16.gmra.mrb[44].mxu0 %v4880_v55  ;;  %5671 = vmatmul.mubr.bf16.gmra.mrb[84].mxu1 %v4880_v55  ;;  %5763 = vst [vmem:[#allocation2 + $0x70] sm:$0x7f] %v5758_v21  ;;  %v8651_v21 = vld [vmem:[#allocation9 + $0x2c0] ss:$12 sps:$4 sm:$0xff]   ;;  %v9682_v8 = vpack.c.bf16 %v9666_v15, %v9660_v1  ;;  %v8687_v54 = vld [vmem:[#allocation11 + $0x68] ss:$12 sps:$4 sm:$0xff]  }
 0x46c   :  { %5582 = vmatpush1.bf16.msra.mxu0 %v8633_v39  ;;  %7757 = vmatpush3.bf16.msra.mxu1 %v8637_v59  ;;  %v8683_v1 = vld [vmem:[#allocation9 + $0x2a0] ss:$12 sps:$4 sm:$0xff]   ;;  %v8688_v10 = vld [vmem:[#allocation9 + $0x2b8] ss:$12 sps:$4 sm:$0xff]   ;;  %v8693_v39 = vld [vmem:[#allocation9 + $0x2d0] ss:$12 sps:$4 sm:$0xff]  }
 0x46d   :  { %5583 = vmatprep.subr.bf16.mxu0 %v8640_v60  ;;  %7758 = vmatprep.subr.bf16.mxu1 %v8641_v61  ;;  %v8692_v47 = vld [vmem:[#allocation11 + $0x80] ss:$12 sps:$4 sm:$0xff]   ;;  %v8697_v24 = vld [vmem:[#allocation11 + $0x98] ss:$12 sps:$4 sm:$0xff]   ;;  %v8701_v55 = vld [vmem:[#allocation11 + $0x170] ss:$12 sps:$4 sm:$0xff]  }
 0x46e   :  { %5711 = vmatprep.mubr.bf16.mxu1 %v9664_v9  ;;  %5609 = vmatprep.mubr.bf16.mxu0 %v9664_v9  ;;  %v8700_v59 = vld [vmem:[#allocation9 + $0x2ec] ss:$12 sps:$4 sm:$0xff]   ;;  %v8698_v60 = vld [vmem:[#allocation9 + $0x2e8] ss:$12 sps:$4 sm:$0xff]   ;;  %v8702_v61 = vld [vmem:[#allocation11 + $0xb0] ss:$12 sps:$4 sm:$0xff]  }
 0x46f   :  { %v8705_v15 = vld [vmem:[#allocation11 + $0x4] ss:$12 sps:$4 sm:$0xff]   ;;  %v8731_v44 = vld [vmem:[#allocation11 + $0x2c0] ss:$12 sps:$4 sm:$0xff]  }
 0x470   :  { %5584 = vmatpush1.bf16.msra.mxu0 %v8638_v13  ;;  %7759 = vmatpush3.bf16.msra.mxu1 %v8642_v36  ;;  %v8706_v13 = vld [vmem:[#allocation11 + $0x248] ss:$12 sps:$4 sm:$0xff]   ;;  %v5764_v36 = vld [vmem:[#allocation2] sm:$0xff] }
 0x471   :  { %5585 = vmatprep.subr.bf16.mxu0 %v8645_v12  ;;  %7760 = vmatprep.subr.bf16.mxu1 %v8646_v63  ;;  %v8703_v12 = vld [vmem:[#allocation11] ss:$12 sps:$4 sm:$0xff]   ;;  %v9691_v63 = vpack.c.bf16 %v9603_v16, %v5764_v36  ;;  %v8776_v36 = vld [vmem:[#allocation11 + $0x1c8] ss:$12 sps:$4 sm:$0xff]  }
 0x472   :  { %v8712_v16 = vld [vmem:[#allocation11 + $0x1a0] ss:$12 sps:$4 sm:$0xff]  }
 0x474   :  { %5586 = vmatpush1.bf16.msra.mxu0 %v8643_v42  ;;  %7761 = vmatpush3.bf16.msra.mxu1 %v8647_v3  ;;  %v8707_v42 = vld [vmem:[#allocation11 + $0x188] ss:$12 sps:$4 sm:$0xff]  }
 0x475   :  { %5587 = vmatprep.subr.bf16.mxu0 %v8650_v17  ;;  %7762 = vmatprep.subr.bf16.mxu1 %v8651_v21  ;;  %v8710_v3 = vld [vmem:[#allocation11 + $0x1c] ss:$12 sps:$4 sm:$0xff]   ;;  %v9695_v17 = vpack.c.bf16 %v9615_v23, %v9612_v0  ;;  %v8711_v21 = vld [vmem:[#allocation11 + $0x260] ss:$12 sps:$4 sm:$0xff]  }
 0x476   :  { %v8713_v0 = vld [vmem:[#allocation11 + $0x30] ss:$12 sps:$4 sm:$0xff]  }
 0x478   :  { %5588 = vmatpush1.bf16.msra.mxu0 %v8648_v35  ;;  %7763 = vmatpush3.bf16.msra.mxu1 %v8652_v53  ;;  %v8708_v35 = vld [vmem:[#allocation11 + $0x18] ss:$12 sps:$4 sm:$0xff]   ;;  %v8715_v53 = vld [vmem:[#allocation11 + $0x34] ss:$12 sps:$4 sm:$0xff]  }
 0x479   :  { %5589 = vmatprep.subr.bf16.mxu0 %v8655_v5  ;;  %7764 = vmatprep.subr.bf16.mxu1 %v8656_v19  ;;  %v5772_v5 = vld [vmem:[#allocation2 + $0x40] sm:$0xff] }
 0x47a   :  { %v8716_v19 = vld [vmem:[#allocation11 + $0x278] ss:$12 sps:$4 sm:$0xff]   ;;  %v9702_v23 = vpack.c.bf16 %v9627_v57, %v5772_v5  ;;  %v8723_v57 = vld [vmem:[#allocation11 + $0x60] ss:$12 sps:$4 sm:$0xff]   ;;  %v8796_v5 = vld [vmem:[#allocation11 + $0x25c] ss:$12 sps:$4 sm:$0xff]  }
 0x47c   :  { %5590 = vmatpush1.bf16.msra.mxu0 %v8653_v50  ;;  %7765 = vmatpush3.bf16.msra.mxu1 %v8657_v30  ;;  %v8717_v50 = vld [vmem:[#allocation11 + $0x1b8] ss:$12 sps:$4 sm:$0xff]  }
 0x47d   :  { %5591 = vmatprep.subr.bf16.mxu0 %v8660_v11  ;;  %7766 = vmatprep.subr.bf16.mxu1 %v8661_v29  ;;  %v8720_v30 = vld [vmem:[#allocation11 + $0x4c] ss:$12 sps:$4 sm:$0xff]   ;;  %v8721_v11 = vld [vmem:[#allocation11 + $0x290] ss:$12 sps:$4 sm:$0xff]   ;;  %v8718_v29 = vld [vmem:[#allocation11 + $0x48] ss:$12 sps:$4 sm:$0xff]  }
 0x480   :  { %5592 = vmatpush1.bf16.msra.mxu0 %v8658_v25  ;;  %7767 = vmatpush3.bf16.msra.mxu1 %v8662_v31  ;;  %v8722_v25 = vld [vmem:[#allocation11 + $0x1d0] ss:$12 sps:$4 sm:$0xff]  }
 0x481   :  { %5593 = vmatprep.subr.bf16.mxu0 %v8665_v43  ;;  %7780 = vmatprep.subr.bf16.mxu1 %v8666_v32  ;;  %v8725_v31 = vld [vmem:[#allocation11 + $0x64] ss:$12 sps:$4 sm:$0xff]   ;;  %v8726_v43 = vld [vmem:[#allocation11 + $0x2a8] ss:$12 sps:$4 sm:$0xff]  }
 0x482   :  { %v8727_v32 = vld [vmem:[#allocation11 + $0x1e8] ss:$12 sps:$4 sm:$0xff]  }
 0x483   :  { %5712 = vmatmul.mubr.bf16.vlgmr.msra.gmra.mrb[88].mxu1 %v9674_v48 }
 0x484   :  { %5594 = vmatpush1.bf16.msra.mxu0 %v8663_v18  ;;  %7781 = vmatpush3.bf16.msra.mxu1 %v8667_v41  ;;  %v8728_v18 = vld [vmem:[#allocation11 + $0x78] ss:$12 sps:$4 sm:$0xff]   ;;  %v8732_v41 = vld [vmem:[#allocation11 + $0x200] ss:$12 sps:$4 sm:$0xff]  }
 0x485   :  { %5595 = vmatprep.subr.bf16.mxu0 %v8670_v7  ;;  %7782 = vmatprep.subr.bf16.mxu1 %v8671_v26  ;;  %v8736_v7 = vld [vmem:[#allocation11 + $0x2d8] ss:$12 sps:$4 sm:$0xff]   ;;  %v8733_v26 = vld [vmem:[#allocation11 + $0x90] ss:$12 sps:$4 sm:$0xff]  }
 0x486   :  { %5719 = vmatprep.mubr.bf16.mxu1 %v9676_v28 }
 0x488   :  { %5596 = vmatpush1.bf16.msra.mxu0 %v8668_v33  ;;  %7783 = vmatpush3.bf16.msra.mxu1 %v8672_v6  ;;  %v8737_v33 = vld [vmem:[#allocation11 + $0x218] ss:$12 sps:$4 sm:$0xff]  }
 0x489   :  { %5597 = vmatprep.subr.bf16.mxu0 %v8675_v62  ;;  %7784 = vmatprep.subr.bf16.mxu1 %v8676_v58  ;;  %v8740_v6 = vld [vmem:[#allocation11 + $0xac] ss:$12 sps:$4 sm:$0xff]   ;;  %v8741_v62 = vld [vmem:[#allocation11 + $0x2f0] ss:$12 sps:$4 sm:$0xff]   ;;  %v8738_v58 = vld [vmem:[#allocation11 + $0xa8] ss:$12 sps:$4 sm:$0xff]  }
 0x48b   :  { %5720 = vmatmul.mubr.bf16.gmra.mrb[92].mxu1 %v9682_v8 }
 0x48c   :  { %5598 = vmatpush1.bf16.msra.mxu0 %v8673_v34  ;;  %7785 = vmatpush3.bf16.msra.mxu1 %v8677_v37  ;;  %v8742_v34 = vld [vmem:[#allocation11 + $0x230] ss:$12 sps:$4 sm:$0xff]  }
 0x48d   :  { %6566 = vmatprep.mubr.bf16.mxu1 %v9687_v20  ;;  %5599 = vmatprep.subr.bf16.mxu0 %v8680_v52  ;;  %v8745_v37 = vld [vmem:[#allocation11 + $0xc4] ss:$12 sps:$4 sm:$0xff]   ;;  %v8743_v52 = vld [vmem:[#allocation11 + $0xc0] ss:$12 sps:$4 sm:$0xff]  }
 0x48e   :  { %7786 = vmatprep.subr.bf16.mxu1 %v8681_v46  ;;  %v8748_v46 = vld [vmem:[#allocation11 + $0xdc] ss:$12 sps:$4 sm:$0xff]  }
 0x490   :  { %5600 = vmatpush1.bf16.msra.mxu0 %v8678_v14  ;;  %7787 = vmatpush3.bf16.msra.mxu1 %v8682_v38  ;;  %v8746_v14 = vld [vmem:[#allocation11 + $0xd8] ss:$12 sps:$4 sm:$0xff]   ;;  %v8751_v38 = vld [vmem:[#allocation11 + $0xf4] ss:$12 sps:$4 sm:$0xff]  }
 0x491   :  { %5601 = vmatprep.subr.bf16.mxu0 %v8685_v2  ;;  %7788 = vmatprep.subr.bf16.mxu1 %v8686_v45  ;;  %v5778_v2 = vld [vmem:[#allocation2 + $0x70] sm:$0xff] }
 0x492   :  { %v8749_v45 = vld [vmem:[#allocation11 + $0xf0] ss:$12 sps:$4 sm:$0xff]  }
 0x494   :  { %5602 = vmatpush1.bf16.msra.mxu0 %v8683_v1  ;;  %7789 = vmatpush3.bf16.msra.mxu1 %v8687_v54  ;;  %v8754_v1 = vld [vmem:[#allocation11 + $0x10c] ss:$12 sps:$4 sm:$0xff]   ;;  %v9714_v54 = vpack.c.bf16 %v5778_v2, %v9632_v27  ;;  %v8764_v27 = vld [vmem:[#allocation11 + $0x168] ss:$12 sps:$4 sm:$0xff]  }
 0x495   :  { %5603 = vmatprep.subr.bf16.mxu0 %v8690_v56  ;;  %7790 = vmatprep.subr.bf16.mxu1 %v8691_v49  ;;  %v8757_v56 = vld [vmem:[#allocation11 + $0x124] ss:$12 sps:$4 sm:$0xff]   ;;  %v8755_v49 = vld [vmem:[#allocation11 + $0x120] ss:$12 sps:$4 sm:$0xff]  }
 0x498   :  { %5604 = vmatpush1.bf16.msra.mxu0 %v8688_v10  ;;  %7791 = vmatpush3.bf16.msra.mxu1 %v8692_v47  ;;  %v8760_v10 = vld [vmem:[#allocation11 + $0x13c] ss:$12 sps:$4 sm:$0xff]   ;;  %v8758_v47 = vld [vmem:[#allocation11 + $0x138] ss:$12 sps:$4 sm:$0xff]  }
 0x499   :  { %5605 = vmatprep.subr.bf16.mxu0 %v8695_v4  ;;  %7792 = vmatprep.subr.bf16.mxu1 %v8696_v40  ;;  %v8763_v4 = vld [vmem:[#allocation11 + $0x154] ss:$12 sps:$4 sm:$0xff]   ;;  %v8761_v40 = vld [vmem:[#allocation11 + $0x150] ss:$12 sps:$4 sm:$0xff]  }
 0x49c   :  { %5606 = vmatpush1.bf16.msra.mxu0 %v8693_v39  ;;  %7793 = vmatpush3.bf16.msra.mxu1 %v8697_v24  ;;  %v8766_v39 = vld [vmem:[#allocation11 + $0x16c] ss:$12 sps:$4 sm:$0xff]   ;;  %v8769_v24 = vld [vmem:[#allocation11 + $0x184] ss:$12 sps:$4 sm:$0xff]  }
 0x49d   :  { %5607 = vmatprep.subr.bf16.mxu0 %v8700_v59  ;;  %7794 = vmatprep.subr.bf16.mxu1 %v8701_v55  ;;  %v8767_v59 = vld [vmem:[#allocation11 + $0x180] ss:$12 sps:$4 sm:$0xff]   ;;  %v8772_v55 = vld [vmem:[#allocation11 + $0x19c] ss:$12 sps:$4 sm:$0xff]  }
 0x4a0   :  { %5608 = vmatpush1.bf16.msra.mxu0 %v8698_v60  ;;  %7795 = vmatpush3.bf16.msra.mxu1 %v8702_v61  ;;  %v8770_v60 = vld [vmem:[#allocation11 + $0x198] ss:$12 sps:$4 sm:$0xff]   ;;  %v8775_v61 = vld [vmem:[#allocation11 + $0x1b4] ss:$12 sps:$4 sm:$0xff]  }
 0x4a1   :  { %6428 = vmatprep.subr.bf16.mxu0 %v8705_v15  ;;  %7808 = vmatprep.subr.bf16.mxu1 %v8706_v13  ;;  %v8773_v15 = vld [vmem:[#allocation11 + $0x1b0] ss:$12 sps:$4 sm:$0xff]   ;;  %v8778_v13 = vld [vmem:[#allocation11 + $0x1cc] ss:$12 sps:$4 sm:$0xff]  }
 0x4a3   :  { %5610 = vmatmul.mubr.bf16.vlgmr.msra.gmra.mrb[40].mxu0 %v9674_v48  ;;  %6567 = vmatmul.mubr.bf16.vlgmr.msra.gmra.mrb[96].mxu1 %v9691_v63  ;;  %v8735_v48 = vld [vmem:[#allocation11 + $0x94] ss:$12 sps:$4 sm:$0xff]  }
 0x4a4   :  { %6429 = vmatpush1.bf16.msra.mxu0 %v8703_v12  ;;  %6574 = vmatprep.mubr.bf16.mxu1 %v9695_v17  ;;  %v8781_v12 = vld [vmem:[#allocation11 + $0x1e4] ss:$12 sps:$4 sm:$0xff]  }
 0x4a5   :  { %7809 = vmatpush3.bf16.msra.mxu1 %v8707_v42  ;;  %6430 = vmatprep.subr.bf16.mxu0 %v8710_v3  ;;  %v8784_v42 = vld [vmem:[#allocation11 + $0x1fc] ss:$12 sps:$4 sm:$0xff]   ;;  %v8782_v3 = vld [vmem:[#allocation11 + $0x1f8] ss:$12 sps:$4 sm:$0xff]  }
 0x4a6   :  { %7810 = vmatprep.subr.bf16.mxu1 %v8711_v21  ;;  %5619 = vmatprep.mubr.bf16.mxu0 %v9676_v28  ;;  %v8785_v21 = vld [vmem:[#allocation11 + $0x210] ss:$12 sps:$4 sm:$0xff]  }
 0x4a8   :  { %6431 = vmatpush1.bf16.msra.mxu0 %v8708_v35  ;;  %v8790_v35 = vld [vmem:[#allocation11 + $0x22c] ss:$12 sps:$4 sm:$0xff]  }
 0x4a9   :  { %7811 = vmatpush3.bf16.msra.mxu1 %v8712_v16  ;;  %6432 = vmatprep.subr.bf16.mxu0 %v8715_v53  ;;  %v8788_v16 = vld [vmem:[#allocation11 + $0x228] ss:$12 sps:$4 sm:$0xff]   ;;  %v8793_v53 = vld [vmem:[#allocation11 + $0x244] ss:$12 sps:$4 sm:$0xff]  }
 0x4aa   :  { %7812 = vmatprep.subr.bf16.mxu1 %v8716_v19  ;;  %v8794_v19 = vld [vmem:[#allocation11 + $0x258] ss:$12 sps:$4 sm:$0xff]  }
 0x4ab   :  { %5620 = vmatmul.mubr.bf16.gmra.mrb[44].mxu0 %v9682_v8  ;;  %6575 = vmatmul.mubr.bf16.gmra.mrb[100].mxu1 %v9702_v23  ;;  %v5770_v8 = vld [vmem:[#allocation2 + $0x30] sm:$0xff] }
 0x4ac   :  { %6433 = vmatpush1.bf16.msra.mxu0 %v8713_v0  ;;  %6460 = vmatprep.mubr.bf16.mxu0 %v9687_v20  ;;  %v9709_v20 = vpack.c.bf16 %v5770_v8, %v9608_v22  ;;  %v8752_v22 = vld [vmem:[#allocation11 + $0x108] ss:$12 sps:$4 sm:$0xff]  }
 0x4ad   :  { %7813 = vmatpush3.bf16.msra.mxu1 %v8717_v50  ;;  %6434 = vmatprep.subr.bf16.mxu0 %v8720_v30  ;;  %v8799_v0 = vld [vmem:[#allocation11 + $0x274] ss:$12 sps:$4 sm:$0xff]   ;;  %v8802_v50 = vld [vmem:[#allocation11 + $0x28c] ss:$12 sps:$4 sm:$0xff]  }
 0x4ae   :  { %7814 = vmatprep.subr.bf16.mxu1 %v8721_v11  ;;  %6615 = vmatprep.mubr.bf16.mxu1 %v9664_v9  ;;  %v8800_v30 = vld [vmem:[#allocation11 + $0x288] ss:$12 sps:$4 sm:$0xff]   ;;  %v8805_v11 = vld [vmem:[#allocation11 + $0x2a4] ss:$12 sps:$4 sm:$0xff]  }
 0x4b0   :  { %6435 = vmatpush1.bf16.msra.mxu0 %v8718_v29  ;;  %v8803_v29 = vld [vmem:[#allocation11 + $0x2a0] ss:$12 sps:$4 sm:$0xff]  }
 0x4b1   :  { %7815 = vmatpush3.bf16.msra.mxu1 %v8722_v25  ;;  %6436 = vmatprep.subr.bf16.mxu0 %v8725_v31  ;;  %v8808_v25 = vld [vmem:[#allocation11 + $0x2bc] ss:$12 sps:$4 sm:$0xff]   ;;  %v8806_v31 = vld [vmem:[#allocation11 + $0x2b8] ss:$12 sps:$4 sm:$0xff]  }
 0x4b2   :  { %7816 = vmatprep.subr.bf16.mxu1 %v8726_v43  ;;  %v8811_v43 = vld [vmem:[#allocation11 + $0x2d4] ss:$12 sps:$4 sm:$0xff]  }
 0x4b4   :  { %6437 = vmatpush1.bf16.msra.mxu0 %v8723_v57  ;;  %v8809_v57 = vld [vmem:[#allocation11 + $0x2d0] ss:$12 sps:$4 sm:$0xff]  }
 0x4b5   :  { %7817 = vmatpush3.bf16.msra.mxu1 %v8727_v32  ;;  %6438 = vmatprep.subr.bf16.mxu0 %v8730_v51  ;;  %v8814_v32 = vld [vmem:[#allocation11 + $0x2ec] ss:$12 sps:$4 sm:$0xff]   ;;  %v8812_v51 = vld [vmem:[#allocation11 + $0x2e8] ss:$12 sps:$4 sm:$0xff]  }
 0x4b6   :  { %7818 = vmatprep.subr.bf16.mxu1 %v8731_v44 }
 0x4b8   :  { %6439 = vmatpush1.bf16.msra.mxu0 %v8728_v18 }
 0x4b9   :  { %7819 = vmatpush3.bf16.msra.mxu1 %v8732_v41  ;;  %6440 = vmatprep.subr.bf16.mxu0 %v8735_v48 }
 0x4ba   :  { %7820 = vmatprep.subr.bf16.mxu1 %v8736_v7 }
 0x4bc   :  { %6441 = vmatpush1.bf16.msra.mxu0 %v8733_v26 }
 0x4bd   :  { %7821 = vmatpush3.bf16.msra.mxu1 %v8737_v33  ;;  %6442 = vmatprep.subr.bf16.mxu0 %v8740_v6 }
 0x4be   :  { %7822 = vmatprep.subr.bf16.mxu1 %v8741_v62 }
 0x4c0   :  { %6443 = vmatpush1.bf16.msra.mxu0 %v8738_v58 }
 0x4c1   :  { %7823 = vmatpush3.bf16.msra.mxu1 %v8742_v34  ;;  %6444 = vmatprep.subr.bf16.mxu0 %v8745_v37 }
 0x4c4   :  { %6616 = vmatmul.mubr.bf16.vlgmr.msra.gmra.mrb[104].mxu1 %v9709_v20  ;;  %6445 = vmatpush1.bf16.msra.mxu0 %v8743_v52 }
 0x4c5   :  { %6446 = vmatprep.subr.bf16.mxu0 %v8748_v46  ;;  %6623 = vmatprep.mubr.bf16.mxu1 %v9676_v28 }
 0x4c8   :  { %6447 = vmatpush1.bf16.msra.mxu0 %v8746_v14 }
 0x4c9   :  { %6448 = vmatprep.subr.bf16.mxu0 %v8751_v38 }
 0x4cc   :  { %6624 = vmatmul.mubr.bf16.gmra.mrb[108].mxu1 %v9714_v54  ;;  %6449 = vmatpush1.bf16.msra.mxu0 %v8749_v45 }
 0x4cd   :  { %6450 = vmatprep.subr.bf16.mxu0 %v8754_v1 }
 0x4d0   :  { %6451 = vmatpush1.bf16.msra.mxu0 %v8752_v22 }
 0x4d1   :  { %6452 = vmatprep.subr.bf16.mxu0 %v8757_v56 }
 0x4d4   :  { %6453 = vmatpush1.bf16.msra.mxu0 %v8755_v49 }
 0x4d5   :  { %6454 = vmatprep.subr.bf16.mxu0 %v8760_v10 }
 0x4d8   :  { %6455 = vmatpush1.bf16.msra.mxu0 %v8758_v47 }
 0x4d9   :  { %6456 = vmatprep.subr.bf16.mxu0 %v8763_v4 }
 0x4dc   :  { %6457 = vmatpush1.bf16.msra.mxu0 %v8761_v40 }
 0x4dd   :  { %6458 = vmatprep.subr.bf16.mxu0 %v8766_v39 }
 0x4e0   :  { %6459 = vmatpush1.bf16.msra.mxu0 %v8764_v27 }
 0x4e1   :  { %6481 = vmatprep.subr.bf16.mxu0 %v8769_v24 }
 0x4e3   :  { %6461 = vmatmul.mubr.bf16.vlgmr.msra.gmra.mrb[40].mxu0 %v9691_v63  ;;  %v8779_v63 = vld [vmem:[#allocation11 + $0x1e0] ss:$12 sps:$4 sm:$0xff]  }
 0x4e4   :  { %6470 = vmatprep.mubr.bf16.mxu0 %v9695_v17  ;;  %6482 = vmatpush1.bf16.msra.mxu0 %v8767_v59  ;;  %v8787_v17 = vld [vmem:[#allocation11 + $0x214] ss:$12 sps:$4 sm:$0xff]  }
 0x4e5   :  { %6483 = vmatprep.subr.bf16.mxu0 %v8772_v55 }
 0x4e8   :  { %6484 = vmatpush1.bf16.msra.mxu0 %v8770_v60 }
 0x4e9   :  { %6485 = vmatprep.subr.bf16.mxu0 %v8775_v61 }
 0x4eb   :  { %6471 = vmatmul.mubr.bf16.gmra.mrb[44].mxu0 %v9702_v23  ;;  %v8797_v23 = vld [vmem:[#allocation11 + $0x270] ss:$12 sps:$4 sm:$0xff]  }
 0x4ec   :  { %6486 = vmatpush1.bf16.msra.mxu0 %v8773_v15  ;;  %6513 = vmatprep.mubr.bf16.mxu0 %v9664_v9  ;;  %v8791_v9 = vld [vmem:[#allocation11 + $0x240] ss:$12 sps:$4 sm:$0xff]  }
 0x4ed   :  { %6487 = vmatprep.subr.bf16.mxu0 %v8778_v13 }
 0x4f0   :  { %6488 = vmatpush1.bf16.msra.mxu0 %v8776_v36 }
 0x4f1   :  { %6489 = vmatprep.subr.bf16.mxu0 %v8781_v12 }
 0x4f4   :  { %6490 = vmatpush1.bf16.msra.mxu0 %v8779_v63 }
 0x4f5   :  { %6491 = vmatprep.subr.bf16.mxu0 %v8784_v42 }
 0x4f8   :  { %6492 = vmatpush1.bf16.msra.mxu0 %v8782_v3 }
 0x4f9   :  { %6493 = vmatprep.subr.bf16.mxu0 %v8787_v17 }
 0x4fc   :  { %6494 = vmatpush1.bf16.msra.mxu0 %v8785_v21 }
 0x4fd   :  { %6495 = vmatprep.subr.bf16.mxu0 %v8790_v35 }
 0x500   :  { %6496 = vmatpush1.bf16.msra.mxu0 %v8788_v16 }
 0x501   :  { %6497 = vmatprep.subr.bf16.mxu0 %v8793_v53 }
 0x504   :  { %6498 = vmatpush1.bf16.msra.mxu0 %v8791_v9 }
 0x505   :  { %6499 = vmatprep.subr.bf16.mxu0 %v8796_v5 }
 0x508   :  { %6500 = vmatpush1.bf16.msra.mxu0 %v8794_v19 }
 0x509   :  { %6501 = vmatprep.subr.bf16.mxu0 %v8799_v0 }
 0x50c   :  { %6502 = vmatpush1.bf16.msra.mxu0 %v8797_v23 }
 0x50d   :  { %6503 = vmatprep.subr.bf16.mxu0 %v8802_v50 }
 0x510   :  { %6504 = vmatpush1.bf16.msra.mxu0 %v8800_v30 }
 0x511   :  { %6505 = vmatprep.subr.bf16.mxu0 %v8805_v11 }
 0x514   :  { %6506 = vmatpush1.bf16.msra.mxu0 %v8803_v29 }
 0x515   :  { %6507 = vmatprep.subr.bf16.mxu0 %v8808_v25 }
 0x518   :  { %6508 = vmatpush1.bf16.msra.mxu0 %v8806_v31 }
 0x519   :  { %6509 = vmatprep.subr.bf16.mxu0 %v8811_v43 }
 0x51c   :  { %6510 = vmatpush1.bf16.msra.mxu0 %v8809_v57 }
 0x51d   :  { %6511 = vmatprep.subr.bf16.mxu0 %v8814_v32 }
 0x520   :  { %6512 = vmatpush1.bf16.msra.mxu0 %v8812_v51 }
 0x523   :  { %6514 = vmatmul.mubr.bf16.vlgmr.msra.gmra.mrb[40].mxu0 %v9709_v20 }
 0x524   :  { %6523 = vmatprep.mubr.bf16.mxu0 %v9676_v28 }
 0x52b   :  { %6524 = vmatmul.mubr.bf16.gmra.mrb[44].mxu0 %v9714_v54 }
 0x536   :  { %v7740_v44 = vpop.f32.mrb[80].mxu1 }
 0x537   :  { %v7741_v18 = vpop.f32.mrb[81].mxu1 }
 0x538   :  { %v7742_v41 = vadd.f32 %v7741_v18, %v7740_v44  ;;  %v7743_v48 = vpop.f32.mrb[82].mxu1 }
 0x539   :  { %v7744_v7 = vpop.f32.mrb[83].mxu1 }
 0x53a   :  { %v7745_v26 = vadd.f32 %v7744_v7, %v7743_v48 }
 0x53e   :  { %v7746_v33 = vpop.f32.mrb[84].mxu1 }
 0x53f   :  { %v7747_v6 = vpop.f32.mrb[85].mxu1 }
 0x540   :  { %v7748_v62 = vadd.f32 %v7747_v6, %v7746_v33  ;;  %v7749_v58 = vpop.f32.mrb[86].mxu1 }
 0x541   :  { %v7750_v34 = vpop.f32.mrb[87].mxu1 }
 0x542   :  { %v7751_v37 = vadd.f32 %v7750_v34, %v7749_v58 }
 0x556   :  { %v7768_v8 = vpop.f32.mrb[88].mxu1 }
 0x557   :  { %v7769_v52 = vpop.f32.mrb[89].mxu1 }
 0x558   :  { %v7770_v46 = vadd.f32 %v7769_v52, %v7768_v8  ;;  %v7771_v20 = vpop.f32.mrb[90].mxu1 }
 0x559   :  { %v7772_v14 = vpop.f32.mrb[91].mxu1 }
 0x55a   :  { %v9724_v28 = vadd.f32 %v7770_v46, %v7742_v41  ;;  %v7773_v38 = vadd.f32 %v7772_v14, %v7771_v20 }
 0x55c   :  { %v9726_v2 = vadd.f32 %v7773_v38, %v7745_v26 }
 0x55e   :  { %v7774_v45 = vpop.f32.mrb[92].mxu1 }
 0x55f   :  { %v7775_v1 = vpop.f32.mrb[93].mxu1 }
 0x560   :  { %v7776_v54 = vadd.f32 %v7775_v1, %v7774_v45  ;;  %v7777_v22 = vpop.f32.mrb[94].mxu1 }
 0x561   :  { %v7778_v56 = vpop.f32.mrb[95].mxu1 }
 0x562   :  { %v9728_v49 = vadd.f32 %v7776_v54, %v7748_v62  ;;  %v7779_v10 = vadd.f32 %v7778_v56, %v7777_v22 }
 0x564   :  { %v9730_v47 = vadd.f32 %v7779_v10, %v7751_v37 }
 0x576   :  { %v7796_v4 = vpop.f32.mrb[96].mxu1 }
 0x577   :  { %v7797_v40 = vpop.f32.mrb[97].mxu1 }
 0x578   :  { %v7798_v39 = vadd.f32 %v7797_v40, %v7796_v4  ;;  %v7799_v27 = vpop.f32.mrb[98].mxu1 }
 0x579   :  { %v7800_v24 = vpop.f32.mrb[99].mxu1 }
 0x57a   :  { %v7801_v59 = vadd.f32 %v7800_v24, %v7799_v27 }
 0x57e   :  { %v7802_v55 = vpop.f32.mrb[100].mxu1 }
 0x57f   :  { %v7803_v60 = vpop.f32.mrb[101].mxu1 }
 0x580   :  { %v7804_v61 = vadd.f32 %v7803_v60, %v7802_v55  ;;  %v7805_v15 = vpop.f32.mrb[102].mxu1 }
 0x581   :  { %v7806_v13 = vpop.f32.mrb[103].mxu1 }
 0x582   :  { %v7807_v36 = vadd.f32 %v7806_v13, %v7805_v15 }
 0x597   :  { %v7824_v12 = vpop.f32.mrb[104].mxu1 }
 0x598   :  { %v7825_v63 = vpop.f32.mrb[105].mxu1 }
 0x599   :  { %v7826_v42 = vadd.f32 %v7825_v63, %v7824_v12  ;;  %v7827_v3 = vpop.f32.mrb[106].mxu1 }
 0x59a   :  { %v7828_v17 = vpop.f32.mrb[107].mxu1 }
 0x59b   :  { %v6618_v21 = vadd.f32 %v7826_v42, %v7798_v39  ;;  %v7829_v35 = vadd.f32 %v7828_v17, %v7827_v3  ;;  %v8975_v17 = vld [vmem:[#allocation2 + $0x8] sm:$0xff] }
 0x59d   :  { %v6621_v16 = vadd.f32 %v7829_v35, %v7801_v59 }
 0x59f   :  { %v7830_v53 = vpop.f32.mrb[108].mxu1 }
 0x5a0   :  { %v7831_v9 = vpop.f32.mrb[109].mxu1 }
 0x5a1   :  { %v7832_v5 = vadd.f32 %v7831_v9, %v7830_v53  ;;  %v7833_v19 = vpop.f32.mrb[110].mxu1  ;;  %v8976_v53 = vld [vmem:[#allocation2 + $0x28] sm:$0xff] }
 0x5a2   :  { %v7834_v0 = vpop.f32.mrb[111].mxu1 }
 0x5a3   :  { %v6626_v23 = vadd.f32 %v7832_v5, %v7804_v61  ;;  %v7835_v50 = vadd.f32 %v7834_v0, %v7833_v19 }
 0x5a5   :  { %v6629_v30 = vadd.f32 %v7835_v50, %v7807_v36 }
 0x5f6   :  { %v6515_v11 = vpop.f32.mrb[40].mxu0 }
 0x5f7   :  { %v7436_v29 = vmul.f32 -1.442695, %v6515_v11  ;;  %v6517_v25 = vpop.f32.mrb[41].mxu0  ;;  %v8977_v11 = vld [vmem:[#allocation2 + $0x48] sm:$0xff] }
 0x5f8   :  { %v6519_v31 = vpop.f32.mrb[42].mxu0  ;;  %v7437_v32 = vmul.f32 -1.442695, %v6517_v25 }
 0x5f9   :  { %8935 = vpow2.f32 %v7436_v29  ;;  %v7438_v43 = vmul.f32 -1.442695, %v6519_v31  ;;  %v6521_v57 = vpop.f32.mrb[43].mxu0 }
 0x5fa   :  { %v7439_v51 = vmul.f32 -1.442695, %v6521_v57 }
 0x5fb   :  { %8937 = vpow2.f32 %v7438_v43  ;;  %v8978_v43 = vld [vmem:[#allocation2 + $0x68] sm:$0xff] }
 0x5fc   :  { %8939 = vpow2.f32 %v7437_v32 }
 0x5fe   :  { %v6525_v44 = vpop.f32.mrb[44].mxu0 }
 0x5ff   :  { %v7440_v18 = vmul.f32 -1.442695, %v6525_v44  ;;  %v6527_v41 = vpop.f32.mrb[45].mxu0 }
 0x600   :  { %v6529_v48 = vpop.f32.mrb[46].mxu0  ;;  %v7441_v6 = vmul.f32 -1.442695, %v6527_v41 }
 0x601   :  { %8941 = vpow2.f32 %v7440_v18  ;;  %v7442_v7 = vmul.f32 -1.442695, %v6529_v48  ;;  %v6531_v26 = vpop.f32.mrb[47].mxu0 }
 0x602   :  { %8943 = vpow2.f32 %v7439_v51  ;;  %v7443_v37 = vmul.f32 -1.442695, %v6531_v26 }
 0x603   :  { %v8936_v33 = vpop.eup %8935  ;;  %8945 = vpow2.f32 %v7442_v7 }
 0x604   :  { %v6664_v62 = vadd.f32 1.0, %v8936_v33 }
 0x605   :  { %v8938_v58 = vpop.eup %8937 }
 0x606   :  { %8947 = vrcp.f32 %v6664_v62  ;;  %v6666_v34 = vadd.f32 1.0, %v8938_v58  ;;  %v8940_v8 = vpop.eup %8939 }
 0x607   :  { %8949 = vpow2.f32 %v7441_v6  ;;  %v6665_v38 = vadd.f32 1.0, %v8940_v8 }
 0x608   :  { %8951 = vrcp.f32 %v6666_v34 }
 0x609   :  { %8953 = vpow2.f32 %v7443_v37 }
 0x60b   :  { %v8942_v52 = vpop.eup %8941 }
 0x60c   :  { %v8944_v46 = vpop.eup %8943  ;;  %v6668_v20 = vadd.f32 1.0, %v8942_v52 }
 0x60d   :  { %v8946_v14 = vpop.eup %8945  ;;  %v6667_v1 = vadd.f32 1.0, %v8944_v46 }
 0x60e   :  { %8955 = vrcp.f32 %v6668_v20  ;;  %v6670_v45 = vadd.f32 1.0, %v8946_v14 }
 0x610   :  { %v8948_v54 = vpop.eup %8947  ;;  %8957 = vrcp.f32 %v6670_v45 }
 0x611   :  { %v8950_v22 = vpop.eup %8949  ;;  %v6688_v56 = vmul.f32 %v8948_v54, %v6618_v21  ;;  %8959 = vrcp.f32 %v6665_v38 }
 0x612   :  { %v8952_v10 = vpop.eup %8951  ;;  %8961 = vrcp.f32 %v6667_v1  ;;  %v6669_v24 = vadd.f32 1.0, %v8950_v22 }
 0x613   :  { %v6692_v4 = vadd.f32 %v6688_v56, %v9724_v28  ;;  %v6689_v40 = vmul.f32 %v8952_v10, %v6621_v16  ;;  %v8954_v39 = vpop.eup %8953 }
 0x614   :  { %v6671_v59 = vadd.f32 1.0, %v8954_v39 }
 0x615   :  { %8963 = vtanh.f32 %v6692_v4  ;;  %v6693_v27 = vadd.f32 %v6689_v40, %v9726_v2 }
 0x617   :  { %8965 = vtanh.f32 %v6693_v27 }
 0x618   :  { %v8956_v55 = vpop.eup %8955  ;;  %8967 = vrcp.f32 %v6669_v24 }
 0x619   :  { %v6690_v60 = vmul.f32 %v8956_v55, %v6626_v23  ;;  %8969 = vrcp.f32 %v6671_v59 }
 0x61a   :  { %v8958_v61 = vpop.eup %8957 }
 0x61b   :  { %v8960_v15 = vpop.eup %8959  ;;  %v6694_v13 = vadd.f32 %v6690_v60, %v9728_v49  ;;  %v6691_v36 = vmul.f32 %v8958_v61, %v6629_v30 }
 0x61c   :  { %v8962_v12 = vpop.eup %8961  ;;  %v6700_v63 = vsub.f32 1.0, %v8960_v15  ;;  %v6708_v21 = vmul.f32 %v8975_v17, %v8960_v15 }
 0x61d   :  { %8971 = vtanh.f32 %v6694_v13  ;;  %v6695_v28 = vadd.f32 %v6691_v36, %v9730_v47  ;;  %v6701_v2 = vsub.f32 1.0, %v8962_v12  ;;  %v6709_v9 = vmul.f32 %v8976_v53, %v8962_v12 }
 0x61f   :  { %v8964_v42 = vpop.eup %8963  ;;  %8973 = vtanh.f32 %v6695_v28 }
 0x620   :  { %v6704_v3 = vmul.f32 %v8964_v42, %v6700_v63 }
 0x621   :  { %v8966_v35 = vpop.eup %8965 }
 0x622   :  { %v6705_v16 = vmul.f32 %v8966_v35, %v6701_v2  ;;  %v6712_v5 = vadd.f32 %v6708_v21, %v6704_v3  ;;  %v8968_v19 = vpop.eup %8967 }
 0x623   :  { %v8970_v0 = vpop.eup %8969  ;;  %v6702_v23 = vsub.f32 1.0, %v8968_v19  ;;  %v6710_v29 = vmul.f32 %v8977_v11, %v8968_v19 }
 0x624   :  { %v6713_v49 = vadd.f32 %v6709_v9, %v6705_v16  ;;  %6716 = vst [vmem:[#allocation12] sm:$0xff] %v6712_v5  ;;  %v6703_v47 = vsub.f32 1.0, %v8970_v0  ;;  %v6711_v57 = vmul.f32 %v8978_v43, %v8970_v0 }
 0x626   :  { %6717 = vst [vmem:[#allocation12 + $0x8] sm:$0xff] %v6713_v49 }
 0x627   :  { %v8972_v50 = vpop.eup %8971 }
 0x628   :  { %v6706_v30 = vmul.f32 %v8972_v50, %v6702_v23 }
 0x629   :  { %v8974_v25 = vpop.eup %8973 }
 0x62a   :  { %v6707_v31 = vmul.f32 %v8974_v25, %v6703_v47  ;;  %v6714_v32 = vadd.f32 %v6710_v29, %v6706_v30 }
 0x62c   :  { %v6715_v51 = vadd.f32 %v6711_v57, %v6707_v31  ;;  %6718 = vst [vmem:[#allocation12 + $0x10] sm:$0xff] %v6714_v32 }
 0x62e   :  { %6719 = vst [vmem:[#allocation12 + $0x18] sm:$0xff] %v6715_v51 }
 0x62f   :  { %9108 = shalt.err (!%p9105_p2)
}
 0x630   :  { %s9109_s9 = scalar_lea.hbm %s9756_s5, 512 }
 0x631   :  { %p9110_p3 = scmp.ne.s32.totalorder %s9756_s5, %s9109_s9  ;;  %p9113_p4 = scmp.lt.u32.totalorder %s9109_s9, %s9756_s5 }
 0x633   :  { %p9115_p5 = pnand %p9113_p4, %p9110_p3 }
 0x635   :  { %9118 = shalt.err (!%p9115_p5)
}
 0x636   :  { %6731 = dma.vmem_to_hbm [thread:$0]  %s6726_s28, 512, %s9756_s5, [#allocation5], %s9132_s3, %s9132_s3, %s9133_s30  }
 0x637   :  { %9125 = dma.done.wait [#allocation5], 512  }
 0x638   :  { %9126 = vsyncadd [#allocation5], 4294966784 }
 0x639   :  { %6735 = vsyncpa [#allocation4], 1 }
 0x63a   :  { %6736 = vsyncpa [#allocation7], 1 }
 0x63b   :  { %6737 = vsyncpa [#allocation10], 1 }
 0x63c   :  { %6738 = vsyncpa [#allocation5], 1 }

</bundles_post_ra>
